<compile_context>
chip_gen: v7x
topology: tpu7x:2x2x1
jax: 0.10.0
libtpu: 0.0.40
codegen_flags: <defaults>
</compile_context>

<pallas_src>
import functools

import jax
import jax.numpy as jnp
from jax import lax
from jax.experimental import pallas as pl
from jax.experimental.pallas import tpu as pltpu


def _rup(x, m):
    return ((x + m - 1) // m) * m


def _pick_tile_m(M, target=512):
    """Largest tile (multiple of 8, <= target) that divides M (M % 8 == 0)."""
    for tm in range(min(target, M), 7, -8):
        if M % tm == 0:
            return tm
    return M


# ----------------------------------------------------------------------------
# Classifier: Linear + log_softmax fused, lane-dense (128-wide) padded vocab
# ----------------------------------------------------------------------------

def _linear_logsoftmax_kernel(x_ref, w_ref, b_ref, o_ref):
    logits = (jnp.dot(x_ref[...], w_ref[...],
                      preferred_element_type=jnp.float32) + b_ref[...])
    m = jnp.max(logits, axis=-1, keepdims=True)
    z = logits - m
    lse = jnp.log(jnp.sum(jnp.exp(z), axis=-1, keepdims=True))
    o_ref[...] = z - lse


def linear_logsoftmax(x, w, b):
    """x: (M, K) bf16, w: (K, Vp) bf16, b: (1, Vp) f32 -> row log_softmax (f32)."""
    M, K = x.shape
    N = w.shape[1]
    tm = _pick_tile_m(M)                      # divisor of M -> no pad copy
    return pl.pallas_call(
        _linear_logsoftmax_kernel,
        out_shape=jax.ShapeDtypeStruct((M, N), jnp.float32),
        grid_spec=pltpu.PrefetchScalarGridSpec(
            num_scalar_prefetch=0,
            grid=(M // tm,),
            in_specs=[pl.BlockSpec((tm, K), lambda m: (m, 0)),
                      pl.BlockSpec((K, N), lambda m: (0, 0)),
                      pl.BlockSpec((1, N), lambda m: (0, 0))],
            out_specs=pl.BlockSpec((tm, N), lambda m: (m, 0))),
        compiler_params=pltpu.CompilerParams(
            dimension_semantics=("parallel",)),
    )(x, w, b)


# ----------------------------------------------------------------------------
# Bidirectional LSTM layer: one pallas_call, grid = (time chunks,)
#   - fused input projection (bf16 MXU) into VMEM gate scratch
#   - forward and backward recurrences interleaved in the same grid step
# ----------------------------------------------------------------------------

def _bilstm_kernel(lens_ref, xf_ref, xb_ref, win_ref, bin_ref, whh_ref,
                   of_ref, ob_ref,
                   gf_sc, gb_sc, yf_sc, yb_sc, hf_sc, cf_sc, hb_sc, cb_sc,
                   *, Hp, Tc, Bp, unroll):
    # lens_ref : (Bp, 1)        int32  true lengths (0 for padded batch rows)
    # xf_ref   : (Tc*Bp, Din)   bf16   layer input, forward time chunk g
    # xb_ref   : (Tc*Bp, Din)   bf16   layer input, backward chunk Tn-1-g
    # win_ref  : (Din, 8*Hp)    bf16   [fwd 4Hp | bwd 4Hp] input-proj weights
    # bin_ref  : (1, 8*Hp)      f32    fused b_ih + b_hh, both directions
    # whh_ref  : (2, Hp, 4*Hp)  bf16   recurrent weights (0 = fwd, 1 = bwd)
    # of_ref   : (Tc*Bp, Hp)    bf16   forward hidden states for chunk g
    # ob_ref   : (Tc*Bp, Hp)    bf16   backward hidden states for chunk Tn-1-g
    # gf/gb_sc : (Tc*Bp, 4*Hp)  f32    chunk gate pre-activations (fused proj)
    # yf/yb_sc : (Tc*Bp, Hp)    f32    per-chunk output staging (dense stores)
    # h*/c*_sc : (Bp, Hp)       f32    recurrent state, persists across chunks
    g = pl.program_id(0)
    Tn = pl.num_programs(0)

    # Grid is 1-D and "arbitrary" (sequential on one core), so the scratch
    # state legitimately carries from chunk to chunk; reset it at chunk 0.
    @pl.when(g == 0)
    def _():
        hf_sc[...] = jnp.zeros_like(hf_sc)
        cf_sc[...] = jnp.zeros_like(cf_sc)
        hb_sc[...] = jnp.zeros_like(hb_sc)
        cb_sc[...] = jnp.zeros_like(cb_sc)

    lens = lens_ref[...]                                    # (Bp, 1) int32

    # Fused input projection for both directions' current chunks: bf16
    # operands on the MXU, f32 accumulation, result kept in VMEM scratch
    # (previously a separate pallas_call + (T*B, 8Hp) f32 HBM round trip).
    gf_sc[...] = (jnp.dot(xf_ref[...], win_ref[:, :4 * Hp],
                          preferred_element_type=jnp.float32)
                  + bin_ref[:, :4 * Hp])
    gb_sc[...] = (jnp.dot(xb_ref[...], win_ref[:, 4 * Hp:],
                          preferred_element_type=jnp.float32)
                  + bin_ref[:, 4 * Hp:])

    whh_f = whh_ref[0]                                      # (Hp, 4Hp) bf16
    whh_b = whh_ref[1]
    t0_f = g * Tc                                           # chunk start, fwd
    t0_b = (Tn - 1 - g) * Tc                                # chunk start, bwd

    def sigm(x):   # sigmoid via tanh: 1 EUP op instead of exp + reciprocal
        return 0.5 * jnp.tanh(0.5 * x) + 0.5

    def cell(gates, h_prev, c_prev, t_real):
        # PyTorch gate order i, f, g, o; each slice is one 128-lane tile.
        i_g = sigm(gates[:, 0 * Hp:1 * Hp])
        f_g = sigm(gates[:, 1 * Hp:2 * Hp])
        g_g = jnp.tanh(gates[:, 2 * Hp:3 * Hp])
        o_g = sigm(gates[:, 3 * Hp:4 * Hp])
        c_new = f_g * c_prev + i_g * g_g
        h_new = o_g * jnp.tanh(c_new)
        valid = lens > t_real                               # packed-seq mask
        c_nxt = jnp.where(valid, c_new, c_prev)             # freeze on pad step
        h_nxt = jnp.where(valid, h_new, h_prev)
        h_out = jnp.where(valid, h_new, 0.0)                # pad_packed zero fill
        return h_nxt, c_nxt, h_out

    def step(i, carry):
        hf, cf, hb, cb = carry
        # ---- forward chain: ascending time inside chunk g
        rf = pl.multiple_of(i * Bp, Bp)
        gates_f = gf_sc[pl.ds(rf, Bp), :] + jnp.dot(
            hf.astype(jnp.bfloat16), whh_f, preferred_element_type=jnp.float32)
        hf, cf, hof = cell(gates_f, hf, cf, t0_f + i)
        yf_sc[pl.ds(rf, Bp), :] = hof
        # ---- backward chain: descending time inside chunk Tn-1-g.
        # Independent of the forward chain, so the two latency-bound
        # recurrences interleave on the same TensorCore.
        j = Tc - 1 - i
        rb = pl.multiple_of(j * Bp, Bp)
        gates_b = gb_sc[pl.ds(rb, Bp), :] + jnp.dot(
            hb.astype(jnp.bfloat16), whh_b, preferred_element_type=jnp.float32)
        hb, cb, hob = cell(gates_b, hb, cb, t0_b + j)
        yb_sc[pl.ds(rb, Bp), :] = hob
        return (hf, cf, hb, cb)

    hf, cf, hb, cb = lax.fori_loop(
        0, Tc, step, (hf_sc[...], cf_sc[...], hb_sc[...], cb_sc[...]),
        unroll=unroll)
    hf_sc[...] = hf
    cf_sc[...] = cf
    hb_sc[...] = hb
    cb_sc[...] = cb
    # Single dense bf16 store per chunk per direction (lane/sublane aligned).
    of_ref[...] = yf_sc[...].astype(jnp.bfloat16)
    ob_ref[...] = yb_sc[...].astype(jnp.bfloat16)


def bilstm_layer(x2d, lens2d, w_in, b_in, w_hh, *, Hp, Tc, Bp):
    """x2d: (Tp*Bp, Din) bf16, time-major rows (row = t*Bp + b).

    Returns (out_fwd, out_bwd), each (Tp*Bp, Hp) bf16, zero on padded steps.
    """
    M, Din = x2d.shape
    TB = Tc * Bp
    Tn = M // TB
    kernel = functools.partial(_bilstm_kernel, Hp=Hp, Tc=Tc, Bp=Bp,
                               unroll=min(8, Tc))
    return pl.pallas_call(
        kernel,
        out_shape=(jax.ShapeDtypeStruct((M, Hp), jnp.bfloat16),
                   jax.ShapeDtypeStruct((M, Hp), jnp.bfloat16)),
        grid_spec=pltpu.PrefetchScalarGridSpec(
            num_scalar_prefetch=0,
            grid=(Tn,),
            in_specs=[
                pl.BlockSpec((Bp, 1), lambda g: (0, 0)),              # lens
                pl.BlockSpec((TB, Din), lambda g: (g, 0)),            # x, fwd chunk
                pl.BlockSpec((TB, Din), lambda g: (Tn - 1 - g, 0)),   # x, bwd chunk
                pl.BlockSpec((Din, 8 * Hp), lambda g: (0, 0)),        # w_in (const)
                pl.BlockSpec((1, 8 * Hp), lambda g: (0, 0)),          # b_in (const)
                pl.BlockSpec((2, Hp, 4 * Hp), lambda g: (0, 0, 0)),   # w_hh (const)
            ],
            out_specs=[
                pl.BlockSpec((TB, Hp), lambda g: (g, 0)),             # fwd half
                pl.BlockSpec((TB, Hp), lambda g: (Tn - 1 - g, 0)),    # bwd half
            ],
            scratch_shapes=[
                pltpu.VMEM((TB, 4 * Hp), jnp.float32),   # fwd gate pre-acts
                pltpu.VMEM((TB, 4 * Hp), jnp.float32),   # bwd gate pre-acts
                pltpu.VMEM((TB, Hp), jnp.float32),       # fwd output staging
                pltpu.VMEM((TB, Hp), jnp.float32),       # bwd output staging
                pltpu.VMEM((Bp, Hp), jnp.float32),       # h fwd
                pltpu.VMEM((Bp, Hp), jnp.float32),       # c fwd
                pltpu.VMEM((Bp, Hp), jnp.float32),       # h bwd
                pltpu.VMEM((Bp, Hp), jnp.float32),       # c bwd
            ]),
        compiler_params=pltpu.CompilerParams(
            dimension_semantics=("arbitrary",)),         # state carried over grid
    )(lens2d, x2d, x2d, w_in, b_in, w_hh)


# ----------------------------------------------------------------------------
# Parameter init (PyTorch layout) and conversion to padded kernel layout
# ----------------------------------------------------------------------------

def init_params(key, out_vocab, embed_size, hidden_size, in_channel=13):
    def nrm(k, shape, scale=0.1):
        return scale * jax.random.normal(k, shape, dtype=jnp.float32)

    keys = iter(jax.random.split(key, 64))
    p = {"conv_w": nrm(next(keys), (embed_size, in_channel, 3))}

    def lstm_dir(din, h):
        return dict(w_ih=nrm(next(keys), (4 * h, din)),
                    w_hh=nrm(next(keys), (4 * h, h)),
                    b_ih=nrm(next(keys), (4 * h,)),
                    b_hh=nrm(next(keys), (4 * h,)))

    dins = [embed_size, 2 * hidden_size, 2 * hidden_size]
    p["lstms"] = [(lstm_dir(d, hidden_size), lstm_dir(d, hidden_size)) for d in dins]
    p["lin_w"] = nrm(next(keys), (out_vocab + 1, 2 * hidden_size))
    p["lin_b"] = nrm(next(keys), (out_vocab + 1,))
    return p


def _pad_gate_cols(w, H, Hp):
    # (Din, 4H) -> (Din, 4Hp): gate k's H columns land at [k*Hp, k*Hp+H)
    out = jnp.zeros((w.shape[0], 4 * Hp), jnp.float32)
    for k in range(4):
        out = out.at[:, k * Hp:k * Hp + H].set(w[:, k * H:(k + 1) * H])
    return out


def _pad_gate_vec(b, H, Hp):
    out = jnp.zeros((4 * Hp,), jnp.float32)
    for k in range(4):
        out = out.at[k * Hp:k * Hp + H].set(b[k * H:(k + 1) * H])
    return out


def _pad_bidir_rows(w, H, Hp):
    # (2H, N) rows = [fwd H, bwd H] -> (2Hp, N) rows at [0:H) and [Hp:Hp+H)
    out = jnp.zeros((2 * Hp, w.shape[1]), jnp.float32)
    out = out.at[0:H, :].set(w[0:H, :])
    out = out.at[Hp:Hp + H, :].set(w[H:2 * H, :])
    return out


def prepare_model(torch_params, out_vocab, embed_size, hidden_size, in_channel=13):
    H, E, C, V1 = hidden_size, embed_size, in_channel, out_vocab + 1
    Hp, Vp = _rup(H, 128), _rup(V1, 128)

    # Conv1d -> im2col weight (3C, E); row index = tap*C + channel.
    conv_w = jnp.transpose(torch_params["conv_w"], (2, 1, 0)).reshape(3 * C, E)

    layers = []
    for li, (fwd, bwd) in enumerate(torch_params["lstms"]):
        first = (li == 0)
        w_in_dirs, b_in_dirs, w_hh_dirs = [], [], []
        for d in (fwd, bwd):
            wiht = _pad_gate_cols(d["w_ih"].T, H, Hp)          # (Din, 4Hp)
            if first:
                # Fold Conv1d (no bias, no nonlinearity in between) into the
                # layer-0 input projection: (3C, E) @ (E, 4Hp) -> (3C, 4Hp).
                wih_p = conv_w @ wiht
            else:
                wih_p = _pad_bidir_rows(wiht, H, Hp)           # (2Hp, 4Hp)
            w_in_dirs.append(wih_p)
            b_in_dirs.append(_pad_gate_vec(d["b_ih"] + d["b_hh"], H, Hp))
            whht = _pad_gate_cols(d["w_hh"].T, H, Hp)          # (H, 4Hp)
            w_hh_dirs.append(
                jnp.zeros((Hp, 4 * Hp), jnp.float32).at[:H].set(whht))
        layers.append(dict(
            w_in=jnp.concatenate(w_in_dirs, axis=1).astype(jnp.bfloat16),  # (Din, 8Hp)
            b_in=jnp.concatenate(b_in_dirs, axis=0).reshape(1, 8 * Hp),    # f32
            w_hh=jnp.stack(w_hh_dirs, axis=0).astype(jnp.bfloat16)))       # (2,Hp,4Hp)

    lw = _pad_bidir_rows(torch_params["lin_w"].T, H, Hp)       # (2Hp, V1)
    lin_w = (jnp.zeros((2 * Hp, Vp), jnp.float32).at[:, :V1].set(lw)
             .astype(jnp.bfloat16))
    # Pad bias with a large negative so padded columns vanish from the softmax.
    lin_b = (jnp.full((Vp,), -1e30, jnp.float32).at[:V1]
             .set(torch_params["lin_b"]).reshape(1, Vp))

    return dict(layers=layers, lin_w=lin_w, lin_b=lin_b,
                dims=dict(H=H, Hp=Hp, E=E, C=C, V1=V1, Vp=Vp))


# ----------------------------------------------------------------------------
# Forward pass
# ----------------------------------------------------------------------------

def model_forward(model, x, x_lens):
    """x: (B, C_in, T) float32; x_lens: (B,) int32 -> (out (B,T,V+1), out_lens)."""
    dims = model["dims"]
    Hp, C, V1, Vp = dims["Hp"], dims["C"], dims["V1"], dims["Vp"]
    B, Cin, T = x.shape
    assert Cin == C
    Bp = _rup(B, 8)
    Tc = min(64, _rup(T, 8))            # bigger chunks amortize grid overhead
    Tp = _rup(T, Tc)

    # Zero-pad batch & time, go time-major, build the 3-tap im2col windows.
    xp = jnp.pad(x, ((0, Bp - B), (0, 0), (0, Tp - T)))
    x_tm = jnp.transpose(xp, (2, 0, 1))                       # (Tp, Bp, C)
    x_tm = jnp.pad(x_tm, ((1, 1), (0, 0), (0, 0)))            # conv zero padding
    x_col = jnp.concatenate([x_tm[k:k + Tp] for k in range(3)], axis=-1)
    x_col = x_col.reshape(Tp * Bp, 3 * C).astype(jnp.bfloat16)

    lens2d = jnp.pad(x_lens.astype(jnp.int32), (0, Bp - B)).reshape(Bp, 1)

    h = x_col                                                 # layer-0 input
    for layer in model["layers"]:
        hf, hb = bilstm_layer(h, lens2d, layer["w_in"], layer["b_in"],
                              layer["w_hh"], Hp=Hp, Tc=Tc, Bp=Bp)
        h = jnp.concatenate([hf, hb], axis=-1)                # (Tp*Bp, 2Hp) bf16

    # Classifier (Linear + log_softmax) on time-major rows (row-wise op).
    logp = linear_logsoftmax(h, model["lin_w"], model["lin_b"])   # (Tp*Bp, Vp)
    logp = logp.reshape(Tp, Bp, Vp)[:T, :B, :V1]
    out = jnp.transpose(logp, (1, 0, 2))                          # (B, T, V1)
    # TODO(synk): pad_packed_sequence trims time to max(x_lens); we keep T
    # (identical whenever max(x_lens) == T, as in the test below).
    return out, x_lens


if __name__ == "__main__":
    out_vocab = 5
    embed_size = 16
    hidden_size = 16
    in_channel = 13
    B, T = 2, 8

    key = jax.random.PRNGKey(0)
    k_param, k_x = jax.random.split(key)
    torch_params = init_params(k_param, out_vocab, embed_size, hidden_size, in_channel)
    model = prepare_model(torch_params, out_vocab, embed_size, hidden_size, in_channel)

    x = jax.random.normal(k_x, (B, in_channel, T), dtype=jnp.float32)
    x_lens = jnp.array([8, 5], dtype=jnp.int32)
    # zero out padding beyond each sequence length (as pad_sequence would)
    pad_mask = (jnp.arange(T)[None, None, :] < x_lens[:, None, None]).astype(jnp.float32)
    x = x * pad_mask

    out, out_lens = model_forward(model, x, x_lens)
    out = jax.block_until_ready(out)

    assert out.shape == (B, T, out_vocab + 1)
    assert bool(jnp.all(jnp.isfinite(out)))
    # rows of log_softmax must sum (in prob space) to ~1
    assert bool(jnp.all(jnp.abs(jnp.sum(jnp.exp(out), axis=-1) - 1.0) < 1e-3))
    print("KERNEL_OK")
</pallas_src>

<mosaic_0001>
module attributes {stable_mosaic.version = 11 : i64} {
  func.func @_bilstm_kernel(%arg0: i32, %arg1: memref<8x1xi32, #tpu.memory_space<vmem>>, %arg2: memref<64x39xbf16, #tpu.memory_space<vmem>>, %arg3: memref<64x39xbf16, #tpu.memory_space<vmem>>, %arg4: memref<39x1024xbf16, #tpu.memory_space<vmem>>, %arg5: memref<1x1024xf32, #tpu.memory_space<vmem>>, %arg6: memref<2x128x512xbf16, #tpu.memory_space<vmem>>, %arg7: memref<64x128xbf16, #tpu.memory_space<vmem>>, %arg8: memref<64x128xbf16, #tpu.memory_space<vmem>>, %arg9: memref<64x512xf32, #tpu.memory_space<vmem>>, %arg10: memref<64x512xf32, #tpu.memory_space<vmem>>, %arg11: memref<64x128xf32, #tpu.memory_space<vmem>>, %arg12: memref<64x128xf32, #tpu.memory_space<vmem>>, %arg13: memref<8x128xf32, #tpu.memory_space<vmem>>, %arg14: memref<8x128xf32, #tpu.memory_space<vmem>>, %arg15: memref<8x128xf32, #tpu.memory_space<vmem>>, %arg16: memref<8x128xf32, #tpu.memory_space<vmem>>) attributes {dimension_semantics = [#tpu.dimension_semantics<arbitrary>], iteration_bounds = array<i64: 1>, scalar_prefetch = 0 : i64, scratch_operands = 8 : i64, tpu.core_type = #tpu.core_type<tc>, window_params = [{pipeline_mode = #tpu.pipeline_mode<synchronous>, transform_indices = @transform_0, window_bounds = array<i64: 8, 1>}, {transform_indices = @transform_1, window_bounds = array<i64: 64, 39>}, {transform_indices = @transform_2, window_bounds = array<i64: 64, 39>}, {pipeline_mode = #tpu.pipeline_mode<synchronous>, transform_indices = @transform_3, window_bounds = array<i64: 39, 1024>}, {pipeline_mode = #tpu.pipeline_mode<synchronous>, transform_indices = @transform_4, window_bounds = array<i64: 1, 1024>}, {pipeline_mode = #tpu.pipeline_mode<synchronous>, transform_indices = @transform_5, window_bounds = array<i64: 2, 128, 512>}, {transform_indices = @transform_6, window_bounds = array<i64: 64, 128>}, {transform_indices = @transform_7, window_bounds = array<i64: 64, 128>}]} {
    %c0_i32 = arith.constant 0 : i32
    %0 = arith.cmpi eq, %arg0, %c0_i32 : i32
    %1 = arith.extui %0 : i1 to i32
    %c0_i32_0 = arith.constant 0 : i32
    %2 = arith.cmpi ne, %1, %c0_i32_0 : i32
    scf.if %2 {
      %cst_283 = arith.constant 0.000000e+00 : f32
      %895 = vector.broadcast %cst_283 : f32 to vector<8x128xf32>
      %c0_284 = arith.constant 0 : index
      %c0_285 = arith.constant 0 : index
      %896 = vector.load %arg13[%c0_284, %c0_285] : memref<8x128xf32, #tpu.memory_space<vmem>>, vector<8x128xf32>
      tpu.vector_store %arg13[%c0_284, %c0_285], %895 {strides = array<i32>} : memref<8x128xf32, #tpu.memory_space<vmem>>, vector<8x128xf32>,
      %cst_286 = arith.constant 0.000000e+00 : f32
      %897 = vector.broadcast %cst_286 : f32 to vector<8x128xf32>
      %c0_287 = arith.constant 0 : index
      %c0_288 = arith.constant 0 : index
      %898 = vector.load %arg14[%c0_287, %c0_288] : memref<8x128xf32, #tpu.memory_space<vmem>>, vector<8x128xf32>
      tpu.vector_store %arg14[%c0_287, %c0_288], %897 {strides = array<i32>} : memref<8x128xf32, #tpu.memory_space<vmem>>, vector<8x128xf32>,
      %cst_289 = arith.constant 0.000000e+00 : f32
      %899 = vector.broadcast %cst_289 : f32 to vector<8x128xf32>
      %c0_290 = arith.constant 0 : index
      %c0_291 = arith.constant 0 : index
      %900 = vector.load %arg15[%c0_290, %c0_291] : memref<8x128xf32, #tpu.memory_space<vmem>>, vector<8x128xf32>
      tpu.vector_store %arg15[%c0_290, %c0_291], %899 {strides = array<i32>} : memref<8x128xf32, #tpu.memory_space<vmem>>, vector<8x128xf32>,
      %cst_292 = arith.constant 0.000000e+00 : f32
      %901 = vector.broadcast %cst_292 : f32 to vector<8x128xf32>
      %c0_293 = arith.constant 0 : index
      %c0_294 = arith.constant 0 : index
      %902 = vector.load %arg16[%c0_293, %c0_294] : memref<8x128xf32, #tpu.memory_space<vmem>>, vector<8x128xf32>
      tpu.vector_store %arg16[%c0_293, %c0_294], %901 {strides = array<i32>} : memref<8x128xf32, #tpu.memory_space<vmem>>, vector<8x128xf32>,
    } else {
    }
    %c0 = arith.constant 0 : index
    %c0_1 = arith.constant 0 : index
    %3 = vector.load %arg1[%c0, %c0_1] : memref<8x1xi32, #tpu.memory_space<vmem>>, vector<8x1xi32>
    %c0_2 = arith.constant 0 : index
    %c0_3 = arith.constant 0 : index
    %4 = vector.load %arg2[%c0_2, %c0_3] : memref<64x39xbf16, #tpu.memory_space<vmem>>, vector<64x39xbf16>
    %c0_4 = arith.constant 0 : index
    %c0_5 = arith.constant 0 : index
    %5 = vector.load %arg4[%c0_4, %c0_5] : memref<39x1024xbf16, #tpu.memory_space<vmem>>, vector<39x512xbf16>
    %cst = arith.constant dense<0.000000e+00> : vector<64x512xf32>
    %6 = tpu.matmul %4, %5, %cst {dimension_numbers = #tpu.dot_dimension_numbers<[1], [0], [0], [1], [0, 0, 1, 1], [], []>} : vector<64x39xbf16>, vector<39x512xbf16>, vector<64x512xf32> -> vector<64x512xf32>
    %c0_6 = arith.constant 0 : index
    %c0_7 = arith.constant 0 : index
    %7 = vector.load %arg5[%c0_6, %c0_7] : memref<1x1024xf32, #tpu.memory_space<vmem>>, vector<1x512xf32>
    %8 = vector.broadcast %7 : vector<1x512xf32> to vector<64x512xf32>
    %9 = arith.addf %6, %8 : vector<64x512xf32>
    %c0_8 = arith.constant 0 : index
    %c0_9 = arith.constant 0 : index
    %10 = vector.load %arg9[%c0_8, %c0_9] : memref<64x512xf32, #tpu.memory_space<vmem>>, vector<64x512xf32>
    tpu.vector_store %arg9[%c0_8, %c0_9], %9 {strides = array<i32>} : memref<64x512xf32, #tpu.memory_space<vmem>>, vector<64x512xf32>,
    %c0_10 = arith.constant 0 : index
    %c0_11 = arith.constant 0 : index
    %11 = vector.load %arg3[%c0_10, %c0_11] : memref<64x39xbf16, #tpu.memory_space<vmem>>, vector<64x39xbf16>
    %c0_12 = arith.constant 0 : index
    %c512 = arith.constant 512 : index
    %12 = vector.load %arg4[%c0_12, %c512] : memref<39x1024xbf16, #tpu.memory_space<vmem>>, vector<39x512xbf16>
    %cst_13 = arith.constant dense<0.000000e+00> : vector<64x512xf32>
    %13 = tpu.matmul %11, %12, %cst_13 {dimension_numbers = #tpu.dot_dimension_numbers<[1], [0], [0], [1], [0, 0, 1, 1], [], []>} : vector<64x39xbf16>, vector<39x512xbf16>, vector<64x512xf32> -> vector<64x512xf32>
    %c0_14 = arith.constant 0 : index
    %c512_15 = arith.constant 512 : index
    %14 = vector.load %arg5[%c0_14, %c512_15] : memref<1x1024xf32, #tpu.memory_space<vmem>>, vector<1x512xf32>
    %15 = vector.broadcast %14 : vector<1x512xf32> to vector<64x512xf32>
    %16 = arith.addf %13, %15 : vector<64x512xf32>
    %c0_16 = arith.constant 0 : index
    %c0_17 = arith.constant 0 : index
    %17 = vector.load %arg10[%c0_16, %c0_17] : memref<64x512xf32, #tpu.memory_space<vmem>>, vector<64x512xf32>
    tpu.vector_store %arg10[%c0_16, %c0_17], %16 {strides = array<i32>} : memref<64x512xf32, #tpu.memory_space<vmem>>, vector<64x512xf32>,
    %c0_18 = arith.constant 0 : index
    %c0_19 = arith.constant 0 : index
    %c0_20 = arith.constant 0 : index
    %18 = vector.load %arg6[%c0_18, %c0_19, %c0_20] : memref<2x128x512xbf16, #tpu.memory_space<vmem>>, vector<1x128x512xbf16>
    %19 = vector.shape_cast %18 : vector<1x128x512xbf16> to vector<128x512xbf16>
    %c1 = arith.constant 1 : index
    %c0_21 = arith.constant 0 : index
    %c0_22 = arith.constant 0 : index
    %20 = vector.load %arg6[%c1, %c0_21, %c0_22] : memref<2x128x512xbf16, #tpu.memory_space<vmem>>, vector<1x128x512xbf16>
    %21 = vector.shape_cast %20 : vector<1x128x512xbf16> to vector<128x512xbf16>
    %c8_i32 = arith.constant 8 : i32
    %22 = arith.muli %arg0, %c8_i32 : i32
    %c0_i32_23 = arith.constant 0 : i32
    %23 = arith.subi %c0_i32_23, %arg0 : i32
    %c8_i32_24 = arith.constant 8 : i32
    %24 = arith.muli %23, %c8_i32_24 : i32
    %c0_25 = arith.constant 0 : index
    %c0_26 = arith.constant 0 : index
    %25 = vector.load %arg13[%c0_25, %c0_26] : memref<8x128xf32, #tpu.memory_space<vmem>>, vector<8x128xf32>
    %c0_27 = arith.constant 0 : index
    %c0_28 = arith.constant 0 : index
    %26 = vector.load %arg14[%c0_27, %c0_28] : memref<8x128xf32, #tpu.memory_space<vmem>>, vector<8x128xf32>
    %c0_29 = arith.constant 0 : index
    %c0_30 = arith.constant 0 : index
    %27 = vector.load %arg15[%c0_29, %c0_30] : memref<8x128xf32, #tpu.memory_space<vmem>>, vector<8x128xf32>
    %c0_31 = arith.constant 0 : index
    %c0_32 = arith.constant 0 : index
    %28 = vector.load %arg16[%c0_31, %c0_32] : memref<8x128xf32, #tpu.memory_space<vmem>>, vector<8x128xf32>
    %c0_i32_33 = arith.constant 0 : i32
    %c8_i32_34 = arith.constant 8 : i32
    %29 = arith.muli %c0_i32_33, %c8_i32_34 : i32
    %30 = tpu.assume_multiple %29, 8 : i32
    %31 = arith.index_cast %30 : i32 to index
    %c0_35 = arith.constant 0 : index
    %32 = vector.load %arg9[%31, %c0_35] : memref<64x512xf32, #tpu.memory_space<vmem>>, vector<8x512xf32>
    %33 = arith.truncf %25 : vector<8x128xf32> to vector<8x128xbf16>
    %cst_36 = arith.constant dense<0.000000e+00> : vector<8x512xf32>
    %34 = tpu.matmul %33, %19, %cst_36 {dimension_numbers = #tpu.dot_dimension_numbers<[1], [0], [0], [1], [0, 0, 1, 1], [], []>} : vector<8x128xbf16>, vector<128x512xbf16>, vector<8x512xf32> -> vector<8x512xf32>
    %35 = arith.addf %32, %34 : vector<8x512xf32>
    %36 = arith.addi %22, %c0_i32_33 : i32
    %37 = vector.extract_strided_slice %35 {offsets = [0, 0], sizes = [8, 128], strides = [1, 1]} : vector<8x512xf32> to vector<8x128xf32>
    %cst_37 = arith.constant 5.000000e-01 : f32
    %38 = vector.broadcast %cst_37 : f32 to vector<8x128xf32>
    %39 = arith.mulf %38, %37 : vector<8x128xf32>
    %40 = math.tanh %39 : vector<8x128xf32>
    %cst_38 = arith.constant 5.000000e-01 : f32
    %41 = vector.broadcast %cst_38 : f32 to vector<8x128xf32>
    %42 = arith.mulf %41, %40 : vector<8x128xf32>
    %cst_39 = arith.constant 5.000000e-01 : f32
    %43 = vector.broadcast %cst_39 : f32 to vector<8x128xf32>
    %44 = arith.addf %42, %43 : vector<8x128xf32>
    %45 = vector.extract_strided_slice %35 {offsets = [0, 128], sizes = [8, 128], strides = [1, 1]} : vector<8x512xf32> to vector<8x128xf32>
    %cst_40 = arith.constant 5.000000e-01 : f32
    %46 = vector.broadcast %cst_40 : f32 to vector<8x128xf32>
    %47 = arith.mulf %46, %45 : vector<8x128xf32>
    %48 = math.tanh %47 : vector<8x128xf32>
    %cst_41 = arith.constant 5.000000e-01 : f32
    %49 = vector.broadcast %cst_41 : f32 to vector<8x128xf32>
    %50 = arith.mulf %49, %48 : vector<8x128xf32>
    %cst_42 = arith.constant 5.000000e-01 : f32
    %51 = vector.broadcast %cst_42 : f32 to vector<8x128xf32>
    %52 = arith.addf %50, %51 : vector<8x128xf32>
    %53 = vector.extract_strided_slice %35 {offsets = [0, 256], sizes = [8, 128], strides = [1, 1]} : vector<8x512xf32> to vector<8x128xf32>
    %54 = math.tanh %53 : vector<8x128xf32>
    %55 = vector.extract_strided_slice %35 {offsets = [0, 384], sizes = [8, 128], strides = [1, 1]} : vector<8x512xf32> to vector<8x128xf32>
    %cst_43 = arith.constant 5.000000e-01 : f32
    %56 = vector.broadcast %cst_43 : f32 to vector<8x128xf32>
    %57 = arith.mulf %56, %55 : vector<8x128xf32>
    %58 = math.tanh %57 : vector<8x128xf32>
    %cst_44 = arith.constant 5.000000e-01 : f32
    %59 = vector.broadcast %cst_44 : f32 to vector<8x128xf32>
    %60 = arith.mulf %59, %58 : vector<8x128xf32>
    %cst_45 = arith.constant 5.000000e-01 : f32
    %61 = vector.broadcast %cst_45 : f32 to vector<8x128xf32>
    %62 = arith.addf %60, %61 : vector<8x128xf32>
    %63 = arith.mulf %52, %26 : vector<8x128xf32>
    %64 = arith.mulf %44, %54 : vector<8x128xf32>
    %65 = arith.addf %63, %64 : vector<8x128xf32>
    %66 = math.tanh %65 : vector<8x128xf32>
    %67 = arith.mulf %62, %66 : vector<8x128xf32>
    %68 = vector.broadcast %36 : i32 to vector<8x1xi32>
    %69 = arith.cmpi sgt, %3, %68 : vector<8x1xi32>
    %70 = vector.shape_cast %69 : vector<8x1xi1> to vector<8x1xi1>
    %71 = vector.broadcast %70 : vector<8x1xi1> to vector<8x128xi1>
    %72 = arith.select %71, %65, %26 : vector<8x128xi1>, vector<8x128xf32>
    %73 = vector.shape_cast %69 : vector<8x1xi1> to vector<8x1xi1>
    %74 = vector.broadcast %73 : vector<8x1xi1> to vector<8x128xi1>
    %75 = arith.select %74, %67, %25 : vector<8x128xi1>, vector<8x128xf32>
    %cst_46 = arith.constant 0.000000e+00 : f32
    %76 = vector.shape_cast %69 : vector<8x1xi1> to vector<8x1xi1>
    %77 = vector.broadcast %76 : vector<8x1xi1> to vector<8x128xi1>
    %78 = vector.broadcast %cst_46 : f32 to vector<8x128xf32>
    %79 = arith.select %77, %67, %78 : vector<8x128xi1>, vector<8x128xf32>
    %80 = arith.index_cast %30 : i32 to index
    %c0_47 = arith.constant 0 : index
    %81 = vector.load %arg11[%80, %c0_47] : memref<64x128xf32, #tpu.memory_space<vmem>>, vector<8x128xf32>
    tpu.vector_store %arg11[%80, %c0_47], %79 {strides = array<i32>} : memref<64x128xf32, #tpu.memory_space<vmem>>, vector<8x128xf32>,
    %c7_i32 = arith.constant 7 : i32
    %82 = arith.subi %c7_i32, %c0_i32_33 : i32
    %c8_i32_48 = arith.constant 8 : i32
    %83 = arith.muli %82, %c8_i32_48 : i32
    %84 = tpu.assume_multiple %83, 8 : i32
    %85 = arith.index_cast %84 : i32 to index
    %c0_49 = arith.constant 0 : index
    %86 = vector.load %arg10[%85, %c0_49] : memref<64x512xf32, #tpu.memory_space<vmem>>, vector<8x512xf32>
    %87 = arith.truncf %27 : vector<8x128xf32> to vector<8x128xbf16>
    %cst_50 = arith.constant dense<0.000000e+00> : vector<8x512xf32>
    %88 = tpu.matmul %87, %21, %cst_50 {dimension_numbers = #tpu.dot_dimension_numbers<[1], [0], [0], [1], [0, 0, 1, 1], [], []>} : vector<8x128xbf16>, vector<128x512xbf16>, vector<8x512xf32> -> vector<8x512xf32>
    %89 = arith.addf %86, %88 : vector<8x512xf32>
    %90 = arith.addi %24, %82 : i32
    %91 = vector.extract_strided_slice %89 {offsets = [0, 0], sizes = [8, 128], strides = [1, 1]} : vector<8x512xf32> to vector<8x128xf32>
    %cst_51 = arith.constant 5.000000e-01 : f32
    %92 = vector.broadcast %cst_51 : f32 to vector<8x128xf32>
    %93 = arith.mulf %92, %91 : vector<8x128xf32>
    %94 = math.tanh %93 : vector<8x128xf32>
    %cst_52 = arith.constant 5.000000e-01 : f32
    %95 = vector.broadcast %cst_52 : f32 to vector<8x128xf32>
    %96 = arith.mulf %95, %94 : vector<8x128xf32>
    %cst_53 = arith.constant 5.000000e-01 : f32
    %97 = vector.broadcast %cst_53 : f32 to vector<8x128xf32>
    %98 = arith.addf %96, %97 : vector<8x128xf32>
    %99 = vector.extract_strided_slice %89 {offsets = [0, 128], sizes = [8, 128], strides = [1, 1]} : vector<8x512xf32> to vector<8x128xf32>
    %cst_54 = arith.constant 5.000000e-01 : f32
    %100 = vector.broadcast %cst_54 : f32 to vector<8x128xf32>
    %101 = arith.mulf %100, %99 : vector<8x128xf32>
    %102 = math.tanh %101 : vector<8x128xf32>
    %cst_55 = arith.constant 5.000000e-01 : f32
    %103 = vector.broadcast %cst_55 : f32 to vector<8x128xf32>
    %104 = arith.mulf %103, %102 : vector<8x128xf32>
    %cst_56 = arith.constant 5.000000e-01 : f32
    %105 = vector.broadcast %cst_56 : f32 to vector<8x128xf32>
    %106 = arith.addf %104, %105 : vector<8x128xf32>
    %107 = vector.extract_strided_slice %89 {offsets = [0, 256], sizes = [8, 128], strides = [1, 1]} : vector<8x512xf32> to vector<8x128xf32>
    %108 = math.tanh %107 : vector<8x128xf32>
    %109 = vector.extract_strided_slice %89 {offsets = [0, 384], sizes = [8, 128], strides = [1, 1]} : vector<8x512xf32> to vector<8x128xf32>
    %cst_57 = arith.constant 5.000000e-01 : f32
    %110 = vector.broadcast %cst_57 : f32 to vector<8x128xf32>
    %111 = arith.mulf %110, %109 : vector<8x128xf32>
    %112 = math.tanh %111 : vector<8x128xf32>
    %cst_58 = arith.constant 5.000000e-01 : f32
    %113 = vector.broadcast %cst_58 : f32 to vector<8x128xf32>
    %114 = arith.mulf %113, %112 : vector<8x128xf32>
    %cst_59 = arith.constant 5.000000e-01 : f32
    %115 = vector.broadcast %cst_59 : f32 to vector<8x128xf32>
    %116 = arith.addf %114, %115 : vector<8x128xf32>
    %117 = arith.mulf %106, %28 : vector<8x128xf32>
    %118 = arith.mulf %98, %108 : vector<8x128xf32>
    %119 = arith.addf %117, %118 : vector<8x128xf32>
    %120 = math.tanh %119 : vector<8x128xf32>
    %121 = arith.mulf %116, %120 : vector<8x128xf32>
    %122 = vector.broadcast %90 : i32 to vector<8x1xi32>
    %123 = arith.cmpi sgt, %3, %122 : vector<8x1xi32>
    %124 = vector.shape_cast %123 : vector<8x1xi1> to vector<8x1xi1>
    %125 = vector.broadcast %124 : vector<8x1xi1> to vector<8x128xi1>
    %126 = arith.select %125, %119, %28 : vector<8x128xi1>, vector<8x128xf32>
    %127 = vector.shape_cast %123 : vector<8x1xi1> to vector<8x1xi1>
    %128 = vector.broadcast %127 : vector<8x1xi1> to vector<8x128xi1>
    %129 = arith.select %128, %121, %27 : vector<8x128xi1>, vector<8x128xf32>
    %cst_60 = arith.constant 0.000000e+00 : f32
    %130 = vector.shape_cast %123 : vector<8x1xi1> to vector<8x1xi1>
    %131 = vector.broadcast %130 : vector<8x1xi1> to vector<8x128xi1>
    %132 = vector.broadcast %cst_60 : f32 to vector<8x128xf32>
    %133 = arith.select %131, %121, %132 : vector<8x128xi1>, vector<8x128xf32>
    %134 = arith.index_cast %84 : i32 to index
    %c0_61 = arith.constant 0 : index
    %135 = vector.load %arg12[%134, %c0_61] : memref<64x128xf32, #tpu.memory_space<vmem>>, vector<8x128xf32>
    tpu.vector_store %arg12[%134, %c0_61], %133 {strides = array<i32>} : memref<64x128xf32, #tpu.memory_space<vmem>>, vector<8x128xf32>,
    %c1_i32 = arith.constant 1 : i32
    %c8_i32_62 = arith.constant 8 : i32
    %136 = arith.muli %c1_i32, %c8_i32_62 : i32
    %137 = tpu.assume_multiple %136, 8 : i32
    %138 = arith.index_cast %137 : i32 to index
    %c0_63 = arith.constant 0 : index
    %139 = vector.load %arg9[%138, %c0_63] : memref<64x512xf32, #tpu.memory_space<vmem>>, vector<8x512xf32>
    %140 = arith.truncf %75 : vector<8x128xf32> to vector<8x128xbf16>
    %cst_64 = arith.constant dense<0.000000e+00> : vector<8x512xf32>
    %141 = tpu.matmul %140, %19, %cst_64 {dimension_numbers = #tpu.dot_dimension_numbers<[1], [0], [0], [1], [0, 0, 1, 1], [], []>} : vector<8x128xbf16>, vector<128x512xbf16>, vector<8x512xf32> -> vector<8x512xf32>
    %142 = arith.addf %139, %141 : vector<8x512xf32>
    %143 = arith.addi %22, %c1_i32 : i32
    %144 = vector.extract_strided_slice %142 {offsets = [0, 0], sizes = [8, 128], strides = [1, 1]} : vector<8x512xf32> to vector<8x128xf32>
    %cst_65 = arith.constant 5.000000e-01 : f32
    %145 = vector.broadcast %cst_65 : f32 to vector<8x128xf32>
    %146 = arith.mulf %145, %144 : vector<8x128xf32>
    %147 = math.tanh %146 : vector<8x128xf32>
    %cst_66 = arith.constant 5.000000e-01 : f32
    %148 = vector.broadcast %cst_66 : f32 to vector<8x128xf32>
    %149 = arith.mulf %148, %147 : vector<8x128xf32>
    %cst_67 = arith.constant 5.000000e-01 : f32
    %150 = vector.broadcast %cst_67 : f32 to vector<8x128xf32>
    %151 = arith.addf %149, %150 : vector<8x128xf32>
    %152 = vector.extract_strided_slice %142 {offsets = [0, 128], sizes = [8, 128], strides = [1, 1]} : vector<8x512xf32> to vector<8x128xf32>
    %cst_68 = arith.constant 5.000000e-01 : f32
    %153 = vector.broadcast %cst_68 : f32 to vector<8x128xf32>
    %154 = arith.mulf %153, %152 : vector<8x128xf32>
    %155 = math.tanh %154 : vector<8x128xf32>
    %cst_69 = arith.constant 5.000000e-01 : f32
    %156 = vector.broadcast %cst_69 : f32 to vector<8x128xf32>
    %157 = arith.mulf %156, %155 : vector<8x128xf32>
    %cst_70 = arith.constant 5.000000e-01 : f32
    %158 = vector.broadcast %cst_70 : f32 to vector<8x128xf32>
    %159 = arith.addf %157, %158 : vector<8x128xf32>
    %160 = vector.extract_strided_slice %142 {offsets = [0, 256], sizes = [8, 128], strides = [1, 1]} : vector<8x512xf32> to vector<8x128xf32>
    %161 = math.tanh %160 : vector<8x128xf32>
    %162 = vector.extract_strided_slice %142 {offsets = [0, 384], sizes = [8, 128], strides = [1, 1]} : vector<8x512xf32> to vector<8x128xf32>
    %cst_71 = arith.constant 5.000000e-01 : f32
    %163 = vector.broadcast %cst_71 : f32 to vector<8x128xf32>
    %164 = arith.mulf %163, %162 : vector<8x128xf32>
    %165 = math.tanh %164 : vector<8x128xf32>
    %cst_72 = arith.constant 5.000000e-01 : f32
    %166 = vector.broadcast %cst_72 : f32 to vector<8x128xf32>
    %167 = arith.mulf %166, %165 : vector<8x128xf32>
    %cst_73 = arith.constant 5.000000e-01 : f32
    %168 = vector.broadcast %cst_73 : f32 to vector<8x128xf32>
    %169 = arith.addf %167, %168 : vector<8x128xf32>
    %170 = arith.mulf %159, %72 : vector<8x128xf32>
    %171 = arith.mulf %151, %161 : vector<8x128xf32>
    %172 = arith.addf %170, %171 : vector<8x128xf32>
    %173 = math.tanh %172 : vector<8x128xf32>
    %174 = arith.mulf %169, %173 : vector<8x128xf32>
    %175 = vector.broadcast %143 : i32 to vector<8x1xi32>
    %176 = arith.cmpi sgt, %3, %175 : vector<8x1xi32>
    %177 = vector.shape_cast %176 : vector<8x1xi1> to vector<8x1xi1>
    %178 = vector.broadcast %177 : vector<8x1xi1> to vector<8x128xi1>
    %179 = arith.select %178, %172, %72 : vector<8x128xi1>, vector<8x128xf32>
    %180 = vector.shape_cast %176 : vector<8x1xi1> to vector<8x1xi1>
    %181 = vector.broadcast %180 : vector<8x1xi1> to vector<8x128xi1>
    %182 = arith.select %181, %174, %75 : vector<8x128xi1>, vector<8x128xf32>
    %cst_74 = arith.constant 0.000000e+00 : f32
    %183 = vector.shape_cast %176 : vector<8x1xi1> to vector<8x1xi1>
    %184 = vector.broadcast %183 : vector<8x1xi1> to vector<8x128xi1>
    %185 = vector.broadcast %cst_74 : f32 to vector<8x128xf32>
    %186 = arith.select %184, %174, %185 : vector<8x128xi1>, vector<8x128xf32>
    %187 = arith.index_cast %137 : i32 to index
    %c0_75 = arith.constant 0 : index
    %188 = vector.load %arg11[%187, %c0_75] : memref<64x128xf32, #tpu.memory_space<vmem>>, vector<8x128xf32>
    tpu.vector_store %arg11[%187, %c0_75], %186 {strides = array<i32>} : memref<64x128xf32, #tpu.memory_space<vmem>>, vector<8x128xf32>,
    %c7_i32_76 = arith.constant 7 : i32
    %189 = arith.subi %c7_i32_76, %c1_i32 : i32
    %c8_i32_77 = arith.constant 8 : i32
    %190 = arith.muli %189, %c8_i32_77 : i32
    %191 = tpu.assume_multiple %190, 8 : i32
    %192 = arith.index_cast %191 : i32 to index
    %c0_78 = arith.constant 0 : index
    %193 = vector.load %arg10[%192, %c0_78] : memref<64x512xf32, #tpu.memory_space<vmem>>, vector<8x512xf32>
    %194 = arith.truncf %129 : vector<8x128xf32> to vector<8x128xbf16>
    %cst_79 = arith.constant dense<0.000000e+00> : vector<8x512xf32>
    %195 = tpu.matmul %194, %21, %cst_79 {dimension_numbers = #tpu.dot_dimension_numbers<[1], [0], [0], [1], [0, 0, 1, 1], [], []>} : vector<8x128xbf16>, vector<128x512xbf16>, vector<8x512xf32> -> vector<8x512xf32>
    %196 = arith.addf %193, %195 : vector<8x512xf32>
    %197 = arith.addi %24, %189 : i32
    %198 = vector.extract_strided_slice %196 {offsets = [0, 0], sizes = [8, 128], strides = [1, 1]} : vector<8x512xf32> to vector<8x128xf32>
    %cst_80 = arith.constant 5.000000e-01 : f32
    %199 = vector.broadcast %cst_80 : f32 to vector<8x128xf32>
    %200 = arith.mulf %199, %198 : vector<8x128xf32>
    %201 = math.tanh %200 : vector<8x128xf32>
    %cst_81 = arith.constant 5.000000e-01 : f32
    %202 = vector.broadcast %cst_81 : f32 to vector<8x128xf32>
    %203 = arith.mulf %202, %201 : vector<8x128xf32>
    %cst_82 = arith.constant 5.000000e-01 : f32
    %204 = vector.broadcast %cst_82 : f32 to vector<8x128xf32>
    %205 = arith.addf %203, %204 : vector<8x128xf32>
    %206 = vector.extract_strided_slice %196 {offsets = [0, 128], sizes = [8, 128], strides = [1, 1]} : vector<8x512xf32> to vector<8x128xf32>
    %cst_83 = arith.constant 5.000000e-01 : f32
    %207 = vector.broadcast %cst_83 : f32 to vector<8x128xf32>
    %208 = arith.mulf %207, %206 : vector<8x128xf32>
    %209 = math.tanh %208 : vector<8x128xf32>
    %cst_84 = arith.constant 5.000000e-01 : f32
    %210 = vector.broadcast %cst_84 : f32 to vector<8x128xf32>
    %211 = arith.mulf %210, %209 : vector<8x128xf32>
    %cst_85 = arith.constant 5.000000e-01 : f32
    %212 = vector.broadcast %cst_85 : f32 to vector<8x128xf32>
    %213 = arith.addf %211, %212 : vector<8x128xf32>
    %214 = vector.extract_strided_slice %196 {offsets = [0, 256], sizes = [8, 128], strides = [1, 1]} : vector<8x512xf32> to vector<8x128xf32>
    %215 = math.tanh %214 : vector<8x128xf32>
    %216 = vector.extract_strided_slice %196 {offsets = [0, 384], sizes = [8, 128], strides = [1, 1]} : vector<8x512xf32> to vector<8x128xf32>
    %cst_86 = arith.constant 5.000000e-01 : f32
    %217 = vector.broadcast %cst_86 : f32 to vector<8x128xf32>
    %218 = arith.mulf %217, %216 : vector<8x128xf32>
    %219 = math.tanh %218 : vector<8x128xf32>
    %cst_87 = arith.constant 5.000000e-01 : f32
    %220 = vector.broadcast %cst_87 : f32 to vector<8x128xf32>
    %221 = arith.mulf %220, %219 : vector<8x128xf32>
    %cst_88 = arith.constant 5.000000e-01 : f32
    %222 = vector.broadcast %cst_88 : f32 to vector<8x128xf32>
    %223 = arith.addf %221, %222 : vector<8x128xf32>
    %224 = arith.mulf %213, %126 : vector<8x128xf32>
    %225 = arith.mulf %205, %215 : vector<8x128xf32>
    %226 = arith.addf %224, %225 : vector<8x128xf32>
    %227 = math.tanh %226 : vector<8x128xf32>
    %228 = arith.mulf %223, %227 : vector<8x128xf32>
    %229 = vector.broadcast %197 : i32 to vector<8x1xi32>
    %230 = arith.cmpi sgt, %3, %229 : vector<8x1xi32>
    %231 = vector.shape_cast %230 : vector<8x1xi1> to vector<8x1xi1>
    %232 = vector.broadcast %231 : vector<8x1xi1> to vector<8x128xi1>
    %233 = arith.select %232, %226, %126 : vector<8x128xi1>, vector<8x128xf32>
    %234 = vector.shape_cast %230 : vector<8x1xi1> to vector<8x1xi1>
    %235 = vector.broadcast %234 : vector<8x1xi1> to vector<8x128xi1>
    %236 = arith.select %235, %228, %129 : vector<8x128xi1>, vector<8x128xf32>
    %cst_89 = arith.constant 0.000000e+00 : f32
    %237 = vector.shape_cast %230 : vector<8x1xi1> to vector<8x1xi1>
    %238 = vector.broadcast %237 : vector<8x1xi1> to vector<8x128xi1>
    %239 = vector.broadcast %cst_89 : f32 to vector<8x128xf32>
    %240 = arith.select %238, %228, %239 : vector<8x128xi1>, vector<8x128xf32>
    %241 = arith.index_cast %191 : i32 to index
    %c0_90 = arith.constant 0 : index
    %242 = vector.load %arg12[%241, %c0_90] : memref<64x128xf32, #tpu.memory_space<vmem>>, vector<8x128xf32>
    tpu.vector_store %arg12[%241, %c0_90], %240 {strides = array<i32>} : memref<64x128xf32, #tpu.memory_space<vmem>>, vector<8x128xf32>,
    %c2_i32 = arith.constant 2 : i32
    %c8_i32_91 = arith.constant 8 : i32
    %243 = arith.muli %c2_i32, %c8_i32_91 : i32
    %244 = tpu.assume_multiple %243, 8 : i32
    %245 = arith.index_cast %244 : i32 to index
    %c0_92 = arith.constant 0 : index
    %246 = vector.load %arg9[%245, %c0_92] : memref<64x512xf32, #tpu.memory_space<vmem>>, vector<8x512xf32>
    %247 = arith.truncf %182 : vector<8x128xf32> to vector<8x128xbf16>
    %cst_93 = arith.constant dense<0.000000e+00> : vector<8x512xf32>
    %248 = tpu.matmul %247, %19, %cst_93 {dimension_numbers = #tpu.dot_dimension_numbers<[1], [0], [0], [1], [0, 0, 1, 1], [], []>} : vector<8x128xbf16>, vector<128x512xbf16>, vector<8x512xf32> -> vector<8x512xf32>
    %249 = arith.addf %246, %248 : vector<8x512xf32>
    %250 = arith.addi %22, %c2_i32 : i32
    %251 = vector.extract_strided_slice %249 {offsets = [0, 0], sizes = [8, 128], strides = [1, 1]} : vector<8x512xf32> to vector<8x128xf32>
    %cst_94 = arith.constant 5.000000e-01 : f32
    %252 = vector.broadcast %cst_94 : f32 to vector<8x128xf32>
    %253 = arith.mulf %252, %251 : vector<8x128xf32>
    %254 = math.tanh %253 : vector<8x128xf32>
    %cst_95 = arith.constant 5.000000e-01 : f32
    %255 = vector.broadcast %cst_95 : f32 to vector<8x128xf32>
    %256 = arith.mulf %255, %254 : vector<8x128xf32>
    %cst_96 = arith.constant 5.000000e-01 : f32
    %257 = vector.broadcast %cst_96 : f32 to vector<8x128xf32>
    %258 = arith.addf %256, %257 : vector<8x128xf32>
    %259 = vector.extract_strided_slice %249 {offsets = [0, 128], sizes = [8, 128], strides = [1, 1]} : vector<8x512xf32> to vector<8x128xf32>
    %cst_97 = arith.constant 5.000000e-01 : f32
    %260 = vector.broadcast %cst_97 : f32 to vector<8x128xf32>
    %261 = arith.mulf %260, %259 : vector<8x128xf32>
    %262 = math.tanh %261 : vector<8x128xf32>
    %cst_98 = arith.constant 5.000000e-01 : f32
    %263 = vector.broadcast %cst_98 : f32 to vector<8x128xf32>
    %264 = arith.mulf %263, %262 : vector<8x128xf32>
    %cst_99 = arith.constant 5.000000e-01 : f32
    %265 = vector.broadcast %cst_99 : f32 to vector<8x128xf32>
    %266 = arith.addf %264, %265 : vector<8x128xf32>
    %267 = vector.extract_strided_slice %249 {offsets = [0, 256], sizes = [8, 128], strides = [1, 1]} : vector<8x512xf32> to vector<8x128xf32>
    %268 = math.tanh %267 : vector<8x128xf32>
    %269 = vector.extract_strided_slice %249 {offsets = [0, 384], sizes = [8, 128], strides = [1, 1]} : vector<8x512xf32> to vector<8x128xf32>
    %cst_100 = arith.constant 5.000000e-01 : f32
    %270 = vector.broadcast %cst_100 : f32 to vector<8x128xf32>
    %271 = arith.mulf %270, %269 : vector<8x128xf32>
    %272 = math.tanh %271 : vector<8x128xf32>
    %cst_101 = arith.constant 5.000000e-01 : f32
    %273 = vector.broadcast %cst_101 : f32 to vector<8x128xf32>
    %274 = arith.mulf %273, %272 : vector<8x128xf32>
    %cst_102 = arith.constant 5.000000e-01 : f32
    %275 = vector.broadcast %cst_102 : f32 to vector<8x128xf32>
    %276 = arith.addf %274, %275 : vector<8x128xf32>
    %277 = arith.mulf %266, %179 : vector<8x128xf32>
    %278 = arith.mulf %258, %268 : vector<8x128xf32>
    %279 = arith.addf %277, %278 : vector<8x128xf32>
    %280 = math.tanh %279 : vector<8x128xf32>
    %281 = arith.mulf %276, %280 : vector<8x128xf32>
    %282 = vector.broadcast %250 : i32 to vector<8x1xi32>
    %283 = arith.cmpi sgt, %3, %282 : vector<8x1xi32>
    %284 = vector.shape_cast %283 : vector<8x1xi1> to vector<8x1xi1>
    %285 = vector.broadcast %284 : vector<8x1xi1> to vector<8x128xi1>
    %286 = arith.select %285, %279, %179 : vector<8x128xi1>, vector<8x128xf32>
    %287 = vector.shape_cast %283 : vector<8x1xi1> to vector<8x1xi1>
    %288 = vector.broadcast %287 : vector<8x1xi1> to vector<8x128xi1>
    %289 = arith.select %288, %281, %182 : vector<8x128xi1>, vector<8x128xf32>
    %cst_103 = arith.constant 0.000000e+00 : f32
    %290 = vector.shape_cast %283 : vector<8x1xi1> to vector<8x1xi1>
    %291 = vector.broadcast %290 : vector<8x1xi1> to vector<8x128xi1>
    %292 = vector.broadcast %cst_103 : f32 to vector<8x128xf32>
    %293 = arith.select %291, %281, %292 : vector<8x128xi1>, vector<8x128xf32>
    %294 = arith.index_cast %244 : i32 to index
    %c0_104 = arith.constant 0 : index
    %295 = vector.load %arg11[%294, %c0_104] : memref<64x128xf32, #tpu.memory_space<vmem>>, vector<8x128xf32>
    tpu.vector_store %arg11[%294, %c0_104], %293 {strides = array<i32>} : memref<64x128xf32, #tpu.memory_space<vmem>>, vector<8x128xf32>,
    %c7_i32_105 = arith.constant 7 : i32
    %296 = arith.subi %c7_i32_105, %c2_i32 : i32
    %c8_i32_106 = arith.constant 8 : i32
    %297 = arith.muli %296, %c8_i32_106 : i32
    %298 = tpu.assume_multiple %297, 8 : i32
    %299 = arith.index_cast %298 : i32 to index
    %c0_107 = arith.constant 0 : index
    %300 = vector.load %arg10[%299, %c0_107] : memref<64x512xf32, #tpu.memory_space<vmem>>, vector<8x512xf32>
    %301 = arith.truncf %236 : vector<8x128xf32> to vector<8x128xbf16>
    %cst_108 = arith.constant dense<0.000000e+00> : vector<8x512xf32>
    %302 = tpu.matmul %301, %21, %cst_108 {dimension_numbers = #tpu.dot_dimension_numbers<[1], [0], [0], [1], [0, 0, 1, 1], [], []>} : vector<8x128xbf16>, vector<128x512xbf16>, vector<8x512xf32> -> vector<8x512xf32>
    %303 = arith.addf %300, %302 : vector<8x512xf32>
    %304 = arith.addi %24, %296 : i32
    %305 = vector.extract_strided_slice %303 {offsets = [0, 0], sizes = [8, 128], strides = [1, 1]} : vector<8x512xf32> to vector<8x128xf32>
    %cst_109 = arith.constant 5.000000e-01 : f32
    %306 = vector.broadcast %cst_109 : f32 to vector<8x128xf32>
    %307 = arith.mulf %306, %305 : vector<8x128xf32>
    %308 = math.tanh %307 : vector<8x128xf32>
    %cst_110 = arith.constant 5.000000e-01 : f32
    %309 = vector.broadcast %cst_110 : f32 to vector<8x128xf32>
    %310 = arith.mulf %309, %308 : vector<8x128xf32>
    %cst_111 = arith.constant 5.000000e-01 : f32
    %311 = vector.broadcast %cst_111 : f32 to vector<8x128xf32>
    %312 = arith.addf %310, %311 : vector<8x128xf32>
    %313 = vector.extract_strided_slice %303 {offsets = [0, 128], sizes = [8, 128], strides = [1, 1]} : vector<8x512xf32> to vector<8x128xf32>
    %cst_112 = arith.constant 5.000000e-01 : f32
    %314 = vector.broadcast %cst_112 : f32 to vector<8x128xf32>
    %315 = arith.mulf %314, %313 : vector<8x128xf32>
    %316 = math.tanh %315 : vector<8x128xf32>
    %cst_113 = arith.constant 5.000000e-01 : f32
    %317 = vector.broadcast %cst_113 : f32 to vector<8x128xf32>
    %318 = arith.mulf %317, %316 : vector<8x128xf32>
    %cst_114 = arith.constant 5.000000e-01 : f32
    %319 = vector.broadcast %cst_114 : f32 to vector<8x128xf32>
    %320 = arith.addf %318, %319 : vector<8x128xf32>
    %321 = vector.extract_strided_slice %303 {offsets = [0, 256], sizes = [8, 128], strides = [1, 1]} : vector<8x512xf32> to vector<8x128xf32>
    %322 = math.tanh %321 : vector<8x128xf32>
    %323 = vector.extract_strided_slice %303 {offsets = [0, 384], sizes = [8, 128], strides = [1, 1]} : vector<8x512xf32> to vector<8x128xf32>
    %cst_115 = arith.constant 5.000000e-01 : f32
    %324 = vector.broadcast %cst_115 : f32 to vector<8x128xf32>
    %325 = arith.mulf %324, %323 : vector<8x128xf32>
    %326 = math.tanh %325 : vector<8x128xf32>
    %cst_116 = arith.constant 5.000000e-01 : f32
    %327 = vector.broadcast %cst_116 : f32 to vector<8x128xf32>
    %328 = arith.mulf %327, %326 : vector<8x128xf32>
    %cst_117 = arith.constant 5.000000e-01 : f32
    %329 = vector.broadcast %cst_117 : f32 to vector<8x128xf32>
    %330 = arith.addf %328, %329 : vector<8x128xf32>
    %331 = arith.mulf %320, %233 : vector<8x128xf32>
    %332 = arith.mulf %312, %322 : vector<8x128xf32>
    %333 = arith.addf %331, %332 : vector<8x128xf32>
    %334 = math.tanh %333 : vector<8x128xf32>
    %335 = arith.mulf %330, %334 : vector<8x128xf32>
    %336 = vector.broadcast %304 : i32 to vector<8x1xi32>
    %337 = arith.cmpi sgt, %3, %336 : vector<8x1xi32>
    %338 = vector.shape_cast %337 : vector<8x1xi1> to vector<8x1xi1>
    %339 = vector.broadcast %338 : vector<8x1xi1> to vector<8x128xi1>
    %340 = arith.select %339, %333, %233 : vector<8x128xi1>, vector<8x128xf32>
    %341 = vector.shape_cast %337 : vector<8x1xi1> to vector<8x1xi1>
    %342 = vector.broadcast %341 : vector<8x1xi1> to vector<8x128xi1>
    %343 = arith.select %342, %335, %236 : vector<8x128xi1>, vector<8x128xf32>
    %cst_118 = arith.constant 0.000000e+00 : f32
    %344 = vector.shape_cast %337 : vector<8x1xi1> to vector<8x1xi1>
    %345 = vector.broadcast %344 : vector<8x1xi1> to vector<8x128xi1>
    %346 = vector.broadcast %cst_118 : f32 to vector<8x128xf32>
    %347 = arith.select %345, %335, %346 : vector<8x128xi1>, vector<8x128xf32>
    %348 = arith.index_cast %298 : i32 to index
    %c0_119 = arith.constant 0 : index
    %349 = vector.load %arg12[%348, %c0_119] : memref<64x128xf32, #tpu.memory_space<vmem>>, vector<8x128xf32>
    tpu.vector_store %arg12[%348, %c0_119], %347 {strides = array<i32>} : memref<64x128xf32, #tpu.memory_space<vmem>>, vector<8x128xf32>,
    %c3_i32 = arith.constant 3 : i32
    %c8_i32_120 = arith.constant 8 : i32
    %350 = arith.muli %c3_i32, %c8_i32_120 : i32
    %351 = tpu.assume_multiple %350, 8 : i32
    %352 = arith.index_cast %351 : i32 to index
    %c0_121 = arith.constant 0 : index
    %353 = vector.load %arg9[%352, %c0_121] : memref<64x512xf32, #tpu.memory_space<vmem>>, vector<8x512xf32>
    %354 = arith.truncf %289 : vector<8x128xf32> to vector<8x128xbf16>
    %cst_122 = arith.constant dense<0.000000e+00> : vector<8x512xf32>
    %355 = tpu.matmul %354, %19, %cst_122 {dimension_numbers = #tpu.dot_dimension_numbers<[1], [0], [0], [1], [0, 0, 1, 1], [], []>} : vector<8x128xbf16>, vector<128x512xbf16>, vector<8x512xf32> -> vector<8x512xf32>
    %356 = arith.addf %353, %355 : vector<8x512xf32>
    %357 = arith.addi %22, %c3_i32 : i32
    %358 = vector.extract_strided_slice %356 {offsets = [0, 0], sizes = [8, 128], strides = [1, 1]} : vector<8x512xf32> to vector<8x128xf32>
    %cst_123 = arith.constant 5.000000e-01 : f32
    %359 = vector.broadcast %cst_123 : f32 to vector<8x128xf32>
    %360 = arith.mulf %359, %358 : vector<8x128xf32>
    %361 = math.tanh %360 : vector<8x128xf32>
    %cst_124 = arith.constant 5.000000e-01 : f32
    %362 = vector.broadcast %cst_124 : f32 to vector<8x128xf32>
    %363 = arith.mulf %362, %361 : vector<8x128xf32>
    %cst_125 = arith.constant 5.000000e-01 : f32
    %364 = vector.broadcast %cst_125 : f32 to vector<8x128xf32>
    %365 = arith.addf %363, %364 : vector<8x128xf32>
    %366 = vector.extract_strided_slice %356 {offsets = [0, 128], sizes = [8, 128], strides = [1, 1]} : vector<8x512xf32> to vector<8x128xf32>
    %cst_126 = arith.constant 5.000000e-01 : f32
    %367 = vector.broadcast %cst_126 : f32 to vector<8x128xf32>
    %368 = arith.mulf %367, %366 : vector<8x128xf32>
    %369 = math.tanh %368 : vector<8x128xf32>
    %cst_127 = arith.constant 5.000000e-01 : f32
    %370 = vector.broadcast %cst_127 : f32 to vector<8x128xf32>
    %371 = arith.mulf %370, %369 : vector<8x128xf32>
    %cst_128 = arith.constant 5.000000e-01 : f32
    %372 = vector.broadcast %cst_128 : f32 to vector<8x128xf32>
    %373 = arith.addf %371, %372 : vector<8x128xf32>
    %374 = vector.extract_strided_slice %356 {offsets = [0, 256], sizes = [8, 128], strides = [1, 1]} : vector<8x512xf32> to vector<8x128xf32>
    %375 = math.tanh %374 : vector<8x128xf32>
    %376 = vector.extract_strided_slice %356 {offsets = [0, 384], sizes = [8, 128], strides = [1, 1]} : vector<8x512xf32> to vector<8x128xf32>
    %cst_129 = arith.constant 5.000000e-01 : f32
    %377 = vector.broadcast %cst_129 : f32 to vector<8x128xf32>
    %378 = arith.mulf %377, %376 : vector<8x128xf32>
    %379 = math.tanh %378 : vector<8x128xf32>
    %cst_130 = arith.constant 5.000000e-01 : f32
    %380 = vector.broadcast %cst_130 : f32 to vector<8x128xf32>
    %381 = arith.mulf %380, %379 : vector<8x128xf32>
    %cst_131 = arith.constant 5.000000e-01 : f32
    %382 = vector.broadcast %cst_131 : f32 to vector<8x128xf32>
    %383 = arith.addf %381, %382 : vector<8x128xf32>
    %384 = arith.mulf %373, %286 : vector<8x128xf32>
    %385 = arith.mulf %365, %375 : vector<8x128xf32>
    %386 = arith.addf %384, %385 : vector<8x128xf32>
    %387 = math.tanh %386 : vector<8x128xf32>
    %388 = arith.mulf %383, %387 : vector<8x128xf32>
    %389 = vector.broadcast %357 : i32 to vector<8x1xi32>
    %390 = arith.cmpi sgt, %3, %389 : vector<8x1xi32>
    %391 = vector.shape_cast %390 : vector<8x1xi1> to vector<8x1xi1>
    %392 = vector.broadcast %391 : vector<8x1xi1> to vector<8x128xi1>
    %393 = arith.select %392, %386, %286 : vector<8x128xi1>, vector<8x128xf32>
    %394 = vector.shape_cast %390 : vector<8x1xi1> to vector<8x1xi1>
    %395 = vector.broadcast %394 : vector<8x1xi1> to vector<8x128xi1>
    %396 = arith.select %395, %388, %289 : vector<8x128xi1>, vector<8x128xf32>
    %cst_132 = arith.constant 0.000000e+00 : f32
    %397 = vector.shape_cast %390 : vector<8x1xi1> to vector<8x1xi1>
    %398 = vector.broadcast %397 : vector<8x1xi1> to vector<8x128xi1>
    %399 = vector.broadcast %cst_132 : f32 to vector<8x128xf32>
    %400 = arith.select %398, %388, %399 : vector<8x128xi1>, vector<8x128xf32>
    %401 = arith.index_cast %351 : i32 to index
    %c0_133 = arith.constant 0 : index
    %402 = vector.load %arg11[%401, %c0_133] : memref<64x128xf32, #tpu.memory_space<vmem>>, vector<8x128xf32>
    tpu.vector_store %arg11[%401, %c0_133], %400 {strides = array<i32>} : memref<64x128xf32, #tpu.memory_space<vmem>>, vector<8x128xf32>,
    %c7_i32_134 = arith.constant 7 : i32
    %403 = arith.subi %c7_i32_134, %c3_i32 : i32
    %c8_i32_135 = arith.constant 8 : i32
    %404 = arith.muli %403, %c8_i32_135 : i32
    %405 = tpu.assume_multiple %404, 8 : i32
    %406 = arith.index_cast %405 : i32 to index
    %c0_136 = arith.constant 0 : index
    %407 = vector.load %arg10[%406, %c0_136] : memref<64x512xf32, #tpu.memory_space<vmem>>, vector<8x512xf32>
    %408 = arith.truncf %343 : vector<8x128xf32> to vector<8x128xbf16>
    %cst_137 = arith.constant dense<0.000000e+00> : vector<8x512xf32>
    %409 = tpu.matmul %408, %21, %cst_137 {dimension_numbers = #tpu.dot_dimension_numbers<[1], [0], [0], [1], [0, 0, 1, 1], [], []>} : vector<8x128xbf16>, vector<128x512xbf16>, vector<8x512xf32> -> vector<8x512xf32>
    %410 = arith.addf %407, %409 : vector<8x512xf32>
    %411 = arith.addi %24, %403 : i32
    %412 = vector.extract_strided_slice %410 {offsets = [0, 0], sizes = [8, 128], strides = [1, 1]} : vector<8x512xf32> to vector<8x128xf32>
    %cst_138 = arith.constant 5.000000e-01 : f32
    %413 = vector.broadcast %cst_138 : f32 to vector<8x128xf32>
    %414 = arith.mulf %413, %412 : vector<8x128xf32>
    %415 = math.tanh %414 : vector<8x128xf32>
    %cst_139 = arith.constant 5.000000e-01 : f32
    %416 = vector.broadcast %cst_139 : f32 to vector<8x128xf32>
    %417 = arith.mulf %416, %415 : vector<8x128xf32>
    %cst_140 = arith.constant 5.000000e-01 : f32
    %418 = vector.broadcast %cst_140 : f32 to vector<8x128xf32>
    %419 = arith.addf %417, %418 : vector<8x128xf32>
    %420 = vector.extract_strided_slice %410 {offsets = [0, 128], sizes = [8, 128], strides = [1, 1]} : vector<8x512xf32> to vector<8x128xf32>
    %cst_141 = arith.constant 5.000000e-01 : f32
    %421 = vector.broadcast %cst_141 : f32 to vector<8x128xf32>
    %422 = arith.mulf %421, %420 : vector<8x128xf32>
    %423 = math.tanh %422 : vector<8x128xf32>
    %cst_142 = arith.constant 5.000000e-01 : f32
    %424 = vector.broadcast %cst_142 : f32 to vector<8x128xf32>
    %425 = arith.mulf %424, %423 : vector<8x128xf32>
    %cst_143 = arith.constant 5.000000e-01 : f32
    %426 = vector.broadcast %cst_143 : f32 to vector<8x128xf32>
    %427 = arith.addf %425, %426 : vector<8x128xf32>
    %428 = vector.extract_strided_slice %410 {offsets = [0, 256], sizes = [8, 128], strides = [1, 1]} : vector<8x512xf32> to vector<8x128xf32>
    %429 = math.tanh %428 : vector<8x128xf32>
    %430 = vector.extract_strided_slice %410 {offsets = [0, 384], sizes = [8, 128], strides = [1, 1]} : vector<8x512xf32> to vector<8x128xf32>
    %cst_144 = arith.constant 5.000000e-01 : f32
    %431 = vector.broadcast %cst_144 : f32 to vector<8x128xf32>
    %432 = arith.mulf %431, %430 : vector<8x128xf32>
    %433 = math.tanh %432 : vector<8x128xf32>
    %cst_145 = arith.constant 5.000000e-01 : f32
    %434 = vector.broadcast %cst_145 : f32 to vector<8x128xf32>
    %435 = arith.mulf %434, %433 : vector<8x128xf32>
    %cst_146 = arith.constant 5.000000e-01 : f32
    %436 = vector.broadcast %cst_146 : f32 to vector<8x128xf32>
    %437 = arith.addf %435, %436 : vector<8x128xf32>
    %438 = arith.mulf %427, %340 : vector<8x128xf32>
    %439 = arith.mulf %419, %429 : vector<8x128xf32>
    %440 = arith.addf %438, %439 : vector<8x128xf32>
    %441 = math.tanh %440 : vector<8x128xf32>
    %442 = arith.mulf %437, %441 : vector<8x128xf32>
    %443 = vector.broadcast %411 : i32 to vector<8x1xi32>
    %444 = arith.cmpi sgt, %3, %443 : vector<8x1xi32>
    %445 = vector.shape_cast %444 : vector<8x1xi1> to vector<8x1xi1>
    %446 = vector.broadcast %445 : vector<8x1xi1> to vector<8x128xi1>
    %447 = arith.select %446, %440, %340 : vector<8x128xi1>, vector<8x128xf32>
    %448 = vector.shape_cast %444 : vector<8x1xi1> to vector<8x1xi1>
    %449 = vector.broadcast %448 : vector<8x1xi1> to vector<8x128xi1>
    %450 = arith.select %449, %442, %343 : vector<8x128xi1>, vector<8x128xf32>
    %cst_147 = arith.constant 0.000000e+00 : f32
    %451 = vector.shape_cast %444 : vector<8x1xi1> to vector<8x1xi1>
    %452 = vector.broadcast %451 : vector<8x1xi1> to vector<8x128xi1>
    %453 = vector.broadcast %cst_147 : f32 to vector<8x128xf32>
    %454 = arith.select %452, %442, %453 : vector<8x128xi1>, vector<8x128xf32>
    %455 = arith.index_cast %405 : i32 to index
    %c0_148 = arith.constant 0 : index
    %456 = vector.load %arg12[%455, %c0_148] : memref<64x128xf32, #tpu.memory_space<vmem>>, vector<8x128xf32>
    tpu.vector_store %arg12[%455, %c0_148], %454 {strides = array<i32>} : memref<64x128xf32, #tpu.memory_space<vmem>>, vector<8x128xf32>,
    %c4_i32 = arith.constant 4 : i32
    %c8_i32_149 = arith.constant 8 : i32
    %457 = arith.muli %c4_i32, %c8_i32_149 : i32
    %458 = tpu.assume_multiple %457, 8 : i32
    %459 = arith.index_cast %458 : i32 to index
    %c0_150 = arith.constant 0 : index
    %460 = vector.load %arg9[%459, %c0_150] : memref<64x512xf32, #tpu.memory_space<vmem>>, vector<8x512xf32>
    %461 = arith.truncf %396 : vector<8x128xf32> to vector<8x128xbf16>
    %cst_151 = arith.constant dense<0.000000e+00> : vector<8x512xf32>
    %462 = tpu.matmul %461, %19, %cst_151 {dimension_numbers = #tpu.dot_dimension_numbers<[1], [0], [0], [1], [0, 0, 1, 1], [], []>} : vector<8x128xbf16>, vector<128x512xbf16>, vector<8x512xf32> -> vector<8x512xf32>
    %463 = arith.addf %460, %462 : vector<8x512xf32>
    %464 = arith.addi %22, %c4_i32 : i32
    %465 = vector.extract_strided_slice %463 {offsets = [0, 0], sizes = [8, 128], strides = [1, 1]} : vector<8x512xf32> to vector<8x128xf32>
    %cst_152 = arith.constant 5.000000e-01 : f32
    %466 = vector.broadcast %cst_152 : f32 to vector<8x128xf32>
    %467 = arith.mulf %466, %465 : vector<8x128xf32>
    %468 = math.tanh %467 : vector<8x128xf32>
    %cst_153 = arith.constant 5.000000e-01 : f32
    %469 = vector.broadcast %cst_153 : f32 to vector<8x128xf32>
    %470 = arith.mulf %469, %468 : vector<8x128xf32>
    %cst_154 = arith.constant 5.000000e-01 : f32
    %471 = vector.broadcast %cst_154 : f32 to vector<8x128xf32>
    %472 = arith.addf %470, %471 : vector<8x128xf32>
    %473 = vector.extract_strided_slice %463 {offsets = [0, 128], sizes = [8, 128], strides = [1, 1]} : vector<8x512xf32> to vector<8x128xf32>
    %cst_155 = arith.constant 5.000000e-01 : f32
    %474 = vector.broadcast %cst_155 : f32 to vector<8x128xf32>
    %475 = arith.mulf %474, %473 : vector<8x128xf32>
    %476 = math.tanh %475 : vector<8x128xf32>
    %cst_156 = arith.constant 5.000000e-01 : f32
    %477 = vector.broadcast %cst_156 : f32 to vector<8x128xf32>
    %478 = arith.mulf %477, %476 : vector<8x128xf32>
    %cst_157 = arith.constant 5.000000e-01 : f32
    %479 = vector.broadcast %cst_157 : f32 to vector<8x128xf32>
    %480 = arith.addf %478, %479 : vector<8x128xf32>
    %481 = vector.extract_strided_slice %463 {offsets = [0, 256], sizes = [8, 128], strides = [1, 1]} : vector<8x512xf32> to vector<8x128xf32>
    %482 = math.tanh %481 : vector<8x128xf32>
    %483 = vector.extract_strided_slice %463 {offsets = [0, 384], sizes = [8, 128], strides = [1, 1]} : vector<8x512xf32> to vector<8x128xf32>
    %cst_158 = arith.constant 5.000000e-01 : f32
    %484 = vector.broadcast %cst_158 : f32 to vector<8x128xf32>
    %485 = arith.mulf %484, %483 : vector<8x128xf32>
    %486 = math.tanh %485 : vector<8x128xf32>
    %cst_159 = arith.constant 5.000000e-01 : f32
    %487 = vector.broadcast %cst_159 : f32 to vector<8x128xf32>
    %488 = arith.mulf %487, %486 : vector<8x128xf32>
    %cst_160 = arith.constant 5.000000e-01 : f32
    %489 = vector.broadcast %cst_160 : f32 to vector<8x128xf32>
    %490 = arith.addf %488, %489 : vector<8x128xf32>
    %491 = arith.mulf %480, %393 : vector<8x128xf32>
    %492 = arith.mulf %472, %482 : vector<8x128xf32>
    %493 = arith.addf %491, %492 : vector<8x128xf32>
    %494 = math.tanh %493 : vector<8x128xf32>
    %495 = arith.mulf %490, %494 : vector<8x128xf32>
    %496 = vector.broadcast %464 : i32 to vector<8x1xi32>
    %497 = arith.cmpi sgt, %3, %496 : vector<8x1xi32>
    %498 = vector.shape_cast %497 : vector<8x1xi1> to vector<8x1xi1>
    %499 = vector.broadcast %498 : vector<8x1xi1> to vector<8x128xi1>
    %500 = arith.select %499, %493, %393 : vector<8x128xi1>, vector<8x128xf32>
    %501 = vector.shape_cast %497 : vector<8x1xi1> to vector<8x1xi1>
    %502 = vector.broadcast %501 : vector<8x1xi1> to vector<8x128xi1>
    %503 = arith.select %502, %495, %396 : vector<8x128xi1>, vector<8x128xf32>
    %cst_161 = arith.constant 0.000000e+00 : f32
    %504 = vector.shape_cast %497 : vector<8x1xi1> to vector<8x1xi1>
    %505 = vector.broadcast %504 : vector<8x1xi1> to vector<8x128xi1>
    %506 = vector.broadcast %cst_161 : f32 to vector<8x128xf32>
    %507 = arith.select %505, %495, %506 : vector<8x128xi1>, vector<8x128xf32>
    %508 = arith.index_cast %458 : i32 to index
    %c0_162 = arith.constant 0 : index
    %509 = vector.load %arg11[%508, %c0_162] : memref<64x128xf32, #tpu.memory_space<vmem>>, vector<8x128xf32>
    tpu.vector_store %arg11[%508, %c0_162], %507 {strides = array<i32>} : memref<64x128xf32, #tpu.memory_space<vmem>>, vector<8x128xf32>,
    %c7_i32_163 = arith.constant 7 : i32
    %510 = arith.subi %c7_i32_163, %c4_i32 : i32
    %c8_i32_164 = arith.constant 8 : i32
    %511 = arith.muli %510, %c8_i32_164 : i32
    %512 = tpu.assume_multiple %511, 8 : i32
    %513 = arith.index_cast %512 : i32 to index
    %c0_165 = arith.constant 0 : index
    %514 = vector.load %arg10[%513, %c0_165] : memref<64x512xf32, #tpu.memory_space<vmem>>, vector<8x512xf32>
    %515 = arith.truncf %450 : vector<8x128xf32> to vector<8x128xbf16>
    %cst_166 = arith.constant dense<0.000000e+00> : vector<8x512xf32>
    %516 = tpu.matmul %515, %21, %cst_166 {dimension_numbers = #tpu.dot_dimension_numbers<[1], [0], [0], [1], [0, 0, 1, 1], [], []>} : vector<8x128xbf16>, vector<128x512xbf16>, vector<8x512xf32> -> vector<8x512xf32>
    %517 = arith.addf %514, %516 : vector<8x512xf32>
    %518 = arith.addi %24, %510 : i32
    %519 = vector.extract_strided_slice %517 {offsets = [0, 0], sizes = [8, 128], strides = [1, 1]} : vector<8x512xf32> to vector<8x128xf32>
    %cst_167 = arith.constant 5.000000e-01 : f32
    %520 = vector.broadcast %cst_167 : f32 to vector<8x128xf32>
    %521 = arith.mulf %520, %519 : vector<8x128xf32>
    %522 = math.tanh %521 : vector<8x128xf32>
    %cst_168 = arith.constant 5.000000e-01 : f32
    %523 = vector.broadcast %cst_168 : f32 to vector<8x128xf32>
    %524 = arith.mulf %523, %522 : vector<8x128xf32>
    %cst_169 = arith.constant 5.000000e-01 : f32
    %525 = vector.broadcast %cst_169 : f32 to vector<8x128xf32>
    %526 = arith.addf %524, %525 : vector<8x128xf32>
    %527 = vector.extract_strided_slice %517 {offsets = [0, 128], sizes = [8, 128], strides = [1, 1]} : vector<8x512xf32> to vector<8x128xf32>
    %cst_170 = arith.constant 5.000000e-01 : f32
    %528 = vector.broadcast %cst_170 : f32 to vector<8x128xf32>
    %529 = arith.mulf %528, %527 : vector<8x128xf32>
    %530 = math.tanh %529 : vector<8x128xf32>
    %cst_171 = arith.constant 5.000000e-01 : f32
    %531 = vector.broadcast %cst_171 : f32 to vector<8x128xf32>
    %532 = arith.mulf %531, %530 : vector<8x128xf32>
    %cst_172 = arith.constant 5.000000e-01 : f32
    %533 = vector.broadcast %cst_172 : f32 to vector<8x128xf32>
    %534 = arith.addf %532, %533 : vector<8x128xf32>
    %535 = vector.extract_strided_slice %517 {offsets = [0, 256], sizes = [8, 128], strides = [1, 1]} : vector<8x512xf32> to vector<8x128xf32>
    %536 = math.tanh %535 : vector<8x128xf32>
    %537 = vector.extract_strided_slice %517 {offsets = [0, 384], sizes = [8, 128], strides = [1, 1]} : vector<8x512xf32> to vector<8x128xf32>
    %cst_173 = arith.constant 5.000000e-01 : f32
    %538 = vector.broadcast %cst_173 : f32 to vector<8x128xf32>
    %539 = arith.mulf %538, %537 : vector<8x128xf32>
    %540 = math.tanh %539 : vector<8x128xf32>
    %cst_174 = arith.constant 5.000000e-01 : f32
    %541 = vector.broadcast %cst_174 : f32 to vector<8x128xf32>
    %542 = arith.mulf %541, %540 : vector<8x128xf32>
    %cst_175 = arith.constant 5.000000e-01 : f32
    %543 = vector.broadcast %cst_175 : f32 to vector<8x128xf32>
    %544 = arith.addf %542, %543 : vector<8x128xf32>
    %545 = arith.mulf %534, %447 : vector<8x128xf32>
    %546 = arith.mulf %526, %536 : vector<8x128xf32>
    %547 = arith.addf %545, %546 : vector<8x128xf32>
    %548 = math.tanh %547 : vector<8x128xf32>
    %549 = arith.mulf %544, %548 : vector<8x128xf32>
    %550 = vector.broadcast %518 : i32 to vector<8x1xi32>
    %551 = arith.cmpi sgt, %3, %550 : vector<8x1xi32>
    %552 = vector.shape_cast %551 : vector<8x1xi1> to vector<8x1xi1>
    %553 = vector.broadcast %552 : vector<8x1xi1> to vector<8x128xi1>
    %554 = arith.select %553, %547, %447 : vector<8x128xi1>, vector<8x128xf32>
    %555 = vector.shape_cast %551 : vector<8x1xi1> to vector<8x1xi1>
    %556 = vector.broadcast %555 : vector<8x1xi1> to vector<8x128xi1>
    %557 = arith.select %556, %549, %450 : vector<8x128xi1>, vector<8x128xf32>
    %cst_176 = arith.constant 0.000000e+00 : f32
    %558 = vector.shape_cast %551 : vector<8x1xi1> to vector<8x1xi1>
    %559 = vector.broadcast %558 : vector<8x1xi1> to vector<8x128xi1>
    %560 = vector.broadcast %cst_176 : f32 to vector<8x128xf32>
    %561 = arith.select %559, %549, %560 : vector<8x128xi1>, vector<8x128xf32>
    %562 = arith.index_cast %512 : i32 to index
    %c0_177 = arith.constant 0 : index
    %563 = vector.load %arg12[%562, %c0_177] : memref<64x128xf32, #tpu.memory_space<vmem>>, vector<8x128xf32>
    tpu.vector_store %arg12[%562, %c0_177], %561 {strides = array<i32>} : memref<64x128xf32, #tpu.memory_space<vmem>>, vector<8x128xf32>,
    %c5_i32 = arith.constant 5 : i32
    %c8_i32_178 = arith.constant 8 : i32
    %564 = arith.muli %c5_i32, %c8_i32_178 : i32
    %565 = tpu.assume_multiple %564, 8 : i32
    %566 = arith.index_cast %565 : i32 to index
    %c0_179 = arith.constant 0 : index
    %567 = vector.load %arg9[%566, %c0_179] : memref<64x512xf32, #tpu.memory_space<vmem>>, vector<8x512xf32>
    %568 = arith.truncf %503 : vector<8x128xf32> to vector<8x128xbf16>
    %cst_180 = arith.constant dense<0.000000e+00> : vector<8x512xf32>
    %569 = tpu.matmul %568, %19, %cst_180 {dimension_numbers = #tpu.dot_dimension_numbers<[1], [0], [0], [1], [0, 0, 1, 1], [], []>} : vector<8x128xbf16>, vector<128x512xbf16>, vector<8x512xf32> -> vector<8x512xf32>
    %570 = arith.addf %567, %569 : vector<8x512xf32>
    %571 = arith.addi %22, %c5_i32 : i32
    %572 = vector.extract_strided_slice %570 {offsets = [0, 0], sizes = [8, 128], strides = [1, 1]} : vector<8x512xf32> to vector<8x128xf32>
    %cst_181 = arith.constant 5.000000e-01 : f32
    %573 = vector.broadcast %cst_181 : f32 to vector<8x128xf32>
    %574 = arith.mulf %573, %572 : vector<8x128xf32>
    %575 = math.tanh %574 : vector<8x128xf32>
    %cst_182 = arith.constant 5.000000e-01 : f32
    %576 = vector.broadcast %cst_182 : f32 to vector<8x128xf32>
    %577 = arith.mulf %576, %575 : vector<8x128xf32>
    %cst_183 = arith.constant 5.000000e-01 : f32
    %578 = vector.broadcast %cst_183 : f32 to vector<8x128xf32>
    %579 = arith.addf %577, %578 : vector<8x128xf32>
    %580 = vector.extract_strided_slice %570 {offsets = [0, 128], sizes = [8, 128], strides = [1, 1]} : vector<8x512xf32> to vector<8x128xf32>
    %cst_184 = arith.constant 5.000000e-01 : f32
    %581 = vector.broadcast %cst_184 : f32 to vector<8x128xf32>
    %582 = arith.mulf %581, %580 : vector<8x128xf32>
    %583 = math.tanh %582 : vector<8x128xf32>
    %cst_185 = arith.constant 5.000000e-01 : f32
    %584 = vector.broadcast %cst_185 : f32 to vector<8x128xf32>
    %585 = arith.mulf %584, %583 : vector<8x128xf32>
    %cst_186 = arith.constant 5.000000e-01 : f32
    %586 = vector.broadcast %cst_186 : f32 to vector<8x128xf32>
    %587 = arith.addf %585, %586 : vector<8x128xf32>
    %588 = vector.extract_strided_slice %570 {offsets = [0, 256], sizes = [8, 128], strides = [1, 1]} : vector<8x512xf32> to vector<8x128xf32>
    %589 = math.tanh %588 : vector<8x128xf32>
    %590 = vector.extract_strided_slice %570 {offsets = [0, 384], sizes = [8, 128], strides = [1, 1]} : vector<8x512xf32> to vector<8x128xf32>
    %cst_187 = arith.constant 5.000000e-01 : f32
    %591 = vector.broadcast %cst_187 : f32 to vector<8x128xf32>
    %592 = arith.mulf %591, %590 : vector<8x128xf32>
    %593 = math.tanh %592 : vector<8x128xf32>
    %cst_188 = arith.constant 5.000000e-01 : f32
    %594 = vector.broadcast %cst_188 : f32 to vector<8x128xf32>
    %595 = arith.mulf %594, %593 : vector<8x128xf32>
    %cst_189 = arith.constant 5.000000e-01 : f32
    %596 = vector.broadcast %cst_189 : f32 to vector<8x128xf32>
    %597 = arith.addf %595, %596 : vector<8x128xf32>
    %598 = arith.mulf %587, %500 : vector<8x128xf32>
    %599 = arith.mulf %579, %589 : vector<8x128xf32>
    %600 = arith.addf %598, %599 : vector<8x128xf32>
    %601 = math.tanh %600 : vector<8x128xf32>
    %602 = arith.mulf %597, %601 : vector<8x128xf32>
    %603 = vector.broadcast %571 : i32 to vector<8x1xi32>
    %604 = arith.cmpi sgt, %3, %603 : vector<8x1xi32>
    %605 = vector.shape_cast %604 : vector<8x1xi1> to vector<8x1xi1>
    %606 = vector.broadcast %605 : vector<8x1xi1> to vector<8x128xi1>
    %607 = arith.select %606, %600, %500 : vector<8x128xi1>, vector<8x128xf32>
    %608 = vector.shape_cast %604 : vector<8x1xi1> to vector<8x1xi1>
    %609 = vector.broadcast %608 : vector<8x1xi1> to vector<8x128xi1>
    %610 = arith.select %609, %602, %503 : vector<8x128xi1>, vector<8x128xf32>
    %cst_190 = arith.constant 0.000000e+00 : f32
    %611 = vector.shape_cast %604 : vector<8x1xi1> to vector<8x1xi1>
    %612 = vector.broadcast %611 : vector<8x1xi1> to vector<8x128xi1>
    %613 = vector.broadcast %cst_190 : f32 to vector<8x128xf32>
    %614 = arith.select %612, %602, %613 : vector<8x128xi1>, vector<8x128xf32>
    %615 = arith.index_cast %565 : i32 to index
    %c0_191 = arith.constant 0 : index
    %616 = vector.load %arg11[%615, %c0_191] : memref<64x128xf32, #tpu.memory_space<vmem>>, vector<8x128xf32>
    tpu.vector_store %arg11[%615, %c0_191], %614 {strides = array<i32>} : memref<64x128xf32, #tpu.memory_space<vmem>>, vector<8x128xf32>,
    %c7_i32_192 = arith.constant 7 : i32
    %617 = arith.subi %c7_i32_192, %c5_i32 : i32
    %c8_i32_193 = arith.constant 8 : i32
    %618 = arith.muli %617, %c8_i32_193 : i32
    %619 = tpu.assume_multiple %618, 8 : i32
    %620 = arith.index_cast %619 : i32 to index
    %c0_194 = arith.constant 0 : index
    %621 = vector.load %arg10[%620, %c0_194] : memref<64x512xf32, #tpu.memory_space<vmem>>, vector<8x512xf32>
    %622 = arith.truncf %557 : vector<8x128xf32> to vector<8x128xbf16>
    %cst_195 = arith.constant dense<0.000000e+00> : vector<8x512xf32>
    %623 = tpu.matmul %622, %21, %cst_195 {dimension_numbers = #tpu.dot_dimension_numbers<[1], [0], [0], [1], [0, 0, 1, 1], [], []>} : vector<8x128xbf16>, vector<128x512xbf16>, vector<8x512xf32> -> vector<8x512xf32>
    %624 = arith.addf %621, %623 : vector<8x512xf32>
    %625 = arith.addi %24, %617 : i32
    %626 = vector.extract_strided_slice %624 {offsets = [0, 0], sizes = [8, 128], strides = [1, 1]} : vector<8x512xf32> to vector<8x128xf32>
    %cst_196 = arith.constant 5.000000e-01 : f32
    %627 = vector.broadcast %cst_196 : f32 to vector<8x128xf32>
    %628 = arith.mulf %627, %626 : vector<8x128xf32>
    %629 = math.tanh %628 : vector<8x128xf32>
    %cst_197 = arith.constant 5.000000e-01 : f32
    %630 = vector.broadcast %cst_197 : f32 to vector<8x128xf32>
    %631 = arith.mulf %630, %629 : vector<8x128xf32>
    %cst_198 = arith.constant 5.000000e-01 : f32
    %632 = vector.broadcast %cst_198 : f32 to vector<8x128xf32>
    %633 = arith.addf %631, %632 : vector<8x128xf32>
    %634 = vector.extract_strided_slice %624 {offsets = [0, 128], sizes = [8, 128], strides = [1, 1]} : vector<8x512xf32> to vector<8x128xf32>
    %cst_199 = arith.constant 5.000000e-01 : f32
    %635 = vector.broadcast %cst_199 : f32 to vector<8x128xf32>
    %636 = arith.mulf %635, %634 : vector<8x128xf32>
    %637 = math.tanh %636 : vector<8x128xf32>
    %cst_200 = arith.constant 5.000000e-01 : f32
    %638 = vector.broadcast %cst_200 : f32 to vector<8x128xf32>
    %639 = arith.mulf %638, %637 : vector<8x128xf32>
    %cst_201 = arith.constant 5.000000e-01 : f32
    %640 = vector.broadcast %cst_201 : f32 to vector<8x128xf32>
    %641 = arith.addf %639, %640 : vector<8x128xf32>
    %642 = vector.extract_strided_slice %624 {offsets = [0, 256], sizes = [8, 128], strides = [1, 1]} : vector<8x512xf32> to vector<8x128xf32>
    %643 = math.tanh %642 : vector<8x128xf32>
    %644 = vector.extract_strided_slice %624 {offsets = [0, 384], sizes = [8, 128], strides = [1, 1]} : vector<8x512xf32> to vector<8x128xf32>
    %cst_202 = arith.constant 5.000000e-01 : f32
    %645 = vector.broadcast %cst_202 : f32 to vector<8x128xf32>
    %646 = arith.mulf %645, %644 : vector<8x128xf32>
    %647 = math.tanh %646 : vector<8x128xf32>
    %cst_203 = arith.constant 5.000000e-01 : f32
    %648 = vector.broadcast %cst_203 : f32 to vector<8x128xf32>
    %649 = arith.mulf %648, %647 : vector<8x128xf32>
    %cst_204 = arith.constant 5.000000e-01 : f32
    %650 = vector.broadcast %cst_204 : f32 to vector<8x128xf32>
    %651 = arith.addf %649, %650 : vector<8x128xf32>
    %652 = arith.mulf %641, %554 : vector<8x128xf32>
    %653 = arith.mulf %633, %643 : vector<8x128xf32>
    %654 = arith.addf %652, %653 : vector<8x128xf32>
    %655 = math.tanh %654 : vector<8x128xf32>
    %656 = arith.mulf %651, %655 : vector<8x128xf32>
    %657 = vector.broadcast %625 : i32 to vector<8x1xi32>
    %658 = arith.cmpi sgt, %3, %657 : vector<8x1xi32>
    %659 = vector.shape_cast %658 : vector<8x1xi1> to vector<8x1xi1>
    %660 = vector.broadcast %659 : vector<8x1xi1> to vector<8x128xi1>
    %661 = arith.select %660, %654, %554 : vector<8x128xi1>, vector<8x128xf32>
    %662 = vector.shape_cast %658 : vector<8x1xi1> to vector<8x1xi1>
    %663 = vector.broadcast %662 : vector<8x1xi1> to vector<8x128xi1>
    %664 = arith.select %663, %656, %557 : vector<8x128xi1>, vector<8x128xf32>
    %cst_205 = arith.constant 0.000000e+00 : f32
    %665 = vector.shape_cast %658 : vector<8x1xi1> to vector<8x1xi1>
    %666 = vector.broadcast %665 : vector<8x1xi1> to vector<8x128xi1>
    %667 = vector.broadcast %cst_205 : f32 to vector<8x128xf32>
    %668 = arith.select %666, %656, %667 : vector<8x128xi1>, vector<8x128xf32>
    %669 = arith.index_cast %619 : i32 to index
    %c0_206 = arith.constant 0 : index
    %670 = vector.load %arg12[%669, %c0_206] : memref<64x128xf32, #tpu.memory_space<vmem>>, vector<8x128xf32>
    tpu.vector_store %arg12[%669, %c0_206], %668 {strides = array<i32>} : memref<64x128xf32, #tpu.memory_space<vmem>>, vector<8x128xf32>,
    %c6_i32 = arith.constant 6 : i32
    %c8_i32_207 = arith.constant 8 : i32
    %671 = arith.muli %c6_i32, %c8_i32_207 : i32
    %672 = tpu.assume_multiple %671, 8 : i32
    %673 = arith.index_cast %672 : i32 to index
    %c0_208 = arith.constant 0 : index
    %674 = vector.load %arg9[%673, %c0_208] : memref<64x512xf32, #tpu.memory_space<vmem>>, vector<8x512xf32>
    %675 = arith.truncf %610 : vector<8x128xf32> to vector<8x128xbf16>
    %cst_209 = arith.constant dense<0.000000e+00> : vector<8x512xf32>
    %676 = tpu.matmul %675, %19, %cst_209 {dimension_numbers = #tpu.dot_dimension_numbers<[1], [0], [0], [1], [0, 0, 1, 1], [], []>} : vector<8x128xbf16>, vector<128x512xbf16>, vector<8x512xf32> -> vector<8x512xf32>
    %677 = arith.addf %674, %676 : vector<8x512xf32>
    %678 = arith.addi %22, %c6_i32 : i32
    %679 = vector.extract_strided_slice %677 {offsets = [0, 0], sizes = [8, 128], strides = [1, 1]} : vector<8x512xf32> to vector<8x128xf32>
    %cst_210 = arith.constant 5.000000e-01 : f32
    %680 = vector.broadcast %cst_210 : f32 to vector<8x128xf32>
    %681 = arith.mulf %680, %679 : vector<8x128xf32>
    %682 = math.tanh %681 : vector<8x128xf32>
    %cst_211 = arith.constant 5.000000e-01 : f32
    %683 = vector.broadcast %cst_211 : f32 to vector<8x128xf32>
    %684 = arith.mulf %683, %682 : vector<8x128xf32>
    %cst_212 = arith.constant 5.000000e-01 : f32
    %685 = vector.broadcast %cst_212 : f32 to vector<8x128xf32>
    %686 = arith.addf %684, %685 : vector<8x128xf32>
    %687 = vector.extract_strided_slice %677 {offsets = [0, 128], sizes = [8, 128], strides = [1, 1]} : vector<8x512xf32> to vector<8x128xf32>
    %cst_213 = arith.constant 5.000000e-01 : f32
    %688 = vector.broadcast %cst_213 : f32 to vector<8x128xf32>
    %689 = arith.mulf %688, %687 : vector<8x128xf32>
    %690 = math.tanh %689 : vector<8x128xf32>
    %cst_214 = arith.constant 5.000000e-01 : f32
    %691 = vector.broadcast %cst_214 : f32 to vector<8x128xf32>
    %692 = arith.mulf %691, %690 : vector<8x128xf32>
    %cst_215 = arith.constant 5.000000e-01 : f32
    %693 = vector.broadcast %cst_215 : f32 to vector<8x128xf32>
    %694 = arith.addf %692, %693 : vector<8x128xf32>
    %695 = vector.extract_strided_slice %677 {offsets = [0, 256], sizes = [8, 128], strides = [1, 1]} : vector<8x512xf32> to vector<8x128xf32>
    %696 = math.tanh %695 : vector<8x128xf32>
    %697 = vector.extract_strided_slice %677 {offsets = [0, 384], sizes = [8, 128], strides = [1, 1]} : vector<8x512xf32> to vector<8x128xf32>
    %cst_216 = arith.constant 5.000000e-01 : f32
    %698 = vector.broadcast %cst_216 : f32 to vector<8x128xf32>
    %699 = arith.mulf %698, %697 : vector<8x128xf32>
    %700 = math.tanh %699 : vector<8x128xf32>
    %cst_217 = arith.constant 5.000000e-01 : f32
    %701 = vector.broadcast %cst_217 : f32 to vector<8x128xf32>
    %702 = arith.mulf %701, %700 : vector<8x128xf32>
    %cst_218 = arith.constant 5.000000e-01 : f32
    %703 = vector.broadcast %cst_218 : f32 to vector<8x128xf32>
    %704 = arith.addf %702, %703 : vector<8x128xf32>
    %705 = arith.mulf %694, %607 : vector<8x128xf32>
    %706 = arith.mulf %686, %696 : vector<8x128xf32>
    %707 = arith.addf %705, %706 : vector<8x128xf32>
    %708 = math.tanh %707 : vector<8x128xf32>
    %709 = arith.mulf %704, %708 : vector<8x128xf32>
    %710 = vector.broadcast %678 : i32 to vector<8x1xi32>
    %711 = arith.cmpi sgt, %3, %710 : vector<8x1xi32>
    %712 = vector.shape_cast %711 : vector<8x1xi1> to vector<8x1xi1>
    %713 = vector.broadcast %712 : vector<8x1xi1> to vector<8x128xi1>
    %714 = arith.select %713, %707, %607 : vector<8x128xi1>, vector<8x128xf32>
    %715 = vector.shape_cast %711 : vector<8x1xi1> to vector<8x1xi1>
    %716 = vector.broadcast %715 : vector<8x1xi1> to vector<8x128xi1>
    %717 = arith.select %716, %709, %610 : vector<8x128xi1>, vector<8x128xf32>
    %cst_219 = arith.constant 0.000000e+00 : f32
    %718 = vector.shape_cast %711 : vector<8x1xi1> to vector<8x1xi1>
    %719 = vector.broadcast %718 : vector<8x1xi1> to vector<8x128xi1>
    %720 = vector.broadcast %cst_219 : f32 to vector<8x128xf32>
    %721 = arith.select %719, %709, %720 : vector<8x128xi1>, vector<8x128xf32>
    %722 = arith.index_cast %672 : i32 to index
    %c0_220 = arith.constant 0 : index
    %723 = vector.load %arg11[%722, %c0_220] : memref<64x128xf32, #tpu.memory_space<vmem>>, vector<8x128xf32>
    tpu.vector_store %arg11[%722, %c0_220], %721 {strides = array<i32>} : memref<64x128xf32, #tpu.memory_space<vmem>>, vector<8x128xf32>,
    %c7_i32_221 = arith.constant 7 : i32
    %724 = arith.subi %c7_i32_221, %c6_i32 : i32
    %c8_i32_222 = arith.constant 8 : i32
    %725 = arith.muli %724, %c8_i32_222 : i32
    %726 = tpu.assume_multiple %725, 8 : i32
    %727 = arith.index_cast %726 : i32 to index
    %c0_223 = arith.constant 0 : index
    %728 = vector.load %arg10[%727, %c0_223] : memref<64x512xf32, #tpu.memory_space<vmem>>, vector<8x512xf32>
    %729 = arith.truncf %664 : vector<8x128xf32> to vector<8x128xbf16>
    %cst_224 = arith.constant dense<0.000000e+00> : vector<8x512xf32>
    %730 = tpu.matmul %729, %21, %cst_224 {dimension_numbers = #tpu.dot_dimension_numbers<[1], [0], [0], [1], [0, 0, 1, 1], [], []>} : vector<8x128xbf16>, vector<128x512xbf16>, vector<8x512xf32> -> vector<8x512xf32>
    %731 = arith.addf %728, %730 : vector<8x512xf32>
    %732 = arith.addi %24, %724 : i32
    %733 = vector.extract_strided_slice %731 {offsets = [0, 0], sizes = [8, 128], strides = [1, 1]} : vector<8x512xf32> to vector<8x128xf32>
    %cst_225 = arith.constant 5.000000e-01 : f32
    %734 = vector.broadcast %cst_225 : f32 to vector<8x128xf32>
    %735 = arith.mulf %734, %733 : vector<8x128xf32>
    %736 = math.tanh %735 : vector<8x128xf32>
    %cst_226 = arith.constant 5.000000e-01 : f32
    %737 = vector.broadcast %cst_226 : f32 to vector<8x128xf32>
    %738 = arith.mulf %737, %736 : vector<8x128xf32>
    %cst_227 = arith.constant 5.000000e-01 : f32
    %739 = vector.broadcast %cst_227 : f32 to vector<8x128xf32>
    %740 = arith.addf %738, %739 : vector<8x128xf32>
    %741 = vector.extract_strided_slice %731 {offsets = [0, 128], sizes = [8, 128], strides = [1, 1]} : vector<8x512xf32> to vector<8x128xf32>
    %cst_228 = arith.constant 5.000000e-01 : f32
    %742 = vector.broadcast %cst_228 : f32 to vector<8x128xf32>
    %743 = arith.mulf %742, %741 : vector<8x128xf32>
    %744 = math.tanh %743 : vector<8x128xf32>
    %cst_229 = arith.constant 5.000000e-01 : f32
    %745 = vector.broadcast %cst_229 : f32 to vector<8x128xf32>
    %746 = arith.mulf %745, %744 : vector<8x128xf32>
    %cst_230 = arith.constant 5.000000e-01 : f32
    %747 = vector.broadcast %cst_230 : f32 to vector<8x128xf32>
    %748 = arith.addf %746, %747 : vector<8x128xf32>
    %749 = vector.extract_strided_slice %731 {offsets = [0, 256], sizes = [8, 128], strides = [1, 1]} : vector<8x512xf32> to vector<8x128xf32>
    %750 = math.tanh %749 : vector<8x128xf32>
    %751 = vector.extract_strided_slice %731 {offsets = [0, 384], sizes = [8, 128], strides = [1, 1]} : vector<8x512xf32> to vector<8x128xf32>
    %cst_231 = arith.constant 5.000000e-01 : f32
    %752 = vector.broadcast %cst_231 : f32 to vector<8x128xf32>
    %753 = arith.mulf %752, %751 : vector<8x128xf32>
    %754 = math.tanh %753 : vector<8x128xf32>
    %cst_232 = arith.constant 5.000000e-01 : f32
    %755 = vector.broadcast %cst_232 : f32 to vector<8x128xf32>
    %756 = arith.mulf %755, %754 : vector<8x128xf32>
    %cst_233 = arith.constant 5.000000e-01 : f32
    %757 = vector.broadcast %cst_233 : f32 to vector<8x128xf32>
    %758 = arith.addf %756, %757 : vector<8x128xf32>
    %759 = arith.mulf %748, %661 : vector<8x128xf32>
    %760 = arith.mulf %740, %750 : vector<8x128xf32>
    %761 = arith.addf %759, %760 : vector<8x128xf32>
    %762 = math.tanh %761 : vector<8x128xf32>
    %763 = arith.mulf %758, %762 : vector<8x128xf32>
    %764 = vector.broadcast %732 : i32 to vector<8x1xi32>
    %765 = arith.cmpi sgt, %3, %764 : vector<8x1xi32>
    %766 = vector.shape_cast %765 : vector<8x1xi1> to vector<8x1xi1>
    %767 = vector.broadcast %766 : vector<8x1xi1> to vector<8x128xi1>
    %768 = arith.select %767, %761, %661 : vector<8x128xi1>, vector<8x128xf32>
    %769 = vector.shape_cast %765 : vector<8x1xi1> to vector<8x1xi1>
    %770 = vector.broadcast %769 : vector<8x1xi1> to vector<8x128xi1>
    %771 = arith.select %770, %763, %664 : vector<8x128xi1>, vector<8x128xf32>
    %cst_234 = arith.constant 0.000000e+00 : f32
    %772 = vector.shape_cast %765 : vector<8x1xi1> to vector<8x1xi1>
    %773 = vector.broadcast %772 : vector<8x1xi1> to vector<8x128xi1>
    %774 = vector.broadcast %cst_234 : f32 to vector<8x128xf32>
    %775 = arith.select %773, %763, %774 : vector<8x128xi1>, vector<8x128xf32>
    %776 = arith.index_cast %726 : i32 to index
    %c0_235 = arith.constant 0 : index
    %777 = vector.load %arg12[%776, %c0_235] : memref<64x128xf32, #tpu.memory_space<vmem>>, vector<8x128xf32>
    tpu.vector_store %arg12[%776, %c0_235], %775 {strides = array<i32>} : memref<64x128xf32, #tpu.memory_space<vmem>>, vector<8x128xf32>,
    %c7_i32_236 = arith.constant 7 : i32
    %c8_i32_237 = arith.constant 8 : i32
    %778 = arith.muli %c7_i32_236, %c8_i32_237 : i32
    %779 = tpu.assume_multiple %778, 8 : i32
    %780 = arith.index_cast %779 : i32 to index
    %c0_238 = arith.constant 0 : index
    %781 = vector.load %arg9[%780, %c0_238] : memref<64x512xf32, #tpu.memory_space<vmem>>, vector<8x512xf32>
    %782 = arith.truncf %717 : vector<8x128xf32> to vector<8x128xbf16>
    %cst_239 = arith.constant dense<0.000000e+00> : vector<8x512xf32>
    %783 = tpu.matmul %782, %19, %cst_239 {dimension_numbers = #tpu.dot_dimension_numbers<[1], [0], [0], [1], [0, 0, 1, 1], [], []>} : vector<8x128xbf16>, vector<128x512xbf16>, vector<8x512xf32> -> vector<8x512xf32>
    %784 = arith.addf %781, %783 : vector<8x512xf32>
    %785 = arith.addi %22, %c7_i32_236 : i32
    %786 = vector.extract_strided_slice %784 {offsets = [0, 0], sizes = [8, 128], strides = [1, 1]} : vector<8x512xf32> to vector<8x128xf32>
    %cst_240 = arith.constant 5.000000e-01 : f32
    %787 = vector.broadcast %cst_240 : f32 to vector<8x128xf32>
    %788 = arith.mulf %787, %786 : vector<8x128xf32>
    %789 = math.tanh %788 : vector<8x128xf32>
    %cst_241 = arith.constant 5.000000e-01 : f32
    %790 = vector.broadcast %cst_241 : f32 to vector<8x128xf32>
    %791 = arith.mulf %790, %789 : vector<8x128xf32>
    %cst_242 = arith.constant 5.000000e-01 : f32
    %792 = vector.broadcast %cst_242 : f32 to vector<8x128xf32>
    %793 = arith.addf %791, %792 : vector<8x128xf32>
    %794 = vector.extract_strided_slice %784 {offsets = [0, 128], sizes = [8, 128], strides = [1, 1]} : vector<8x512xf32> to vector<8x128xf32>
    %cst_243 = arith.constant 5.000000e-01 : f32
    %795 = vector.broadcast %cst_243 : f32 to vector<8x128xf32>
    %796 = arith.mulf %795, %794 : vector<8x128xf32>
    %797 = math.tanh %796 : vector<8x128xf32>
    %cst_244 = arith.constant 5.000000e-01 : f32
    %798 = vector.broadcast %cst_244 : f32 to vector<8x128xf32>
    %799 = arith.mulf %798, %797 : vector<8x128xf32>
    %cst_245 = arith.constant 5.000000e-01 : f32
    %800 = vector.broadcast %cst_245 : f32 to vector<8x128xf32>
    %801 = arith.addf %799, %800 : vector<8x128xf32>
    %802 = vector.extract_strided_slice %784 {offsets = [0, 256], sizes = [8, 128], strides = [1, 1]} : vector<8x512xf32> to vector<8x128xf32>
    %803 = math.tanh %802 : vector<8x128xf32>
    %804 = vector.extract_strided_slice %784 {offsets = [0, 384], sizes = [8, 128], strides = [1, 1]} : vector<8x512xf32> to vector<8x128xf32>
    %cst_246 = arith.constant 5.000000e-01 : f32
    %805 = vector.broadcast %cst_246 : f32 to vector<8x128xf32>
    %806 = arith.mulf %805, %804 : vector<8x128xf32>
    %807 = math.tanh %806 : vector<8x128xf32>
    %cst_247 = arith.constant 5.000000e-01 : f32
    %808 = vector.broadcast %cst_247 : f32 to vector<8x128xf32>
    %809 = arith.mulf %808, %807 : vector<8x128xf32>
    %cst_248 = arith.constant 5.000000e-01 : f32
    %810 = vector.broadcast %cst_248 : f32 to vector<8x128xf32>
    %811 = arith.addf %809, %810 : vector<8x128xf32>
    %812 = arith.mulf %801, %714 : vector<8x128xf32>
    %813 = arith.mulf %793, %803 : vector<8x128xf32>
    %814 = arith.addf %812, %813 : vector<8x128xf32>
    %815 = math.tanh %814 : vector<8x128xf32>
    %816 = arith.mulf %811, %815 : vector<8x128xf32>
    %817 = vector.broadcast %785 : i32 to vector<8x1xi32>
    %818 = arith.cmpi sgt, %3, %817 : vector<8x1xi32>
    %819 = vector.shape_cast %818 : vector<8x1xi1> to vector<8x1xi1>
    %820 = vector.broadcast %819 : vector<8x1xi1> to vector<8x128xi1>
    %821 = arith.select %820, %814, %714 : vector<8x128xi1>, vector<8x128xf32>
    %822 = vector.shape_cast %818 : vector<8x1xi1> to vector<8x1xi1>
    %823 = vector.broadcast %822 : vector<8x1xi1> to vector<8x128xi1>
    %824 = arith.select %823, %816, %717 : vector<8x128xi1>, vector<8x128xf32>
    %cst_249 = arith.constant 0.000000e+00 : f32
    %825 = vector.shape_cast %818 : vector<8x1xi1> to vector<8x1xi1>
    %826 = vector.broadcast %825 : vector<8x1xi1> to vector<8x128xi1>
    %827 = vector.broadcast %cst_249 : f32 to vector<8x128xf32>
    %828 = arith.select %826, %816, %827 : vector<8x128xi1>, vector<8x128xf32>
    %829 = arith.index_cast %779 : i32 to index
    %c0_250 = arith.constant 0 : index
    %830 = vector.load %arg11[%829, %c0_250] : memref<64x128xf32, #tpu.memory_space<vmem>>, vector<8x128xf32>
    tpu.vector_store %arg11[%829, %c0_250], %828 {strides = array<i32>} : memref<64x128xf32, #tpu.memory_space<vmem>>, vector<8x128xf32>,
    %c7_i32_251 = arith.constant 7 : i32
    %831 = arith.subi %c7_i32_251, %c7_i32_236 : i32
    %c8_i32_252 = arith.constant 8 : i32
    %832 = arith.muli %831, %c8_i32_252 : i32
    %833 = tpu.assume_multiple %832, 8 : i32
    %834 = arith.index_cast %833 : i32 to index
    %c0_253 = arith.constant 0 : index
    %835 = vector.load %arg10[%834, %c0_253] : memref<64x512xf32, #tpu.memory_space<vmem>>, vector<8x512xf32>
    %836 = arith.truncf %771 : vector<8x128xf32> to vector<8x128xbf16>
    %cst_254 = arith.constant dense<0.000000e+00> : vector<8x512xf32>
    %837 = tpu.matmul %836, %21, %cst_254 {dimension_numbers = #tpu.dot_dimension_numbers<[1], [0], [0], [1], [0, 0, 1, 1], [], []>} : vector<8x128xbf16>, vector<128x512xbf16>, vector<8x512xf32> -> vector<8x512xf32>
    %838 = arith.addf %835, %837 : vector<8x512xf32>
    %839 = arith.addi %24, %831 : i32
    %840 = vector.extract_strided_slice %838 {offsets = [0, 0], sizes = [8, 128], strides = [1, 1]} : vector<8x512xf32> to vector<8x128xf32>
    %cst_255 = arith.constant 5.000000e-01 : f32
    %841 = vector.broadcast %cst_255 : f32 to vector<8x128xf32>
    %842 = arith.mulf %841, %840 : vector<8x128xf32>
    %843 = math.tanh %842 : vector<8x128xf32>
    %cst_256 = arith.constant 5.000000e-01 : f32
    %844 = vector.broadcast %cst_256 : f32 to vector<8x128xf32>
    %845 = arith.mulf %844, %843 : vector<8x128xf32>
    %cst_257 = arith.constant 5.000000e-01 : f32
    %846 = vector.broadcast %cst_257 : f32 to vector<8x128xf32>
    %847 = arith.addf %845, %846 : vector<8x128xf32>
    %848 = vector.extract_strided_slice %838 {offsets = [0, 128], sizes = [8, 128], strides = [1, 1]} : vector<8x512xf32> to vector<8x128xf32>
    %cst_258 = arith.constant 5.000000e-01 : f32
    %849 = vector.broadcast %cst_258 : f32 to vector<8x128xf32>
    %850 = arith.mulf %849, %848 : vector<8x128xf32>
    %851 = math.tanh %850 : vector<8x128xf32>
    %cst_259 = arith.constant 5.000000e-01 : f32
    %852 = vector.broadcast %cst_259 : f32 to vector<8x128xf32>
    %853 = arith.mulf %852, %851 : vector<8x128xf32>
    %cst_260 = arith.constant 5.000000e-01 : f32
    %854 = vector.broadcast %cst_260 : f32 to vector<8x128xf32>
    %855 = arith.addf %853, %854 : vector<8x128xf32>
    %856 = vector.extract_strided_slice %838 {offsets = [0, 256], sizes = [8, 128], strides = [1, 1]} : vector<8x512xf32> to vector<8x128xf32>
    %857 = math.tanh %856 : vector<8x128xf32>
    %858 = vector.extract_strided_slice %838 {offsets = [0, 384], sizes = [8, 128], strides = [1, 1]} : vector<8x512xf32> to vector<8x128xf32>
    %cst_261 = arith.constant 5.000000e-01 : f32
    %859 = vector.broadcast %cst_261 : f32 to vector<8x128xf32>
    %860 = arith.mulf %859, %858 : vector<8x128xf32>
    %861 = math.tanh %860 : vector<8x128xf32>
    %cst_262 = arith.constant 5.000000e-01 : f32
    %862 = vector.broadcast %cst_262 : f32 to vector<8x128xf32>
    %863 = arith.mulf %862, %861 : vector<8x128xf32>
    %cst_263 = arith.constant 5.000000e-01 : f32
    %864 = vector.broadcast %cst_263 : f32 to vector<8x128xf32>
    %865 = arith.addf %863, %864 : vector<8x128xf32>
    %866 = arith.mulf %855, %768 : vector<8x128xf32>
    %867 = arith.mulf %847, %857 : vector<8x128xf32>
    %868 = arith.addf %866, %867 : vector<8x128xf32>
    %869 = math.tanh %868 : vector<8x128xf32>
    %870 = arith.mulf %865, %869 : vector<8x128xf32>
    %871 = vector.broadcast %839 : i32 to vector<8x1xi32>
    %872 = arith.cmpi sgt, %3, %871 : vector<8x1xi32>
    %873 = vector.shape_cast %872 : vector<8x1xi1> to vector<8x1xi1>
    %874 = vector.broadcast %873 : vector<8x1xi1> to vector<8x128xi1>
    %875 = arith.select %874, %868, %768 : vector<8x128xi1>, vector<8x128xf32>
    %876 = vector.shape_cast %872 : vector<8x1xi1> to vector<8x1xi1>
    %877 = vector.broadcast %876 : vector<8x1xi1> to vector<8x128xi1>
    %878 = arith.select %877, %870, %771 : vector<8x128xi1>, vector<8x128xf32>
    %cst_264 = arith.constant 0.000000e+00 : f32
    %879 = vector.shape_cast %872 : vector<8x1xi1> to vector<8x1xi1>
    %880 = vector.broadcast %879 : vector<8x1xi1> to vector<8x128xi1>
    %881 = vector.broadcast %cst_264 : f32 to vector<8x128xf32>
    %882 = arith.select %880, %870, %881 : vector<8x128xi1>, vector<8x128xf32>
    %883 = arith.index_cast %833 : i32 to index
    %c0_265 = arith.constant 0 : index
    %884 = vector.load %arg12[%883, %c0_265] : memref<64x128xf32, #tpu.memory_space<vmem>>, vector<8x128xf32>
    tpu.vector_store %arg12[%883, %c0_265], %882 {strides = array<i32>} : memref<64x128xf32, #tpu.memory_space<vmem>>, vector<8x128xf32>,
    %c8_i32_266 = arith.constant 8 : i32
    %c0_267 = arith.constant 0 : index
    %c0_268 = arith.constant 0 : index
    %885 = vector.load %arg13[%c0_267, %c0_268] : memref<8x128xf32, #tpu.memory_space<vmem>>, vector<8x128xf32>
    tpu.vector_store %arg13[%c0_267, %c0_268], %824 {strides = array<i32>} : memref<8x128xf32, #tpu.memory_space<vmem>>, vector<8x128xf32>,
    %c0_269 = arith.constant 0 : index
    %c0_270 = arith.constant 0 : index
    %886 = vector.load %arg14[%c0_269, %c0_270] : memref<8x128xf32, #tpu.memory_space<vmem>>, vector<8x128xf32>
    tpu.vector_store %arg14[%c0_269, %c0_270], %821 {strides = array<i32>} : memref<8x128xf32, #tpu.memory_space<vmem>>, vector<8x128xf32>,
    %c0_271 = arith.constant 0 : index
    %c0_272 = arith.constant 0 : index
    %887 = vector.load %arg15[%c0_271, %c0_272] : memref<8x128xf32, #tpu.memory_space<vmem>>, vector<8x128xf32>
    tpu.vector_store %arg15[%c0_271, %c0_272], %878 {strides = array<i32>} : memref<8x128xf32, #tpu.memory_space<vmem>>, vector<8x128xf32>,
    %c0_273 = arith.constant 0 : index
    %c0_274 = arith.constant 0 : index
    %888 = vector.load %arg16[%c0_273, %c0_274] : memref<8x128xf32, #tpu.memory_space<vmem>>, vector<8x128xf32>
    tpu.vector_store %arg16[%c0_273, %c0_274], %875 {strides = array<i32>} : memref<8x128xf32, #tpu.memory_space<vmem>>, vector<8x128xf32>,
    %c0_275 = arith.constant 0 : index
    %c0_276 = arith.constant 0 : index
    %889 = vector.load %arg11[%c0_275, %c0_276] : memref<64x128xf32, #tpu.memory_space<vmem>>, vector<64x128xf32>
    %890 = arith.truncf %889 : vector<64x128xf32> to vector<64x128xbf16>
    %c0_277 = arith.constant 0 : index
    %c0_278 = arith.constant 0 : index
    %891 = vector.load %arg7[%c0_277, %c0_278] : memref<64x128xbf16, #tpu.memory_space<vmem>>, vector<64x128xbf16>
    tpu.vector_store %arg7[%c0_277, %c0_278], %890 {strides = array<i32>} : memref<64x128xbf16, #tpu.memory_space<vmem>>, vector<64x128xbf16>,
    %c0_279 = arith.constant 0 : index
    %c0_280 = arith.constant 0 : index
    %892 = vector.load %arg12[%c0_279, %c0_280] : memref<64x128xf32, #tpu.memory_space<vmem>>, vector<64x128xf32>
    %893 = arith.truncf %892 : vector<64x128xf32> to vector<64x128xbf16>
    %c0_281 = arith.constant 0 : index
    %c0_282 = arith.constant 0 : index
    %894 = vector.load %arg8[%c0_281, %c0_282] : memref<64x128xbf16, #tpu.memory_space<vmem>>, vector<64x128xbf16>
    tpu.vector_store %arg8[%c0_281, %c0_282], %893 {strides = array<i32>} : memref<64x128xbf16, #tpu.memory_space<vmem>>, vector<64x128xbf16>,
    return
  }
  func.func @transform_0(%arg0: i32) -> (i32, i32) {
    %c0_i32 = arith.constant 0 : i32
    %c0_i32_0 = arith.constant 0 : i32
    %c0_i32_1 = arith.constant 0 : i32
    return %c0_i32, %c0_i32_0 : i32, i32
  }
  func.func @transform_1(%arg0: i32) -> (i32, i32) {
    %c0_i32 = arith.constant 0 : i32
    %c0_i32_0 = arith.constant 0 : i32
    return %arg0, %c0_i32 : i32, i32
  }
  func.func @transform_2(%arg0: i32) -> (i32, i32) {
    %c0_i32 = arith.constant 0 : i32
    %0 = arith.subi %c0_i32, %arg0 : i32
    %c0_i32_0 = arith.constant 0 : i32
    %c0_i32_1 = arith.constant 0 : i32
    return %0, %c0_i32_0 : i32, i32
  }
  func.func @transform_3(%arg0: i32) -> (i32, i32) {
    %c0_i32 = arith.constant 0 : i32
    %c0_i32_0 = arith.constant 0 : i32
    %c0_i32_1 = arith.constant 0 : i32
    return %c0_i32, %c0_i32_0 : i32, i32
  }
  func.func @transform_4(%arg0: i32) -> (i32, i32) {
    %c0_i32 = arith.constant 0 : i32
    %c0_i32_0 = arith.constant 0 : i32
    %c0_i32_1 = arith.constant 0 : i32
    return %c0_i32, %c0_i32_0 : i32, i32
  }
  func.func @transform_5(%arg0: i32) -> (i32, i32, i32) {
    %c0_i32 = arith.constant 0 : i32
    %c0_i32_0 = arith.constant 0 : i32
    %c0_i32_1 = arith.constant 0 : i32
    %c0_i32_2 = arith.constant 0 : i32
    return %c0_i32, %c0_i32_0, %c0_i32_1 : i32, i32, i32
  }
  func.func @transform_6(%arg0: i32) -> (i32, i32) {
    %c0_i32 = arith.constant 0 : i32
    %c0_i32_0 = arith.constant 0 : i32
    return %arg0, %c0_i32 : i32, i32
  }
  func.func @transform_7(%arg0: i32) -> (i32, i32) {
    %c0_i32 = arith.constant 0 : i32
    %0 = arith.subi %c0_i32, %arg0 : i32
    %c0_i32_0 = arith.constant 0 : i32
    %c0_i32_1 = arith.constant 0 : i32
    return %0, %c0_i32_0 : i32, i32
  }
}

</mosaic_0001>

<bundles_post_ra>
// kernel: tpu_custom_call.1
= control target key start
LH: loop header
LB: loop body
LE: loop exit
PB: predicated region body
PF: predicated region fallthrough
CT: control target
= control target key end

     0   :  { %13 = vsyncpa [#allocation11], 0  ;;  %s5422_s0 = inlined_call_operand.vmem [shape: s32[8,1], index: 0, kind: input, shape index: {}]   ;;  %s5423_s1 = inlined_call_operand.vmem [shape: bf16[64,39], index: 1, kind: input, shape index: {}]   ;;  %s5424_s2 = inlined_call_operand.vmem [shape: bf16[64,39], index: 2, kind: input, shape index: {}]   ;;  %s5425_s3 = inlined_call_operand.hbm [shape: bf16[39,1024], index: 3, kind: input, shape index: {}]   ;;  %s5426_s4 = inlined_call_operand.vmem [shape: f32[1,1024], index: 4, kind: input, shape index: {}]   ;;  %s5427_s5 = inlined_call_operand.hbm [shape: bf16[2,128,512], index: 5, kind: input, shape index: {}]   ;;  %s5428_s6 = inlined_call_operand.hbm [shape: bf16[64,128], index: 6, kind: output, shape index: {0}]   ;;  %s5429_s7 = inlined_call_operand.hbm [shape: bf16[64,128], index: 7, kind: output, shape index: {1}]  }
   0x1   :  { %14 = vsyncpa [#allocation14], 0 }
   0x2   :  { %15 = vsyncpa [#allocation12], 0 }
   0x3   :  { %16 = vsyncpa [#allocation17], 0  ;;  %s3971_s24 = smov [#allocation10]   ;;  %s3875_s28 = scalar_lea.hbm %s5425_s3, 2560 }
   0x4   :  { %s36_s25 = sshll.u32 %s3971_s24, 4  ;;  %p3876_p0 = scmp.ne.s32.totalorder %s5425_s3, %s3875_s28  ;;  %s37_s25 = int_to_ptr.vmem [resolvable:$true] %s36_s25 }
   0x5   :  { %p3879_p1 = scmp.lt.u32.totalorder %s3875_s28, %s5425_s3 }
   0x7   :  { %p3881_p2 = pnand %p3879_p1, %p3876_p0 }
   0x9   :  { %3884 = shalt.err (!%p3881_p2)
}
   0xa   :  { %s3885_s10 = scalar_lea.vmem %s37_s25, 2560  ;;  %p3890_p4 = scmp.lt.s32.totalorder %s37_s25, %s37_s25 }
   0xb   :  { %p3886_p3 = scmp.ne.s32.totalorder %s37_s25, %s3885_s10  ;;  %p3891_p5 = scmp.lt.s32.totalorder %s3885_s10, %s3885_s10 }
   0xd   :  { %p3892_p6 = por %p3891_p5, %p3890_p4 }
   0xf   :  { %p3893_p7 = pnand %p3892_p6, %p3886_p3 }
  0x11   :  { %3896 = shalt.err (!%p3893_p7)
}
  0x12   :  { %s3972_s11 = smov 512   ;;  %s3973_s12 = smov 32  }
  0x13   :  { %42 = dma.hbm_to_vmem [thread:$0]  %s5425_s3, 2560, %s37_s25, [#allocation11], %s3972_s11, %s3972_s11, %s3973_s12  }
  0x14   :  { %s3974_s15 = smov [#allocation13]   ;;  %s3897_s19 = scalar_lea.hbm %s5427_s5, 8192 }
  0x15   :  { %s50_s16 = sshll.u32 %s3974_s15, 4  ;;  %p3898_p8 = scmp.ne.s32.totalorder %s5427_s5, %s3897_s19  ;;  %s51_s16 = int_to_ptr.vmem [resolvable:$true] %s50_s16 }
  0x16   :  { %p3901_p9 = scmp.lt.u32.totalorder %s3897_s19, %s5427_s5 }
  0x18   :  { %p3903_p10 = pnand %p3901_p9, %p3898_p8 }
  0x1a   :  { %3906 = shalt.err (!%p3903_p10)
}
  0x1b   :  { %s3907_s24 = scalar_lea.vmem %s51_s16, 8192  ;;  %p3912_p12 = scmp.lt.s32.totalorder %s51_s16, %s51_s16 }
  0x1c   :  { %p3908_p11 = scmp.ne.s32.totalorder %s51_s16, %s3907_s24  ;;  %p3913_p13 = scmp.lt.s32.totalorder %s3907_s24, %s3907_s24 }
  0x1e   :  { %p3914_p0 = por %p3913_p13, %p3912_p12 }
  0x20   :  { %p3915_p1 = pnand %p3914_p0, %p3908_p11 }
  0x22   :  { %3918 = shalt.err (!%p3915_p1)
}
  0x23   :  { %s3975_s3 = smov 256   ;;  %s3976_s25 = smov 16  }
  0x24   :  { %56 = dma.hbm_to_vmem [thread:$0]  %s5427_s5, 8192, %s51_s16, [#allocation14], %s3975_s3, %s3975_s3, %s3976_s25  }
  0x25   :  { %3963 = dma.done.wait [#allocation11], 2560  }
  0x26   :  { %3964 = vsyncadd [#allocation11], 4294964736 }
  0x27   :  { %3965 = dma.done.wait [#allocation14], 8192  }
  0x28   :  { %3966 = vsyncadd [#allocation14], 4294959104  ;;  %v5430_v0 = vmov 0   ;;  %vm212_vm0 = vcmask 1042432   ;;  %vm213_vm1 = vcmask 1043456   ;;  %v3978_v1 = vmov 65535  }
  0x29   :  { %260 = vmatprep.mubr.bf16.mxu0 %v5430_v0  ;;  %333 = vmatprep.mubr.bf16.mxu1 %v5430_v0  ;;  %v214_v2 = vsel %vm212_vm0, 4294967295, %v3978_v1  ;;  %v97_v3 = vld [vmem:[#allocation10] sm:$0xff]  ;;  %v98_v5 = vld [vmem:[#allocation10 + $0x8] sm:$0xff]  ;;  %v414_v27 = vld [vmem:[#allocation10 + $0x10] sm:$0xff]  ;;  %vm199_vm2 = vcmask 318464  }
  0x2a   :  { %3473 = vset.pattern.permute.xlu0 %v5430_v0  ;;  %3474 = vset.pattern.permute.xlu1 %v5430_v0  ;;  %v99_v4 = vld [vmem:[#allocation10 + $0x20] sm:$0xff]  ;;  %v100_v7 = vld [vmem:[#allocation10 + $0x28] sm:$0xff]  ;;  %v4053_v17 = vsel %vm213_vm1, %v214_v2, 0  ;;  %v416_v29 = vld [vmem:[#allocation10 + $0x30] sm:$0xff] }
  0x2b   :  { %v3263_v6 = vcombine.high %v97_v3, %v99_v4  ;;  %v3262_v8 = vcombine.low %v97_v3, %v99_v4  ;;  %v101_v9 = vld [vmem:[#allocation10 + $0x40] sm:$0xff]  ;;  %v3265_v11 = vcombine.high %v98_v5, %v100_v7  ;;  %v3264_v12 = vcombine.low %v98_v5, %v100_v7  ;;  %v102_v14 = vld [vmem:[#allocation10 + $0x48] sm:$0xff]  ;;  %v415_v30 = vld [vmem:[#allocation10 + $0x18] sm:$0xff] }
  0x2c   :  { %v103_v10 = vld [vmem:[#allocation10 + $0x60] sm:$0xff]  ;;  %v104_v15 = vld [vmem:[#allocation10 + $0x68] sm:$0xff]  ;;  %v417_v31 = vld [vmem:[#allocation10 + $0x38] sm:$0xff]  ;;  %v3287_v35 = vcombine.high %v414_v27, %v416_v29  ;;  %v3286_v42 = vcombine.low %v414_v27, %v416_v29 }
  0x2d   :  { %v3267_v13 = vcombine.high %v101_v9, %v103_v10  ;;  %v105_v16 = vld [vmem:[#allocation10 + $0x80] sm:$0xff]  ;;  %228 = vmatprep.subr.bf16.mxu0 %v3263_v6  ;;  %v3269_v18 = vcombine.high %v102_v14, %v104_v15  ;;  %v106_v20 = vld [vmem:[#allocation10 + $0x88] sm:$0xff]  ;;  %301 = vmatprep.subr.bf16.mxu1 %v3265_v11  ;;  %v3266_v21 = vcombine.low %v101_v9, %v103_v10  ;;  %v3479_v34 = vld [vmem:[%s5423_s1] sm:$0xff]  }
  0x2e   :  { %v3271_v19 = vcombine.high %v105_v16, %v105_v16  ;;  %229 = vmatpush1.bf16.msra.mxu0 %v3262_v8  ;;  %v3273_v22 = vcombine.high %v106_v20, %v106_v20  ;;  %v3270_v23 = vcombine.low %v105_v16, %v105_v16  ;;  %302 = vmatpush1.bf16.msra.mxu1 %v3264_v12  ;;  %v418_v36 = vld [vmem:[#allocation10 + $0x50] sm:$0xff]  ;;  %v419_v39 = vld [vmem:[#allocation10 + $0x58] sm:$0xff]  ;;  %v3480_v54 = vld [vmem:[%s5423_s1 + $0x8] sm:$0xff]  }
  0x2f   :  { %230 = vmatprep.subr.bf16.mxu0 %v3267_v13  ;;  %v3268_v24 = vcombine.low %v102_v14, %v104_v15  ;;  %v3272_v26 = vcombine.low %v106_v20, %v106_v20  ;;  %303 = vmatprep.subr.bf16.mxu1 %v3269_v18  ;;  %v420_v37 = vld [vmem:[#allocation10 + $0x70] sm:$0xff]  ;;  %v3289_v38 = vcombine.high %v415_v30, %v417_v31  ;;  %v421_v41 = vld [vmem:[#allocation10 + $0x78] sm:$0xff]  ;;  %v3481_v60 = vld [vmem:[%s5423_s1 + $0x10] sm:$0xff]  }
  0x30   :  { %v220_v25 = vand.u32 %v3271_v19, %v4053_v17  ;;  %v226_v28 = vand.u32 %v3273_v22, %v4053_v17  ;;  %v217_v32 = vand.u32 %v3270_v23, %v4053_v17  ;;  %v422_v40 = vld [vmem:[#allocation10 + $0x90] sm:$0xff]  ;;  %v423_v43 = vld [vmem:[#allocation10 + $0x98] sm:$0xff]  ;;  %v3288_v45 = vcombine.low %v415_v30, %v417_v31  ;;  %v3504_v8 = vld [vmem:[%s5424_s2 + $0x8] sm:$0xff]  }
  0x31   :  { %v223_v33 = vand.u32 %v3272_v26, %v4053_v17  ;;  %v3295_v44 = vcombine.high %v422_v40, %v422_v40  ;;  %v3291_v46 = vcombine.high %v418_v36, %v420_v37  ;;  %v3293_v47 = vcombine.high %v419_v39, %v421_v41  ;;  %v4073_v58 = vld [vmem:[#allocation13 + $0x4] ss:$16 sps:$4 sm:$0xff]   ;;  %v4076_v59 = vld [vmem:[#allocation13 + $0xc] ss:$16 sps:$4 sm:$0xff]   ;;  %v4100_v63 = vld [vmem:[#allocation13] ss:$16 sps:$4 sm:$0xff]  }
  0x32   :  { %231 = vmatpush1.bf16.msra.mxu0 %v3266_v21  ;;  %304 = vmatpush1.bf16.msra.mxu1 %v3268_v24  ;;  %v3297_v48 = vcombine.high %v423_v43, %v423_v43  ;;  %v3290_v49 = vcombine.low %v418_v36, %v420_v37  ;;  %v3294_v50 = vcombine.low %v422_v40, %v422_v40  ;;  %v3484_v61 = vld [vmem:[%s5423_s1 + $0x18] sm:$0xff]   ;;  %v3491_v62 = vld [vmem:[%s5424_s2] sm:$0xff]   ;;  %v3517_v18 = vld [vmem:[%s5424_s2 + $0x10] sm:$0xff]  }
  0x33   :  { %232 = vmatprep.subr.bf16.mxu0 %v220_v25  ;;  %305 = vmatprep.subr.bf16.mxu1 %v226_v28  ;;  %v532_v51 = vand.u32 %v3295_v44, %v4053_v17  ;;  %v3292_v52 = vcombine.low %v419_v39, %v421_v41  ;;  %v3296_v53 = vcombine.low %v423_v43, %v423_v43  ;;  %v4102_v1 = vld [vmem:[#allocation13 + $0x8] ss:$16 sps:$4 sm:$0xff]   ;;  %v4104_v2 = vld [vmem:[#allocation13 + $0x24] ss:$16 sps:$4 sm:$0xff]   ;;  %v4106_v3 = vld [vmem:[#allocation13 + $0x2c] ss:$16 sps:$4 sm:$0xff]  }
  0x34   :  { %v538_v55 = vand.u32 %v3297_v48, %v4053_v17  ;;  %v529_v56 = vand.u32 %v3294_v50, %v4053_v17  ;;  %v4111_v4 = vld [vmem:[#allocation13 + $0x20] ss:$16 sps:$4 sm:$0xff]   ;;  %v4113_v5 = vld [vmem:[#allocation13 + $0x28] ss:$16 sps:$4 sm:$0xff]   ;;  %v4117_v6 = vld [vmem:[#allocation13 + $0x44] ss:$16 sps:$4 sm:$0xff]  }
  0x35   :  { %v535_v57 = vand.u32 %v3296_v53, %v4053_v17  ;;  %v4121_v7 = vld [vmem:[#allocation13 + $0x4c] ss:$16 sps:$4 sm:$0xff]   ;;  %v4127_v9 = vld [vmem:[#allocation13 + $0x40] ss:$16 sps:$4 sm:$0xff]   ;;  %v4130_v10 = vld [vmem:[#allocation13 + $0x48] ss:$16 sps:$4 sm:$0xff]  }
  0x36   :  { %233 = vmatpush1.bf16.msra.mxu0 %v217_v32  ;;  %306 = vmatpush1.bf16.msra.mxu1 %v223_v33  ;;  %v4134_v11 = vld [vmem:[#allocation13 + $0x64] ss:$16 sps:$4 sm:$0xff]   ;;  %v4137_v12 = vld [vmem:[#allocation13 + $0x6c] ss:$16 sps:$4 sm:$0xff]   ;;  %v4142_v13 = vld [vmem:[#allocation13 + $0x60] ss:$16 sps:$4 sm:$0xff]  }
  0x37   :  { %540 = vmatprep.subr.bf16.mxu0 %v3287_v35  ;;  %613 = vmatprep.subr.bf16.mxu1 %v3289_v38  ;;  %5546 = vst [vmem:[#allocation22_spill] sm:$0xff] %v4137_v12  ;;  %5547 = vst [vmem:[#allocation23_spill] sm:$0xff] %v4142_v13  ;;  %v4146_v14 = vld [vmem:[#allocation13 + $0x68] ss:$16 sps:$4 sm:$0xff]   ;;  %v4148_v15 = vld [vmem:[#allocation13 + $0x84] ss:$16 sps:$4 sm:$0xff]  }
  0x38   :  { %5548 = vst [vmem:[#allocation24_spill] sm:$0xff] %v4146_v14  ;;  %5549 = vst [vmem:[#allocation25_spill] sm:$0xff] %v4148_v15  ;;  %v4153_v16 = vld [vmem:[%s5422_s0] sm:$0xff]  ;;  %v4168_v20 = vld [vmem:[#allocation13 + $0x80] ss:$16 sps:$4 sm:$0xff]  }
  0x39   :  { %3274 = vmatmul.mubr.msk.bf16.vlgmr.msra.gmra.mrb[0].mxu0 %vm199_vm2, %v3479_v34  ;;  %3278 = vmatmul.mubr.msk.bf16.vlgmr.msra.gmra.mrb[0].mxu1 %vm199_vm2, %v3479_v34  ;;  %v4157_v17 = vld [vmem:[#allocation13 + $0x8c] ss:$16 sps:$4 sm:$0xff]   ;;  %vm1063_vm3 = vcmp.gt.s32.totalorder %v4153_v16, 0  ;;  %5551 = vst [vmem:[#allocation27_spill] sm:$0xff] %v4168_v20  ;;  %v4173_v21 = vld [vmem:[#allocation13 + $0x88] ss:$16 sps:$4 sm:$0xff]  }
  0x3a   :  { %541 = vmatpush1.bf16.msra.mxu0 %v3286_v42  ;;  %270 = vmatprep.mubr.bf16.mxu0 %v5430_v0  ;;  %5550 = vst [vmem:[#allocation26_spill] sm:$0xff] %v4157_v17  ;;  %v4165_v19 = vsel %vm1063_vm3, 1, %v5430_v0  ;;  %5552 = vst [vmem:[#allocation28_spill] sm:$0xff] %v4173_v21  ;;  %v4175_v22 = vld [vmem:[#allocation13 + $0xa4] ss:$16 sps:$4 sm:$0xff]   ;;  %vm1347_vm4 = vcmp.gt.s32.totalorder %v4153_v16, 7 }
  0x3b   :  { %343 = vmatprep.mubr.bf16.mxu1 %v5430_v0  ;;  %614 = vmatpush1.bf16.msra.mxu1 %v3288_v45  ;;  %5553 = vst [vmem:[#allocation29_spill] sm:$0xff] %v4175_v22  ;;  %v4179_v23 = vld [vmem:[#allocation13 + $0xac] ss:$16 sps:$4 sm:$0xff]   ;;  %v4184_v24 = vld [vmem:[#allocation13 + $0xa0] ss:$16 sps:$4 sm:$0xff]   ;;  %v4187_v25 = vsel %vm1347_vm4, 1, %v5430_v0 }
  0x3c   :  { %542 = vmatprep.subr.bf16.mxu0 %v3291_v46  ;;  %615 = vmatprep.subr.bf16.mxu1 %v3293_v47  ;;  %5554 = vst [vmem:[#allocation30_spill] sm:$0xff] %v4179_v23  ;;  %5555 = vst [vmem:[#allocation31_spill] sm:$0xff] %v4184_v24  ;;  %v4191_v26 = vld [vmem:[#allocation13 + $0xa8] ss:$16 sps:$4 sm:$0xff]   ;;  %v4193_v27 = vld [vmem:[#allocation13 + $0xc4] ss:$16 sps:$4 sm:$0xff]  }
  0x3d   :  { %1066 = vperm.xlu0 %3473, %v4165_v19   ;;  %5556 = vst [vmem:[#allocation32_spill] sm:$0xff] %v4191_v26  ;;  %5557 = vst [vmem:[#allocation33_spill] sm:$0xff] %v4193_v27  ;;  %vm1722_vm5 = vcmp.gt.s32.totalorder %v4153_v16, 2  ;;  %v4198_v28 = vld [vmem:[#allocation13 + $0xcc] ss:$16 sps:$4 sm:$0xff]   ;;  %v3530_v29 = vld [vmem:[%s5424_s2 + $0x18] sm:$0xff]  }
  0x3e   :  { %543 = vmatpush1.bf16.msra.mxu0 %v3290_v49  ;;  %5558 = vst [vmem:[#allocation34_spill] sm:$0xff] %v4198_v28  ;;  %v4206_v30 = vld [vmem:[#allocation13 + $0xc0] ss:$16 sps:$4 sm:$0xff]   ;;  %v4209_v31 = vsel %vm1722_vm5, 1, %v5430_v0  ;;  %v4213_v32 = vld [vmem:[#allocation13 + $0xc8] ss:$16 sps:$4 sm:$0xff]  }
  0x3f   :  { %544 = vmatprep.subr.bf16.mxu0 %v532_v51  ;;  %616 = vmatpush1.bf16.msra.mxu1 %v3292_v52  ;;  %5559 = vst [vmem:[#allocation35_spill] sm:$0xff] %v4206_v30  ;;  %5560 = vst [vmem:[#allocation36_spill] sm:$0xff] %v4213_v32  ;;  %v4215_v33 = vld [vmem:[#allocation13 + $0xe4] ss:$16 sps:$4 sm:$0xff]   ;;  %vm1972_vm6 = vcmp.gt.s32.totalorder %v4153_v16, 3  ;;  %vm2097_vm7 = vcmp.gt.s32.totalorder %v4153_v16, 4 }
  0x40   :  { %617 = vmatprep.subr.bf16.mxu1 %v538_v55  ;;  %5561 = vst [vmem:[#allocation37_spill] sm:$0xff] %v4215_v33  ;;  %v4219_v34 = vld [vmem:[#allocation13 + $0xec] ss:$16 sps:$4 sm:$0xff]   ;;  %v4225_v35 = vld [vmem:[#allocation13 + $0xe0] ss:$16 sps:$4 sm:$0xff]   ;;  %v4228_v36 = vsel %vm1972_vm6, 1, %v5430_v0 }
  0x41   :  { %3275 = vmatmul.mubr.msk.bf16.gmra.mrb[4].mxu0 %vm199_vm2, %v3480_v54  ;;  %3279 = vmatmul.mubr.msk.bf16.gmra.mrb[4].mxu1 %vm199_vm2, %v3480_v54  ;;  %5562 = vst [vmem:[#allocation38_spill] sm:$0xff] %v4219_v34  ;;  %5563 = vst [vmem:[#allocation39_spill] sm:$0xff] %v4225_v35  ;;  %v4232_v37 = vld [vmem:[#allocation13 + $0xe8] ss:$16 sps:$4 sm:$0xff]   ;;  %v4234_v38 = vld [vmem:[#allocation13 + $0x104] ss:$16 sps:$4 sm:$0xff]  }
  0x42   :  { %280 = vmatprep.mubr.bf16.mxu0 %v5430_v0  ;;  %353 = vmatprep.mubr.bf16.mxu1 %v5430_v0  ;;  %5564 = vst [vmem:[#allocation40_spill] sm:$0xff] %v4232_v37  ;;  %5565 = vst [vmem:[#allocation41_spill] sm:$0xff] %v4234_v38  ;;  %v4239_v39 = vld [vmem:[#allocation13 + $0x10c] ss:$16 sps:$4 sm:$0xff]   ;;  %v4244_v40 = vld [vmem:[#allocation13 + $0x100] ss:$16 sps:$4 sm:$0xff]  }
  0x43   :  { %545 = vmatpush1.bf16.msra.mxu0 %v529_v56  ;;  %618 = vmatpush1.bf16.msra.mxu1 %v535_v57  ;;  %5566 = vst [vmem:[#allocation42_spill] sm:$0xff] %v4239_v39  ;;  %v4247_v41 = vsel %vm2097_vm7, 1, %v5430_v0  ;;  %v4251_v42 = vld [vmem:[#allocation13 + $0x108] ss:$16 sps:$4 sm:$0xff]   ;;  %v4253_v43 = vld [vmem:[#allocation13 + $0x124] ss:$16 sps:$4 sm:$0xff]  }
  0x44   :  { %958 = vmatprep.subr.bf16.mxu0 %v4073_v58  ;;  %999 = vmatprep.subr.bf16.mxu1 %v4076_v59  ;;  %vm1847_vm8 = vcmp.gt.s32.totalorder %v4153_v16, 5  ;;  %v4257_v44 = vld [vmem:[#allocation13 + $0x12c] ss:$16 sps:$4 sm:$0xff]   ;;  %v5432_v45 = vmov 0.0|0.0   ;;  %v4263_v46 = vld [vmem:[#allocation13 + $0x120] ss:$16 sps:$4 sm:$0xff]  }
  0x45   :  { %1350 = vperm.xlu0 %3473, %v4187_v25   ;;  %v4266_v47 = vsel %vm1847_vm8, 1, %v5430_v0  ;;  %v4270_v48 = vld [vmem:[#allocation13 + $0x128] ss:$16 sps:$4 sm:$0xff]   ;;  %v4272_v49 = vld [vmem:[#allocation13 + $0x144] ss:$16 sps:$4 sm:$0xff]   ;;  %vm1597_vm9 = vcmp.gt.s32.totalorder %v4153_v16, 6 }
  0x46   :  { %v4276_v50 = vld [vmem:[#allocation13 + $0x14c] ss:$16 sps:$4 sm:$0xff]   ;;  %v4282_v51 = vld [vmem:[#allocation13 + $0x140] ss:$16 sps:$4 sm:$0xff]   ;;  %v4285_v52 = vsel %vm1597_vm9, 1, %v5430_v0  ;;  %vm1472_vm10 = vcmp.gt.s32.totalorder %v4153_v16, 1 }
  0x47   :  { %v4289_v53 = vld [vmem:[#allocation13 + $0x148] ss:$16 sps:$4 sm:$0xff]   ;;  %v4291_v54 = vld [vmem:[#allocation13 + $0x164] ss:$16 sps:$4 sm:$0xff]   ;;  %v4294_v55 = vld [vmem:[#allocation13 + $0x16c] ss:$16 sps:$4 sm:$0xff]  }
  0x48   :  { %v4298_v56 = vld [vmem:[#allocation13 + $0x160] ss:$16 sps:$4 sm:$0xff]   ;;  %v4302_v57 = vld [vmem:[#allocation13 + $0x168] ss:$16 sps:$4 sm:$0xff]  }
  0x49   :  { %3276 = vmatmul.mubr.msk.bf16.gmra.mrb[8].mxu0 %vm199_vm2, %v3481_v60  ;;  %3280 = vmatmul.mubr.msk.bf16.gmra.mrb[8].mxu1 %vm199_vm2, %v3481_v60  ;;  %v4304_v60 = vld [vmem:[#allocation13 + $0x184] ss:$16 sps:$4 sm:$0xff]  }
  0x4a   :  { %290 = vmatprep.mubr.bf16.mxu0 %v5430_v0  ;;  %363 = vmatprep.mubr.bf16.mxu1 %v5430_v0  ;;  %5567 = vst [vmem:[#allocation43_spill] sm:$0xff] %v4304_v60 }
  0x4b   :  { %1725 = vperm.xlu0 %3473, %v4209_v31  }
  0x4f   :  { %1975 = vperm.xlu0 %3473, %v4228_v36  }
  0x51   :  { %3277 = vmatmul.mubr.msk.bf16.gmra.mrb[12].mxu0 %vm199_vm2, %v3484_v61  ;;  %3281 = vmatmul.mubr.msk.bf16.gmra.mrb[12].mxu1 %vm199_vm2, %v3484_v61  ;;  %v4307_v61 = vld [vmem:[#allocation13 + $0x18c] ss:$16 sps:$4 sm:$0xff]  }
  0x52   :  { %572 = vmatprep.mubr.bf16.mxu0 %v5430_v0  ;;  %645 = vmatprep.mubr.bf16.mxu1 %v5430_v0  ;;  %5568 = vst [vmem:[#allocation44_spill] sm:$0xff] %v4307_v61 }
  0x53   :  { %2224 = vperm.xlu0 %3473, %v4247_v41  }
  0x57   :  { %2472 = vperm.xlu0 %3473, %v4266_v47  }
  0x59   :  { %3298 = vmatmul.mubr.msk.bf16.vlgmr.msra.gmra.mrb[16].mxu0 %vm199_vm2, %v3491_v62  ;;  %3302 = vmatmul.mubr.msk.bf16.vlgmr.msra.gmra.mrb[16].mxu1 %vm199_vm2, %v3491_v62  ;;  %v4311_v62 = vld [vmem:[#allocation13 + $0x180] ss:$16 sps:$4 sm:$0xff]  }
  0x5a   :  { %959 = vmatpush1.bf16.msra.mxu0 %v4100_v63  ;;  %1000 = vmatpush1.bf16.msra.mxu1 %v4102_v1  ;;  %5569 = vst [vmem:[#allocation45_spill] sm:$0xff] %v4311_v62 }
  0x5b   :  { %960 = vmatprep.subr.bf16.mxu0 %v4104_v2  ;;  %1001 = vmatprep.subr.bf16.mxu1 %v4106_v3 }
  0x5c   :  { %582 = vmatprep.mubr.bf16.mxu0 %v5430_v0  ;;  %655 = vmatprep.mubr.bf16.mxu1 %v5430_v0 }
  0x5d   :  { %2720 = vperm.xlu0 %3473, %v4285_v52  }
  0x5e   :  { %961 = vmatpush1.bf16.msra.mxu0 %v4111_v4  ;;  %1002 = vmatpush1.bf16.msra.mxu1 %v4113_v5 }
  0x5f   :  { %962 = vmatprep.subr.bf16.mxu0 %v4117_v6  ;;  %1003 = vmatprep.subr.bf16.mxu1 %v4121_v7 }
  0x61   :  { %3299 = vmatmul.mubr.msk.bf16.gmra.mrb[20].mxu0 %vm199_vm2, %v3504_v8  ;;  %3303 = vmatmul.mubr.msk.bf16.gmra.mrb[20].mxu1 %vm199_vm2, %v3504_v8  ;;  %v4315_v8 = vld [vmem:[#allocation13 + $0x188] ss:$16 sps:$4 sm:$0xff]  }
  0x62   :  { %963 = vmatpush1.bf16.msra.mxu0 %v4127_v9  ;;  %1004 = vmatpush1.bf16.msra.mxu1 %v4130_v10  ;;  %5570 = vst [vmem:[#allocation46_spill] sm:$0xff] %v4315_v8 }
  0x63   :  { %964 = vmatprep.subr.bf16.mxu0 %v4134_v11  ;;  %1005 = vmatprep.subr.bf16.mxu1 %v4137_v12 }
  0x64   :  { %592 = vmatprep.mubr.bf16.mxu0 %v5430_v0  ;;  %665 = vmatprep.mubr.bf16.mxu1 %v5430_v0 }
  0x65   :  { %2968 = vperm.xlu0 %3473, %v4187_v25   ;;  %v4327_v25 = vld [vmem:[#allocation13 + $0x1a8] ss:$16 sps:$4 sm:$0xff]  }
  0x66   :  { %965 = vmatpush1.bf16.msra.mxu0 %v4142_v13  ;;  %1006 = vmatpush1.bf16.msra.mxu1 %v4146_v14 }
  0x67   :  { %966 = vmatprep.subr.bf16.mxu0 %v4148_v15  ;;  %1007 = vmatprep.subr.bf16.mxu1 %v4157_v17 }
  0x69   :  { %3300 = vmatmul.mubr.msk.bf16.gmra.mrb[24].mxu0 %vm199_vm2, %v3517_v18  ;;  %3304 = vmatmul.mubr.msk.bf16.gmra.mrb[24].mxu1 %vm199_vm2, %v3517_v18  ;;  %v4317_v18 = vld [vmem:[#allocation13 + $0x1a4] ss:$16 sps:$4 sm:$0xff]  }
  0x6a   :  { %967 = vmatpush1.bf16.msra.mxu0 %v4168_v20  ;;  %1008 = vmatpush1.bf16.msra.mxu1 %v4173_v21  ;;  %5571 = vst [vmem:[#allocation47_spill] sm:$0xff] %v4317_v18 }
  0x6b   :  { %968 = vmatprep.subr.bf16.mxu0 %v4175_v22  ;;  %1009 = vmatprep.subr.bf16.mxu1 %v4179_v23 }
  0x6c   :  { %602 = vmatprep.mubr.bf16.mxu0 %v5430_v0  ;;  %675 = vmatprep.mubr.bf16.mxu1 %v5430_v0 }
  0x6e   :  { %969 = vmatpush1.bf16.msra.mxu0 %v4184_v24  ;;  %1010 = vmatpush1.bf16.msra.mxu1 %v4191_v26 }
  0x6f   :  { %970 = vmatprep.subr.bf16.mxu0 %v4193_v27  ;;  %1011 = vmatprep.subr.bf16.mxu1 %v4198_v28 }
  0x71   :  { %3301 = vmatmul.mubr.msk.bf16.gmra.mrb[28].mxu0 %vm199_vm2, %v3530_v29  ;;  %3305 = vmatmul.mubr.msk.bf16.gmra.mrb[28].mxu1 %vm199_vm2, %v3530_v29  ;;  %v4320_v29 = vld [vmem:[#allocation13 + $0x1ac] ss:$16 sps:$4 sm:$0xff]  }
  0x72   :  { %971 = vmatpush1.bf16.msra.mxu0 %v4206_v30  ;;  %1012 = vmatpush1.bf16.msra.mxu1 %v4213_v32  ;;  %5572 = vst [vmem:[#allocation48_spill] sm:$0xff] %v4320_v29 }
  0x73   :  { %972 = vmatprep.subr.bf16.mxu0 %v4215_v33  ;;  %1013 = vmatprep.subr.bf16.mxu1 %v4219_v34 }
  0x74   :  { %990 = vmatprep.mubr.bf16.mxu0 %v5430_v0  ;;  %1031 = vmatprep.mubr.bf16.mxu1 %v5430_v0 }
  0x76   :  { %973 = vmatpush1.bf16.msra.mxu0 %v4225_v35  ;;  %1014 = vmatpush1.bf16.msra.mxu1 %v4232_v37 }
  0x77   :  { %1241 = vmatprep.subr.bf16.mxu0 %v4234_v38  ;;  %1282 = vmatprep.subr.bf16.mxu1 %v4239_v39 }
  0x79   :  { %991 = vmatmul.mubr.bf16.vlgmr.msra.gmra.mrb[32].mxu0 %v5432_v45  ;;  %1032 = vmatmul.mubr.bf16.vlgmr.msra.gmra.mrb[32].mxu1 %v5432_v45  ;;  %v4329_v45 = vld [vmem:[#allocation13 + $0x1c4] ss:$16 sps:$4 sm:$0xff]  }
  0x7a   :  { %1242 = vmatpush1.bf16.msra.mxu0 %v4244_v40  ;;  %1283 = vmatpush1.bf16.msra.mxu1 %v4251_v42 }
  0x7b   :  { %1243 = vmatprep.subr.bf16.mxu0 %v4253_v43  ;;  %1284 = vmatprep.subr.bf16.mxu1 %v4257_v44 }
  0x7c   :  { %1273 = vmatprep.mubr.bf16.mxu0 %v5430_v0  ;;  %1314 = vmatprep.mubr.bf16.mxu1 %v5430_v0  ;;  %v4323_v0 = vld [vmem:[#allocation13 + $0x1a0] ss:$16 sps:$4 sm:$0xff]  }
  0x7d   :  { %5573 = vst [vmem:[#allocation49_spill] sm:$0xff] %v4323_v0 }
  0x7e   :  { %1244 = vmatpush1.bf16.msra.mxu0 %v4263_v46  ;;  %1285 = vmatpush1.bf16.msra.mxu1 %v4270_v48 }
  0x7f   :  { %1245 = vmatprep.subr.bf16.mxu0 %v4272_v49  ;;  %1286 = vmatprep.subr.bf16.mxu1 %v4276_v50 }
  0x82   :  { %1246 = vmatpush1.bf16.msra.mxu0 %v4282_v51  ;;  %1287 = vmatpush1.bf16.msra.mxu1 %v4289_v53 }
  0x83   :  { %1247 = vmatprep.subr.bf16.mxu0 %v4291_v54  ;;  %1288 = vmatprep.subr.bf16.mxu1 %v4294_v55 }
  0x86   :  { %1248 = vmatpush1.bf16.msra.mxu0 %v4298_v56  ;;  %1289 = vmatpush1.bf16.msra.mxu1 %v4302_v57 }
  0x87   :  { %1249 = vmatprep.subr.bf16.mxu0 %v4304_v60  ;;  %1290 = vmatprep.subr.bf16.mxu1 %v4307_v61  ;;  %v4332_v60 = vld [vmem:[#allocation13 + $0x1cc] ss:$16 sps:$4 sm:$0xff]   ;;  %v4335_v61 = vld [vmem:[#allocation13 + $0x1c0] ss:$16 sps:$4 sm:$0xff]  }
  0x88   :  { %5574 = vst [vmem:[#allocation50_spill] sm:$0xff] %v4332_v60 }
  0x8a   :  { %1250 = vmatpush1.bf16.msra.mxu0 %v4311_v62  ;;  %1291 = vmatpush1.bf16.msra.mxu1 %v4315_v8  ;;  %v4339_v62 = vld [vmem:[#allocation13 + $0x1c8] ss:$16 sps:$4 sm:$0xff]   ;;  %v4341_v8 = vld [vmem:[#allocation13 + $0x1e4] ss:$16 sps:$4 sm:$0xff]  }
  0x8b   :  { %1251 = vmatprep.subr.bf16.mxu0 %v4317_v18  ;;  %1292 = vmatprep.subr.bf16.mxu1 %v4320_v29  ;;  %v4344_v18 = vld [vmem:[#allocation13 + $0x1ec] ss:$16 sps:$4 sm:$0xff]   ;;  %v4347_v29 = vld [vmem:[#allocation13 + $0x1e0] ss:$16 sps:$4 sm:$0xff]  }
  0x8c   :  { %5575 = vst [vmem:[#allocation51_spill] sm:$0xff] %v4344_v18 }
  0x8e   :  { %1252 = vmatpush1.bf16.msra.mxu0 %v4323_v0  ;;  %1293 = vmatpush1.bf16.msra.mxu1 %v4327_v25  ;;  %v4351_v0 = vld [vmem:[#allocation13 + $0x1e8] ss:$16 sps:$4 sm:$0xff]  }
  0x8f   :  { %1253 = vmatprep.subr.bf16.mxu0 %v4329_v45  ;;  %1294 = vmatprep.subr.bf16.mxu1 %v4332_v60  ;;  %v5576_v60 = vmov 0.0|0.0  }
  0x92   :  { %1254 = vmatpush1.bf16.msra.mxu0 %v4335_v61  ;;  %1295 = vmatpush1.bf16.msra.mxu1 %v4339_v62 }
  0x93   :  { %1255 = vmatprep.subr.bf16.mxu0 %v4341_v8  ;;  %1296 = vmatprep.subr.bf16.mxu1 %v4344_v18  ;;  %v5577_v18 = vmov 0  }
  0x96   :  { %1256 = vmatpush1.bf16.msra.mxu0 %v4347_v29  ;;  %1297 = vmatpush1.bf16.msra.mxu1 %v4351_v0 }
  0x97   :  { %1366 = vmatprep.subr.bf16.mxu0 %v4073_v58  ;;  %1407 = vmatprep.subr.bf16.mxu1 %v4076_v59  ;;  %v109_v58 = vlaneseq }
  0x99   :  { %1274 = vmatmul.mubr.bf16.vlgmr.msra.gmra.mrb[36].mxu0 %v5576_v60  ;;  %1315 = vmatmul.mubr.bf16.vlgmr.msra.gmra.mrb[36].mxu1 %v5576_v60  ;;  %v4394_v59 = vshrl.u32 %v109_v58, 7 }
  0x9a   :  { %1367 = vmatpush1.bf16.msra.mxu0 %v4100_v63  ;;  %1408 = vmatpush1.bf16.msra.mxu1 %v4102_v1 }
  0x9b   :  { %1368 = vmatprep.subr.bf16.mxu0 %v4104_v2  ;;  %1409 = vmatprep.subr.bf16.mxu1 %v4106_v3  ;;  %v5464_v60 = vsub.s32 2, %v4394_v59 }
  0x9c   :  { %1398 = vmatprep.mubr.bf16.mxu0 %v5577_v18  ;;  %1439 = vmatprep.mubr.bf16.mxu1 %v5577_v18 }
  0x9e   :  { %1369 = vmatpush1.bf16.msra.mxu0 %v4111_v4  ;;  %1410 = vmatpush1.bf16.msra.mxu1 %v4113_v5 }
  0x9f   :  { %1370 = vmatprep.subr.bf16.mxu0 %v4117_v6  ;;  %1411 = vmatprep.subr.bf16.mxu1 %v4121_v7 }
  0xa2   :  { %1371 = vmatpush1.bf16.msra.mxu0 %v4127_v9  ;;  %1412 = vmatpush1.bf16.msra.mxu1 %v4130_v10 }
  0xa3   :  { %1372 = vmatprep.subr.bf16.mxu0 %v4134_v11  ;;  %1413 = vmatprep.subr.bf16.mxu1 %v4137_v12 }
  0xa6   :  { %1373 = vmatpush1.bf16.msra.mxu0 %v4142_v13  ;;  %1414 = vmatpush1.bf16.msra.mxu1 %v4146_v14 }
  0xa7   :  { %1374 = vmatprep.subr.bf16.mxu0 %v4148_v15  ;;  %1415 = vmatprep.subr.bf16.mxu1 %v4157_v17  ;;  %v4444_v17 = vsel %vm1472_vm10, 1, %v5577_v18 }
  0xa8   :  { %1475 = vperm.xlu1 %3474, %v4444_v17  }
  0xaa   :  { %1375 = vmatpush1.bf16.msra.mxu0 %v4168_v20  ;;  %1416 = vmatpush1.bf16.msra.mxu1 %v4173_v21 }
  0xab   :  { %1376 = vmatprep.subr.bf16.mxu0 %v4175_v22  ;;  %1417 = vmatprep.subr.bf16.mxu1 %v4179_v23 }
  0xac   :  { %1600 = vperm.xlu1 %3474, %v4285_v52  }
  0xae   :  { %1377 = vmatpush1.bf16.msra.mxu0 %v4184_v24  ;;  %1418 = vmatpush1.bf16.msra.mxu1 %v4191_v26 }
  0xaf   :  { %1378 = vmatprep.subr.bf16.mxu0 %v4193_v27  ;;  %1419 = vmatprep.subr.bf16.mxu1 %v4198_v28 }
  0xb0   :  { %1850 = vperm.xlu1 %3474, %v4266_v47  }
  0xb2   :  { %1379 = vmatpush1.bf16.msra.mxu0 %v4206_v30  ;;  %1420 = vmatpush1.bf16.msra.mxu1 %v4213_v32  ;;  %v5465_v30 = vsub.s32 0, %v4394_v59  ;;  %v5469_v32 = vsub.s32 3, %v4394_v59 }
  0xb3   :  { %1380 = vmatprep.subr.bf16.mxu0 %v4215_v33  ;;  %1421 = vmatprep.subr.bf16.mxu1 %v4219_v34  ;;  %v107_v34 = vld [vmem:[%s5426_s4] sm:$0xf] }
  0xb4   :  { %v4411_v58 = vrot.slane %v107_v34, %v5465_v30  ;;  %v4419_v28 = vrot.slane %v107_v34, %v5469_v32  ;;  %2100 = vperm.xlu1 %3474, %v4247_v41  }
  0xb6   :  { %1381 = vmatpush1.bf16.msra.mxu0 %v4225_v35  ;;  %1422 = vmatpush1.bf16.msra.mxu1 %v4232_v37  ;;  %v5471_v35 = vsub.s32 1, %v4394_v59 }
  0xb7   :  { %1491 = vmatprep.subr.bf16.mxu0 %v4234_v38  ;;  %1532 = vmatprep.subr.bf16.mxu1 %v4239_v39  ;;  %v4407_v39 = vrot.slane %v107_v34, %v5464_v60 }
  0xb8   :  { %v4423_v27 = vrot.slane %v107_v34, %v5471_v35  ;;  %2348 = vperm.xlu1 %3474, %v4228_v36   ;;  %v5606_v36 = vsub.s32 0, %v4394_v59 }
  0xbc   :  { %2596 = vperm.xlu1 %3474, %v4209_v31  }
  0xc0   :  { %2844 = vperm.xlu1 %3474, %v4444_v17  }
  0xc4   :  { %3091 = vperm.xlu1 %3474, %v4165_v19  }
 0x10c   :  { %v4403_v37 = vpop.f32.mrb[0].mxu0  ;;  %v4415_v33 = vpop.f32.mrb[0].mxu1 }
 0x10d   :  { %v4413_v38 = vpop.f32.mrb[1].mxu0  ;;  %v4425_v24 = vpop.f32.mrb[1].mxu1 }
 0x10e   :  { %v266_v26 = vpop.f32.mrb[2].mxu0  ;;  %v339_v23 = vpop.f32.mrb[2].mxu1 }
 0x10f   :  { %v4428_v60 = vadd.f32 %v266_v26, %v4411_v58  ;;  %v268_v30 = vpop.f32.mrb[3].mxu0  ;;  %v4434_v21 = vadd.f32 %v339_v23, %v4407_v39  ;;  %v341_v32 = vpop.f32.mrb[3].mxu1 }
 0x110   :  { %v4431_v22 = vadd.f32 %v268_v30, %v4423_v27  ;;  %v4437_v20 = vadd.f32 %v341_v32, %v4419_v28 }
 0x111   :  { %5578 = vst [vmem:[#allocation52_spill] sm:$0xff] %v4428_v60  ;;  %5580 = vst [vmem:[#allocation54_spill] sm:$0xff] %v4434_v21 }
 0x112   :  { %5579 = vst [vmem:[#allocation53_spill] sm:$0xff] %v4431_v22  ;;  %5581 = vst [vmem:[#allocation55_spill] sm:$0xff] %v4437_v20 }
 0x114   :  { %v272_v34 = vpop.f32.mrb[4].mxu0  ;;  %v345_v60 = vpop.f32.mrb[4].mxu1 }
 0x115   :  { %v4441_v35 = vadd.f32 %v272_v34, %v4411_v58  ;;  %v274_v26 = vpop.f32.mrb[5].mxu0  ;;  %v4450_v22 = vadd.f32 %v345_v60, %v4407_v39  ;;  %v347_v32 = vpop.f32.mrb[5].mxu1 }
 0x116   :  { %v4447_v30 = vadd.f32 %v274_v26, %v4423_v27  ;;  %v276_v23 = vpop.f32.mrb[6].mxu0  ;;  %v349_v20 = vpop.f32.mrb[6].mxu1 }
 0x117   :  { %5582 = vst [vmem:[#allocation56_spill] sm:$0xff] %v4441_v35  ;;  %5584 = vst [vmem:[#allocation58_spill] sm:$0xff] %v4450_v22  ;;  %v4454_v16 = vadd.f32 %v276_v23, %v4411_v58  ;;  %v278_v34 = vpop.f32.mrb[7].mxu0  ;;  %v4457_v35 = vadd.f32 %v347_v32, %v4419_v28  ;;  %v4463_v26 = vadd.f32 %v349_v20, %v4407_v39 }
 0x118   :  { %5583 = vst [vmem:[#allocation57_spill] sm:$0xff] %v4447_v30  ;;  %v4460_v21 = vadd.f32 %v278_v34, %v4423_v27  ;;  %v351_v30 = vpop.f32.mrb[7].mxu1 }
 0x119   :  { %5585 = vst [vmem:[#allocation59_spill] sm:$0xff] %v4454_v16  ;;  %5586 = vst [vmem:[#allocation60_spill] sm:$0xff] %v4457_v35  ;;  %v4466_v60 = vadd.f32 %v351_v30, %v4419_v28 }
 0x11a   :  { %5587 = vst [vmem:[#allocation61_spill] sm:$0xff] %v4460_v21  ;;  %5588 = vst [vmem:[#allocation62_spill] sm:$0xff] %v4463_v26 }
 0x11b   :  { %5589 = vst [vmem:[#allocation63_spill] sm:$0xff] %v4466_v60 }
 0x11c   :  { %v282_v22 = vpop.f32.mrb[8].mxu0  ;;  %v355_v32 = vpop.f32.mrb[8].mxu1 }
 0x11d   :  { %v4470_v23 = vadd.f32 %v282_v22, %v4411_v58  ;;  %v284_v16 = vpop.f32.mrb[9].mxu0  ;;  %v4476_v21 = vadd.f32 %v355_v32, %v4407_v39  ;;  %v357_v20 = vpop.f32.mrb[9].mxu1 }
 0x11e   :  { %v4473_v35 = vadd.f32 %v284_v16, %v4423_v27  ;;  %v286_v34 = vpop.f32.mrb[10].mxu0  ;;  %v4483_v60 = vadd.f32 %v357_v20, %v4419_v28  ;;  %v359_v22 = vpop.f32.mrb[10].mxu1 }
 0x11f   :  { %5590 = vst [vmem:[#allocation64_spill] sm:$0xff] %v4470_v23  ;;  %5592 = vst [vmem:[#allocation66_spill] sm:$0xff] %v4476_v21  ;;  %v4480_v30 = vadd.f32 %v286_v34, %v4411_v58  ;;  %v288_v52 = vpop.f32.mrb[11].mxu0  ;;  %v4489_v16 = vadd.f32 %v359_v22, %v4407_v39 }
 0x120   :  { %5591 = vst [vmem:[#allocation65_spill] sm:$0xff] %v4473_v35  ;;  %5594 = vst [vmem:[#allocation68_spill] sm:$0xff] %v4483_v60  ;;  %v4486_v23 = vadd.f32 %v288_v52, %v4423_v27  ;;  %v361_v35 = vpop.f32.mrb[11].mxu1 }
 0x121   :  { %5593 = vst [vmem:[#allocation67_spill] sm:$0xff] %v4480_v30  ;;  %5596 = vst [vmem:[#allocation70_spill] sm:$0xff] %v4489_v16  ;;  %v4492_v32 = vadd.f32 %v361_v35, %v4419_v28  ;;  %v424_v35 = vld [vmem:[%s5426_s4 + $0x4] sm:$0xf]  ;;  %s3980_s4 = smov [#allocation15]  }
 0x122   :  { %5595 = vst [vmem:[#allocation69_spill] sm:$0xff] %v4486_v23  ;;  %v4525_v16 = vrot.slane %v424_v35, %v5606_v36  ;;  %s3203_s23 = sshll.u32 %s3980_s4, 4  ;;  %s3204_s23 = int_to_ptr.vmem [resolvable:$true] %s3203_s23 }
 0x123   :  { %5597 = vst [vmem:[#allocation71_spill] sm:$0xff] %v4492_v32  ;;  %s3919_s24 = scalar_lea.vmem %s3204_s23, 512  ;;  %p3924_p3 = scmp.lt.s32.totalorder %s3204_s23, %s3204_s23 }
 0x124   :  { %v292_v47 = vpop.f32.mrb[12].mxu0  ;;  %v365_v20 = vpop.f32.mrb[12].mxu1  ;;  %p3920_p2 = scmp.ne.s32.totalorder %s3204_s23, %s3919_s24  ;;  %p3925_p4 = scmp.lt.s32.totalorder %s3919_s24, %s3919_s24 }
 0x125   :  { %v4496_v34 = vadd.f32 %v292_v47, %v4411_v58  ;;  %v294_v30 = vpop.f32.mrb[13].mxu0  ;;  %v4502_v23 = vadd.f32 %v365_v20, %v4407_v39  ;;  %v367_v22 = vpop.f32.mrb[13].mxu1 }
 0x126   :  { %v4499_v60 = vadd.f32 %v294_v30, %v4423_v27  ;;  %v296_v52 = vpop.f32.mrb[14].mxu0  ;;  %v369_v30 = vpop.f32.mrb[14].mxu1  ;;  %p3926_p5 = por %p3925_p4, %p3924_p3 }
 0x127   :  { %5598 = vst [vmem:[#allocation72_spill] sm:$0xff] %v4496_v34  ;;  %5600 = vst [vmem:[#allocation74_spill] sm:$0xff] %v4502_v23  ;;  %v4509_v41 = vadd.f32 %v296_v52, %v4411_v58  ;;  %v298_v47 = vpop.f32.mrb[15].mxu0  ;;  %v4512_v34 = vadd.f32 %v367_v22, %v4419_v28  ;;  %v4518_v20 = vadd.f32 %v369_v30, %v4407_v39  ;;  %v371_v23 = vpop.f32.mrb[15].mxu1  ;;  %v5607_v52 = vsub.s32 1, %v4394_v59 }
 0x128   :  { %5599 = vst [vmem:[#allocation73_spill] sm:$0xff] %v4499_v60  ;;  %v4515_v60 = vadd.f32 %v298_v47, %v4423_v27  ;;  %v4521_v32 = vadd.f32 %v371_v23, %v4419_v28  ;;  %v5608_v22 = vsub.s32 2, %v4394_v59  ;;  %v5609_v47 = vsub.s32 3, %v4394_v59  ;;  %p3927_p6 = pnand %p3926_p5, %p3920_p2 }
 0x129   :  { %5601 = vst [vmem:[#allocation75_spill] sm:$0xff] %v4509_v41  ;;  %5602 = vst [vmem:[#allocation76_spill] sm:$0xff] %v4512_v34  ;;  %v4529_v41 = vrot.slane %v424_v35, %v5607_v52 }
 0x12a   :  { %5603 = vst [vmem:[#allocation77_spill] sm:$0xff] %v4515_v60  ;;  %5604 = vst [vmem:[#allocation78_spill] sm:$0xff] %v4518_v20  ;;  %v4533_v34 = vrot.slane %v424_v35, %v5608_v22  ;;  %v4538_v30 = vrot.slane %v424_v35, %v5609_v47 }
 0x12b   :  { %5605 = vst [vmem:[#allocation79_spill] sm:$0xff] %v4521_v32 }
 0x12c   :  { %v574_v23 = vpop.f32.mrb[16].mxu0  ;;  %v647_v60 = vpop.f32.mrb[16].mxu1 }
 0x12d   :  { %v4541_v32 = vadd.f32 %v574_v23, %v4525_v16  ;;  %v576_v36 = vpop.f32.mrb[17].mxu0  ;;  %v4547_v21 = vadd.f32 %v647_v60, %v4533_v34  ;;  %v649_v22 = vpop.f32.mrb[17].mxu1 }
 0x12e   :  { %v4544_v20 = vadd.f32 %v576_v36, %v4529_v41  ;;  %v578_v52 = vpop.f32.mrb[18].mxu0  ;;  %v4554_v35 = vadd.f32 %v649_v22, %v4538_v30  ;;  %v651_v47 = vpop.f32.mrb[18].mxu1 }
 0x12f   :  { %5610 = vst [vmem:[#allocation80_spill] sm:$0xff] %v4541_v32  ;;  %5612 = vst [vmem:[#allocation82_spill] sm:$0xff] %v4547_v21  ;;  %v4551_v31 = vadd.f32 %v578_v52, %v4525_v16  ;;  %v580_v59 = vpop.f32.mrb[19].mxu0  ;;  %v4560_v36 = vadd.f32 %v651_v47, %v4533_v34 }
 0x130   :  { %5611 = vst [vmem:[#allocation81_spill] sm:$0xff] %v4544_v20  ;;  %5614 = vst [vmem:[#allocation84_spill] sm:$0xff] %v4554_v35  ;;  %v4557_v23 = vadd.f32 %v580_v59, %v4529_v41  ;;  %v653_v20 = vpop.f32.mrb[19].mxu1 }
 0x131   :  { %5613 = vst [vmem:[#allocation83_spill] sm:$0xff] %v4551_v31  ;;  %5616 = vst [vmem:[#allocation86_spill] sm:$0xff] %v4560_v36  ;;  %v4563_v60 = vadd.f32 %v653_v20, %v4538_v30 }
 0x132   :  { %5615 = vst [vmem:[#allocation85_spill] sm:$0xff] %v4557_v23 }
 0x133   :  { %5617 = vst [vmem:[#allocation87_spill] sm:$0xff] %v4563_v60 }
 0x134   :  { %v584_v17 = vpop.f32.mrb[20].mxu0  ;;  %v657_v22 = vpop.f32.mrb[20].mxu1 }
 0x135   :  { %v4567_v52 = vadd.f32 %v584_v17, %v4525_v16  ;;  %v586_v21 = vpop.f32.mrb[21].mxu0  ;;  %v4573_v32 = vadd.f32 %v657_v22, %v4533_v34  ;;  %v659_v47 = vpop.f32.mrb[21].mxu1 }
 0x136   :  { %v4570_v35 = vadd.f32 %v586_v21, %v4529_v41  ;;  %v588_v59 = vpop.f32.mrb[22].mxu0  ;;  %v4579_v19 = vadd.f32 %v659_v47, %v4538_v30  ;;  %v661_v60 = vpop.f32.mrb[22].mxu1 }
 0x137   :  { %5618 = vst [vmem:[#allocation88_spill] sm:$0xff] %v4567_v52  ;;  %5620 = vst [vmem:[#allocation90_spill] sm:$0xff] %v4573_v32  ;;  %v4576_v23 = vadd.f32 %v588_v59, %v4525_v16  ;;  %v590_v20 = vpop.f32.mrb[23].mxu0  ;;  %v4585_v36 = vadd.f32 %v661_v60, %v4533_v34  ;;  %v663_v21 = vpop.f32.mrb[23].mxu1 }
 0x138   :  { %5619 = vst [vmem:[#allocation89_spill] sm:$0xff] %v4570_v35  ;;  %5622 = vst [vmem:[#allocation92_spill] sm:$0xff] %v4579_v19  ;;  %v4582_v17 = vadd.f32 %v590_v20, %v4529_v41  ;;  %v4588_v31 = vadd.f32 %v663_v21, %v4538_v30 }
 0x139   :  { %5621 = vst [vmem:[#allocation91_spill] sm:$0xff] %v4576_v23  ;;  %5624 = vst [vmem:[#allocation94_spill] sm:$0xff] %v4585_v36 }
 0x13a   :  { %5623 = vst [vmem:[#allocation93_spill] sm:$0xff] %v4582_v17  ;;  %5625 = vst [vmem:[#allocation95_spill] sm:$0xff] %v4588_v31 }
 0x13c   :  { %v594_v22 = vpop.f32.mrb[24].mxu0  ;;  %v667_v32 = vpop.f32.mrb[24].mxu1 }
 0x13d   :  { %v4591_v35 = vadd.f32 %v594_v22, %v4525_v16  ;;  %v596_v59 = vpop.f32.mrb[25].mxu0  ;;  %v4597_v20 = vadd.f32 %v667_v32, %v4533_v34  ;;  %v669_v52 = vpop.f32.mrb[25].mxu1 }
 0x13e   :  { %v4594_v47 = vadd.f32 %v596_v59, %v4529_v41  ;;  %v598_v19 = vpop.f32.mrb[26].mxu0  ;;  %v4603_v21 = vadd.f32 %v669_v52, %v4538_v30  ;;  %v671_v31 = vpop.f32.mrb[26].mxu1 }
 0x13f   :  { %5626 = vst [vmem:[#allocation96_spill] sm:$0xff] %v4591_v35  ;;  %5628 = vst [vmem:[#allocation98_spill] sm:$0xff] %v4597_v20  ;;  %v4600_v60 = vadd.f32 %v598_v19, %v4525_v16  ;;  %v600_v17 = vpop.f32.mrb[27].mxu0  ;;  %v4609_v36 = vadd.f32 %v671_v31, %v4533_v34  ;;  %v673_v59 = vpop.f32.mrb[27].mxu1 }
 0x140   :  { %5627 = vst [vmem:[#allocation97_spill] sm:$0xff] %v4594_v47  ;;  %5630 = vst [vmem:[#allocation100_spill] sm:$0xff] %v4603_v21  ;;  %v4606_v22 = vadd.f32 %v600_v17, %v4529_v41  ;;  %v4612_v23 = vadd.f32 %v673_v59, %v4538_v30 }
 0x141   :  { %5629 = vst [vmem:[#allocation99_spill] sm:$0xff] %v4600_v60  ;;  %5632 = vst [vmem:[#allocation102_spill] sm:$0xff] %v4609_v36 }
 0x142   :  { %5631 = vst [vmem:[#allocation101_spill] sm:$0xff] %v4606_v22  ;;  %5633 = vst [vmem:[#allocation103_spill] sm:$0xff] %v4612_v23  ;;  %v265_v22 = vadd.f32 %v4413_v38, %v4423_v27 }
 0x144   :  { %v604_v32 = vpop.f32.mrb[28].mxu0  ;;  %v677_v20 = vpop.f32.mrb[28].mxu1 }
 0x145   :  { %v4615_v47 = vadd.f32 %v604_v32, %v4525_v16  ;;  %v606_v19 = vpop.f32.mrb[29].mxu0  ;;  %v4621_v17 = vadd.f32 %v677_v20, %v4533_v34  ;;  %v679_v35 = vpop.f32.mrb[29].mxu1  ;;  %v263_v32 = vadd.f32 %v4403_v37, %v4411_v58  ;;  %v338_v20 = vadd.f32 %v4425_v24, %v4419_v28 }
 0x146   :  { %v4618_v52 = vadd.f32 %v606_v19, %v4529_v41  ;;  %v608_v21 = vpop.f32.mrb[30].mxu0  ;;  %v4624_v26 = vadd.f32 %v679_v35, %v4538_v30  ;;  %v681_v59 = vpop.f32.mrb[30].mxu1  ;;  %v336_v19 = vadd.f32 %v4415_v33, %v4407_v39 }
 0x147   :  { %5634 = vst [vmem:[#allocation104_spill] sm:$0xff] %v4615_v47  ;;  %5636 = vst [vmem:[#allocation106_spill] sm:$0xff] %v4621_v17  ;;  %v610_v31 = vpop.f32.mrb[31].mxu0  ;;  %v683_v23 = vpop.f32.mrb[31].mxu1 }
 0x148   :  { %5635 = vst [vmem:[#allocation105_spill] sm:$0xff] %v4618_v52  ;;  %5637 = vst [vmem:[#allocation107_spill] sm:$0xff] %v4624_v26 }
 0x14c   :  { %v992_v36 = vpop.f32.mrb[32].mxu0  ;;  %v1033_v52 = vpop.f32.mrb[32].mxu1 }
 0x14d   :  { %v1040_v60 = vadd.f32 %v992_v36, %v263_v32  ;;  %v994_v17 = vpop.f32.mrb[33].mxu0  ;;  %v1042_v35 = vadd.f32 %v1033_v52, %v336_v19  ;;  %v1035_v47 = vpop.f32.mrb[33].mxu1 }
 0x14e   :  { %v1041_v26 = vadd.f32 %v994_v17, %v265_v22  ;;  %v996_v15 = vpop.f32.mrb[34].mxu0  ;;  %v1043_v13 = vadd.f32 %v1035_v47, %v338_v20  ;;  %v1037_v58 = vpop.f32.mrb[34].mxu1  ;;  %v684_v20 = vadd.f32 %v683_v23, %v4538_v30 }
 0x14f   :  { %v1044_v14 = vmul.f32 0.5, %v1040_v60  ;;  %v997_v37 = vpop.f32.mrb[35].mxu0  ;;  %v1038_v27 = vpop.f32.mrb[35].mxu1 }
 0x150   :  { %v1048_v12 = vmul.f32 0.5, %v1041_v26  ;;  %v1053_v33 = vmul.f32 0.5, %v1043_v13  ;;  %v611_v13 = vadd.f32 %v610_v31, %v4529_v41  ;;  %v4640_v32 = vpop.permute.xlu0 %1066 }
 0x151   :  { %3587 = vtanh.f32 %v1044_v14  ;;  %v682_v14 = vadd.f32 %v681_v59, %v4533_v34  ;;  %vm1068_vm11 = vcmp.eq.s32.totalorder %v4640_v32, 1 }
 0x152   :  { %3589 = vtanh.f32 %v1048_v12  ;;  %v609_v12 = vadd.f32 %v608_v21, %v4525_v16  ;;  %vm3448_vm12 = vmpackc.low %vm1068_vm11, %vm1068_vm11 }
 0x153   :  { %3591 = vtanh.f32 %v1042_v35 }
 0x154   :  { %3593 = vtanh.f32 %v1053_v33 }
 0x15b   :  { %v3588_v38 = vpop.eup %3587 }
 0x15c   :  { %v3590_v39 = vpop.eup %3589  ;;  %v1046_v24 = vmul.f32 0.5, %v3588_v38 }
 0x15d   :  { %v1050_v28 = vmul.f32 0.5, %v3590_v39  ;;  %v3592_v52 = vpop.eup %3591 }
 0x15e   :  { %v1047_v36 = vadd.f32 0.5, %v1046_v24  ;;  %v3594_v26 = vpop.eup %3593 }
 0x15f   :  { %v1051_v22 = vadd.f32 0.5, %v1050_v28  ;;  %v1055_v47 = vmul.f32 0.5, %v3594_v26 }
 0x160   :  { %v1058_v17 = vmul.f32 %v3592_v52, %v1047_v36 }
 0x161   :  { %v1057_v15 = vmul.f32 0.0, %v1051_v22  ;;  %v1056_v27 = vadd.f32 0.5, %v1055_v47 }
 0x163   :  { %v4634_v60 = vadd.f32 %v1058_v17, %v1057_v15 }
 0x165   :  { %3595 = vtanh.f32 %v4634_v60 }
 0x16c   :  { %v1275_v19 = vpop.f32.mrb[36].mxu0  ;;  %v1316_v37 = vpop.f32.mrb[36].mxu1 }
 0x16d   :  { %v1323_v35 = vadd.f32 %v1275_v19, %v609_v12  ;;  %v1277_v58 = vpop.f32.mrb[37].mxu0  ;;  %v1325_v33 = vadd.f32 %v1316_v37, %v682_v14  ;;  %v1318_v39 = vpop.f32.mrb[37].mxu1  ;;  %v5638_v19 = vld [vmem:[#allocation43_spill] sm:$0xff]  ;;  %v5640_v37 = vld [vmem:[#allocation45_spill] sm:$0xff] }
 0x16e   :  { %v1324_v38 = vadd.f32 %v1277_v58, %v611_v13  ;;  %v1279_v24 = vpop.f32.mrb[38].mxu0  ;;  %v1326_v16 = vadd.f32 %v1318_v39, %v684_v20  ;;  %v1320_v41 = vpop.f32.mrb[38].mxu1  ;;  %v5639_v20 = vld [vmem:[#allocation44_spill] sm:$0xff]  ;;  %v5641_v58 = vld [vmem:[#allocation46_spill] sm:$0xff]  ;;  %v5644_v39 = vld [vmem:[#allocation49_spill] sm:$0xff] }
 0x16f   :  { %v3596_v28 = vpop.eup %3595  ;;  %v1328_v36 = vmul.f32 0.5, %v1323_v35  ;;  %v1280_v21 = vpop.f32.mrb[39].mxu0 }
 0x170   :  { %v4643_v31 = vmul.f32 %v3596_v28, %v1056_v27  ;;  %v1332_v34 = vmul.f32 0.5, %v1324_v38  ;;  %v1321_v59 = vpop.f32.mrb[39].mxu1  ;;  %v1337_v23 = vmul.f32 0.5, %v1326_v16  ;;  %v5642_v27 = vld [vmem:[#allocation47_spill] sm:$0xff]  ;;  %v5645_v28 = vld [vmem:[#allocation50_spill] sm:$0xff]  ;;  %v4684_v41 = vpop.permute.xlu0 %1350 }
 0x171   :  { %3597 = vtanh.f32 %v1328_v36  ;;  %v5646_v16 = vld [vmem:[#allocation51_spill] sm:$0xff]  ;;  %vm1352_vm13 = vcmp.eq.s32.totalorder %v4684_v41, 1 }
 0x172   :  { %v3449_v30 = vpack.c.bf16 %v4643_v31, %v4643_v31  ;;  %3599 = vtanh.f32 %v1332_v34  ;;  %vm3454_vm14 = vmpackc.low %vm1352_vm13, %vm1352_vm13  ;;  %v4843_v41 = vld [vmem:[#allocation13 + $0x6c] ss:$16 sps:$4 sm:$0xff]  }
 0x173   :  { %3601 = vtanh.f32 %v1325_v33  ;;  %v5643_v33 = vld [vmem:[#allocation48_spill] sm:$0xff]  ;;  %5680 = vst [vmem:[#allocation47_spill] sm:$0xff] %v4843_v41 }
 0x174   :  { %3450 = vmatmul.mubr.msk.bf16.vlgmr.msra.gmra.mrb[40].mxu0 %vm3448_vm12, %v3449_v30  ;;  %3453 = vmatmul.mubr.msk.bf16.vlgmr.msra.gmra.mrb[40].mxu1 %vm3448_vm12, %v3449_v30  ;;  %3603 = vtanh.f32 %v1337_v23  ;;  %v4693_v30 = vld [vmem:[#allocation13 + $0x4] ss:$16 sps:$4 sm:$0xff]   ;;  %v4696_v23 = vld [vmem:[#allocation13 + $0xc] ss:$16 sps:$4 sm:$0xff]  }
 0x175   :  { %1492 = vmatpush1.bf16.msra.mxu0 %v4244_v40  ;;  %1533 = vmatpush1.bf16.msra.mxu1 %v4251_v42 }
 0x176   :  { %1493 = vmatprep.subr.bf16.mxu0 %v4253_v43  ;;  %1534 = vmatprep.subr.bf16.mxu1 %v4257_v44 }
 0x177   :  { %1523 = vmatprep.mubr.bf16.mxu0 %v5577_v18  ;;  %1564 = vmatprep.mubr.bf16.mxu1 %v5577_v18 }
 0x179   :  { %1494 = vmatpush1.bf16.msra.mxu0 %v4263_v46  ;;  %1535 = vmatpush1.bf16.msra.mxu1 %v4270_v48 }
 0x17a   :  { %1495 = vmatprep.subr.bf16.mxu0 %v4272_v49  ;;  %1536 = vmatprep.subr.bf16.mxu1 %v4276_v50 }
 0x17b   :  { %v3598_v52 = vpop.eup %3597 }
 0x17c   :  { %v3600_v22 = vpop.eup %3599  ;;  %v1330_v17 = vmul.f32 0.5, %v3598_v52  ;;  %v5658_v52 = vld [vmem:[#allocation33_spill] sm:$0xff] }
 0x17d   :  { %v1334_v15 = vmul.f32 0.5, %v3600_v22  ;;  %1496 = vmatpush1.bf16.msra.mxu0 %v4282_v51  ;;  %1537 = vmatpush1.bf16.msra.mxu1 %v4289_v53  ;;  %v3602_v47 = vpop.eup %3601  ;;  %v5659_v22 = vld [vmem:[#allocation34_spill] sm:$0xff] }
 0x17e   :  { %v1331_v26 = vadd.f32 0.5, %v1330_v17  ;;  %1497 = vmatprep.subr.bf16.mxu0 %v4291_v54  ;;  %1538 = vmatprep.subr.bf16.mxu1 %v4294_v55  ;;  %v3604_v38 = vpop.eup %3603  ;;  %v5660_v17 = vld [vmem:[#allocation35_spill] sm:$0xff] }
 0x17f   :  { %v1335_v12 = vadd.f32 0.5, %v1334_v15  ;;  %v1339_v24 = vmul.f32 0.5, %v3604_v38  ;;  %v5661_v15 = vld [vmem:[#allocation36_spill] sm:$0xff]  ;;  %v5667_v38 = vld [vmem:[#allocation42_spill] sm:$0xff] }
 0x180   :  { %v1342_v13 = vmul.f32 %v3602_v47, %v1331_v26  ;;  %v5662_v26 = vld [vmem:[#allocation37_spill] sm:$0xff]  ;;  %v5663_v47 = vld [vmem:[#allocation38_spill] sm:$0xff] }
 0x181   :  { %v1341_v14 = vmul.f32 0.0, %v1335_v12  ;;  %1498 = vmatpush1.bf16.msra.mxu0 %v4298_v56  ;;  %1539 = vmatpush1.bf16.msra.mxu1 %v4302_v57  ;;  %v1340_v36 = vadd.f32 0.5, %v1339_v24  ;;  %v5664_v12 = vld [vmem:[#allocation39_spill] sm:$0xff] }
 0x182   :  { %1499 = vmatprep.subr.bf16.mxu0 %v5638_v19  ;;  %1540 = vmatprep.subr.bf16.mxu1 %v5639_v20 }
 0x183   :  { %v4669_v35 = vadd.f32 %v1342_v13, %v1341_v14  ;;  %v5665_v13 = vld [vmem:[#allocation40_spill] sm:$0xff]  ;;  %v5666_v14 = vld [vmem:[#allocation41_spill] sm:$0xff] }
 0x185   :  { %3605 = vtanh.f32 %v4669_v35  ;;  %1500 = vmatpush1.bf16.msra.mxu0 %v5640_v37  ;;  %1541 = vmatpush1.bf16.msra.mxu1 %v5641_v58 }
 0x186   :  { %1501 = vmatprep.subr.bf16.mxu0 %v5642_v27  ;;  %1542 = vmatprep.subr.bf16.mxu1 %v5643_v33 }
 0x189   :  { %1502 = vmatpush1.bf16.msra.mxu0 %v5644_v39  ;;  %1543 = vmatpush1.bf16.msra.mxu1 %v4327_v25 }
 0x18a   :  { %1503 = vmatprep.subr.bf16.mxu0 %v4329_v45  ;;  %1544 = vmatprep.subr.bf16.mxu1 %v5645_v28 }
 0x18d   :  { %1504 = vmatpush1.bf16.msra.mxu0 %v4335_v61  ;;  %1545 = vmatpush1.bf16.msra.mxu1 %v4339_v62 }
 0x18e   :  { %1505 = vmatprep.subr.bf16.mxu0 %v4341_v8  ;;  %1546 = vmatprep.subr.bf16.mxu1 %v5646_v16 }
 0x18f   :  { %v3606_v21 = vpop.eup %3605 }
 0x190   :  { %v4687_v34 = vmul.f32 %v3606_v21, %v1340_v36  ;;  %v5668_v21 = vld [vmem:[#allocation52_spill] sm:$0xff] }
 0x191   :  { %1506 = vmatpush1.bf16.msra.mxu0 %v4347_v29  ;;  %1547 = vmatpush1.bf16.msra.mxu1 %v4351_v0 }
 0x192   :  { %v3455_v59 = vpack.c.bf16 %v4687_v34, %v4687_v34  ;;  %1616 = vmatprep.subr.bf16.mxu0 %v4693_v30  ;;  %1657 = vmatprep.subr.bf16.mxu1 %v4696_v23 }
 0x194   :  { %3456 = vmatmul.mubr.msk.bf16.vlgmr.msra.gmra.mrb[44].mxu0 %vm3454_vm14, %v3455_v59  ;;  %3459 = vmatmul.mubr.msk.bf16.vlgmr.msra.gmra.mrb[44].mxu1 %vm3454_vm14, %v3455_v59 }
 0x195   :  { %1617 = vmatpush1.bf16.msra.mxu0 %v4100_v63  ;;  %1658 = vmatpush1.bf16.msra.mxu1 %v4102_v1  ;;  %v5647_v63 = vld [vmem:[#allocation22_spill] sm:$0xff]  ;;  %v5648_v1 = vld [vmem:[#allocation23_spill] sm:$0xff] }
 0x196   :  { %1618 = vmatprep.subr.bf16.mxu0 %v4104_v2  ;;  %1659 = vmatprep.subr.bf16.mxu1 %v4106_v3  ;;  %v5649_v2 = vld [vmem:[#allocation24_spill] sm:$0xff]  ;;  %v5650_v3 = vld [vmem:[#allocation25_spill] sm:$0xff] }
 0x197   :  { %1648 = vmatprep.mubr.bf16.mxu0 %v5577_v18  ;;  %1689 = vmatprep.mubr.bf16.mxu1 %v5577_v18 }
 0x199   :  { %1619 = vmatpush1.bf16.msra.mxu0 %v4111_v4  ;;  %1660 = vmatpush1.bf16.msra.mxu1 %v4113_v5  ;;  %v5651_v4 = vld [vmem:[#allocation26_spill] sm:$0xff]  ;;  %v5652_v5 = vld [vmem:[#allocation27_spill] sm:$0xff] }
 0x19a   :  { %1620 = vmatprep.subr.bf16.mxu0 %v4117_v6  ;;  %1661 = vmatprep.subr.bf16.mxu1 %v4121_v7  ;;  %v5653_v6 = vld [vmem:[#allocation28_spill] sm:$0xff]  ;;  %v5654_v7 = vld [vmem:[#allocation29_spill] sm:$0xff] }
 0x19d   :  { %1621 = vmatpush1.bf16.msra.mxu0 %v4127_v9  ;;  %1662 = vmatpush1.bf16.msra.mxu1 %v4130_v10  ;;  %v5655_v9 = vld [vmem:[#allocation30_spill] sm:$0xff]  ;;  %v5656_v10 = vld [vmem:[#allocation31_spill] sm:$0xff] }
 0x19e   :  { %1622 = vmatprep.subr.bf16.mxu0 %v4134_v11  ;;  %1663 = vmatprep.subr.bf16.mxu1 %v5647_v63  ;;  %v5657_v11 = vld [vmem:[#allocation32_spill] sm:$0xff]  ;;  %v5669_v63 = vld [vmem:[#allocation54_spill] sm:$0xff] }
 0x1a1   :  { %1623 = vmatpush1.bf16.msra.mxu0 %v5648_v1  ;;  %1664 = vmatpush1.bf16.msra.mxu1 %v5649_v2 }
 0x1a2   :  { %1624 = vmatprep.subr.bf16.mxu0 %v5650_v3  ;;  %1665 = vmatprep.subr.bf16.mxu1 %v5651_v4  ;;  %v5670_v4 = vld [vmem:[#allocation53_spill] sm:$0xff] }
 0x1a5   :  { %1625 = vmatpush1.bf16.msra.mxu0 %v5652_v5  ;;  %1666 = vmatpush1.bf16.msra.mxu1 %v5653_v6  ;;  %v5671_v6 = vld [vmem:[#allocation55_spill] sm:$0xff] }
 0x1a6   :  { %1626 = vmatprep.subr.bf16.mxu0 %v5654_v7  ;;  %1667 = vmatprep.subr.bf16.mxu1 %v5655_v9 }
 0x1a9   :  { %1627 = vmatpush1.bf16.msra.mxu0 %v5656_v10  ;;  %1668 = vmatpush1.bf16.msra.mxu1 %v5657_v11 }
 0x1aa   :  { %1628 = vmatprep.subr.bf16.mxu0 %v5658_v52  ;;  %1669 = vmatprep.subr.bf16.mxu1 %v5659_v22 }
 0x1ad   :  { %1629 = vmatpush1.bf16.msra.mxu0 %v5660_v17  ;;  %1670 = vmatpush1.bf16.msra.mxu1 %v5661_v15 }
 0x1ae   :  { %1630 = vmatprep.subr.bf16.mxu0 %v5662_v26  ;;  %1671 = vmatprep.subr.bf16.mxu1 %v5663_v47 }
 0x1b1   :  { %1631 = vmatpush1.bf16.msra.mxu0 %v5664_v12  ;;  %1672 = vmatpush1.bf16.msra.mxu1 %v5665_v13 }
 0x1b2   :  { %1741 = vmatprep.subr.bf16.mxu0 %v5666_v14  ;;  %1782 = vmatprep.subr.bf16.mxu1 %v5667_v38 }
 0x247   :  { %v1400_v24 = vpop.f32.mrb[40].mxu0  ;;  %v1441_v36 = vpop.f32.mrb[40].mxu1 }
 0x248   :  { %v1448_v59 = vadd.f32 %v1400_v24, %v5668_v21  ;;  %v1450_v1 = vadd.f32 %v1441_v36, %v5669_v63  ;;  %v1402_v2 = vpop.f32.mrb[41].mxu0  ;;  %v1443_v3 = vpop.f32.mrb[41].mxu1  ;;  %v1069_v36 = vsel %vm1068_vm11, %v4634_v60, 0.0 }
 0x249   :  { %v1449_v5 = vadd.f32 %v1402_v2, %v5670_v4  ;;  %v1451_v7 = vadd.f32 %v1443_v3, %v5671_v6  ;;  %v1404_v9 = vpop.f32.mrb[42].mxu0  ;;  %v1445_v10 = vpop.f32.mrb[42].mxu1 }
 0x24a   :  { %v1453_v11 = vmul.f32 0.5, %v1448_v59  ;;  %v1405_v52 = vpop.f32.mrb[43].mxu0  ;;  %v1446_v22 = vpop.f32.mrb[43].mxu1  ;;  %v5673_v10 = vld [vmem:[#allocation106_spill] sm:$0xff] }
 0x24b   :  { %v1457_v17 = vmul.f32 0.5, %v1449_v5  ;;  %v1462_v15 = vmul.f32 0.5, %v1451_v7  ;;  %v1476_v63 = vpop.permute.xlu1 %1475  ;;  %v5672_v7 = vld [vmem:[#allocation104_spill] sm:$0xff] }
 0x24c   :  { %3607 = vtanh.f32 %v1453_v11  ;;  %vm1477_vm15 = vcmp.eq.s32.totalorder %v1476_v63, 1 }
 0x24d   :  { %3609 = vtanh.f32 %v1457_v17  ;;  %v5674_v17 = vld [vmem:[#allocation105_spill] sm:$0xff] }
 0x24e   :  { %3611 = vtanh.f32 %v1450_v1 }
 0x24f   :  { %3613 = vtanh.f32 %v1462_v15 }
 0x256   :  { %v3608_v26 = vpop.eup %3607 }
 0x257   :  { %v3610_v47 = vpop.eup %3609  ;;  %v1455_v12 = vmul.f32 0.5, %v3608_v26  ;;  %v5675_v26 = vld [vmem:[#allocation107_spill] sm:$0xff] }
 0x258   :  { %v1459_v13 = vmul.f32 0.5, %v3610_v47  ;;  %v3612_v38 = vpop.eup %3611 }
 0x259   :  { %v1456_v14 = vadd.f32 0.5, %v1455_v12  ;;  %v3614_v3 = vpop.eup %3613 }
 0x25a   :  { %v1460_v24 = vadd.f32 0.5, %v1459_v13  ;;  %v1464_v4 = vmul.f32 0.5, %v3614_v3 }
 0x25b   :  { %v1467_v21 = vmul.f32 %v3612_v38, %v1456_v14 }
 0x25c   :  { %v1466_v59 = vmul.f32 %v1460_v24, %v1069_v36  ;;  %v1465_v60 = vadd.f32 0.5, %v1464_v4 }
 0x25e   :  { %v1468_v2 = vadd.f32 %v1467_v21, %v1466_v59 }
 0x260   :  { %3615 = vtanh.f32 %v1468_v2  ;;  %v4744_v1 = vsel %vm1477_vm15, %v1468_v2, %v1069_v36  ;;  %v1070_v2 = vsel %vm1068_vm11, %v4643_v31, 0.0 }
 0x267   :  { %v1525_v5 = vpop.f32.mrb[44].mxu0  ;;  %v1566_v6 = vpop.f32.mrb[44].mxu1 }
 0x268   :  { %v1573_v9 = vadd.f32 %v1525_v5, %v5672_v7  ;;  %v1575_v11 = vadd.f32 %v1566_v6, %v5673_v10  ;;  %v1527_v52 = vpop.f32.mrb[45].mxu0  ;;  %v1568_v22 = vpop.f32.mrb[45].mxu1  ;;  %v4852_v10 = vld [vmem:[#allocation13 + $0x84] ss:$16 sps:$4 sm:$0xff]  }
 0x269   :  { %v1574_v15 = vadd.f32 %v1527_v52, %v5674_v17  ;;  %v1576_v47 = vadd.f32 %v1568_v22, %v5675_v26  ;;  %v1529_v12 = vpop.f32.mrb[46].mxu0  ;;  %v1570_v13 = vpop.f32.mrb[46].mxu1  ;;  %5683 = vst [vmem:[#allocation50_spill] sm:$0xff] %v4852_v10  ;;  %v4858_v52 = vld [vmem:[#allocation13 + $0x80] ss:$16 sps:$4 sm:$0xff]  }
 0x26a   :  { %v3616_v14 = vpop.eup %3615  ;;  %v1578_v38 = vmul.f32 0.5, %v1573_v9  ;;  %v1530_v24 = vpop.f32.mrb[47].mxu0  ;;  %v4849_v9 = vld [vmem:[#allocation13 + $0x68] ss:$16 sps:$4 sm:$0xff]   ;;  %5685 = vst [vmem:[#allocation22_spill] sm:$0xff] %v4858_v52 }
 0x26b   :  { %v1571_v36 = vpop.f32.mrb[47].mxu1  ;;  %v1470_v21 = vmul.f32 %v3616_v14, %v1465_v60  ;;  %v1582_v59 = vmul.f32 0.5, %v1574_v15  ;;  %v1587_v32 = vmul.f32 0.5, %v1576_v47  ;;  %5682 = vst [vmem:[#allocation49_spill] sm:$0xff] %v4849_v9  ;;  %v4861_v22 = vld [vmem:[#allocation13 + $0x88] ss:$16 sps:$4 sm:$0xff]  }
 0x26c   :  { %3617 = vtanh.f32 %v1578_v38  ;;  %5686 = vst [vmem:[#allocation23_spill] sm:$0xff] %v4861_v22  ;;  %v4864_v60 = vld [vmem:[#allocation13 + $0xa4] ss:$16 sps:$4 sm:$0xff]   ;;  %v4867_v17 = vld [vmem:[#allocation13 + $0xac] ss:$16 sps:$4 sm:$0xff]  }
 0x26d   :  { %v4754_v3 = vsel %vm1477_vm15, %v1470_v21, %v1070_v2  ;;  %v1480_v4 = vsel %vm1477_vm15, %v1470_v21, 0.0  ;;  %3619 = vtanh.f32 %v1582_v59  ;;  %5687 = vst [vmem:[#allocation24_spill] sm:$0xff] %v4864_v60  ;;  %5688 = vst [vmem:[#allocation25_spill] sm:$0xff] %v4867_v17  ;;  %v4870_v15 = vld [vmem:[#allocation13 + $0xa0] ss:$16 sps:$4 sm:$0xff]  }
 0x26e   :  { %v1615_v5 = vpack.c.bf16 %v4754_v3, %v4754_v3  ;;  %v3405_v6 = vpack.c.bf16 %v1480_v4, %v1070_v2  ;;  %3621 = vtanh.f32 %v1575_v11  ;;  %v4855_v11 = vld [vmem:[#allocation13 + $0x8c] ss:$16 sps:$4 sm:$0xff]   ;;  %5689 = vst [vmem:[#allocation26_spill] sm:$0xff] %v4870_v15  ;;  %v4873_v26 = vld [vmem:[#allocation13 + $0xa8] ss:$16 sps:$4 sm:$0xff]  }
 0x26f   :  { %3623 = vtanh.f32 %v1587_v32  ;;  %5684 = vst [vmem:[#allocation51_spill] sm:$0xff] %v4855_v11  ;;  %5690 = vst [vmem:[#allocation27_spill] sm:$0xff] %v4873_v26  ;;  %v4876_v47 = vld [vmem:[#allocation13 + $0xc4] ss:$16 sps:$4 sm:$0xff]   ;;  %v4879_v12 = vld [vmem:[#allocation13 + $0xcc] ss:$16 sps:$4 sm:$0xff]  }
 0x270   :  { %3406 = vst [vmem:[#allocation15] sm:$0xff] %v3405_v6   ;;  %1649 = vmatmul.mubr.bf16.vlgmr.msra.gmra.mrb[48].mxu0 %v1615_v5  ;;  %1690 = vmatmul.mubr.bf16.vlgmr.msra.gmra.mrb[48].mxu1 %v1615_v5  ;;  %5691 = vst [vmem:[#allocation28_spill] sm:$0xff] %v4876_v47  ;;  %v4882_v13 = vld [vmem:[#allocation13 + $0xc0] ss:$16 sps:$4 sm:$0xff]   ;;  %v4885_v14 = vld [vmem:[#allocation13 + $0xc8] ss:$16 sps:$4 sm:$0xff]  }
 0x271   :  { %1742 = vmatpush1.bf16.msra.mxu0 %v4244_v40  ;;  %1783 = vmatpush1.bf16.msra.mxu1 %v4251_v42  ;;  %5692 = vst [vmem:[#allocation29_spill] sm:$0xff] %v4879_v12  ;;  %5693 = vst [vmem:[#allocation30_spill] sm:$0xff] %v4882_v13  ;;  %v4888_v38 = vld [vmem:[#allocation13 + $0xe4] ss:$16 sps:$4 sm:$0xff]   ;;  %v4891_v24 = vld [vmem:[#allocation13 + $0xec] ss:$16 sps:$4 sm:$0xff]  }
 0x272   :  { %1743 = vmatprep.subr.bf16.mxu0 %v4253_v43  ;;  %1784 = vmatprep.subr.bf16.mxu1 %v4257_v44  ;;  %5694 = vst [vmem:[#allocation31_spill] sm:$0xff] %v4885_v14  ;;  %5695 = vst [vmem:[#allocation32_spill] sm:$0xff] %v4888_v38  ;;  %v4894_v36 = vld [vmem:[#allocation13 + $0xe0] ss:$16 sps:$4 sm:$0xff]   ;;  %v4897_v21 = vld [vmem:[#allocation13 + $0xe8] ss:$16 sps:$4 sm:$0xff]  }
 0x273   :  { %1773 = vmatprep.mubr.bf16.mxu0 %v5577_v18  ;;  %1814 = vmatprep.mubr.bf16.mxu1 %v5577_v18  ;;  %5696 = vst [vmem:[#allocation33_spill] sm:$0xff] %v4891_v24  ;;  %5697 = vst [vmem:[#allocation34_spill] sm:$0xff] %v4894_v36  ;;  %v4900_v59 = vld [vmem:[#allocation13 + $0x104] ss:$16 sps:$4 sm:$0xff]   ;;  %v4903_v2 = vld [vmem:[#allocation13 + $0x10c] ss:$16 sps:$4 sm:$0xff]  }
 0x274   :  { %5698 = vst [vmem:[#allocation35_spill] sm:$0xff] %v4897_v21  ;;  %5699 = vst [vmem:[#allocation36_spill] sm:$0xff] %v4900_v59  ;;  %v5701_v6 = vld [vmem:[#allocation56_spill] sm:$0xff] }
 0x275   :  { %1744 = vmatpush1.bf16.msra.mxu0 %v4263_v46  ;;  %1785 = vmatpush1.bf16.msra.mxu1 %v4270_v48  ;;  %v1353_v46 = vsel %vm1352_vm13, %v4669_v35, 0.0  ;;  %v4817_v35 = vld [vmem:[#allocation13 + $0x2c] ss:$16 sps:$4 sm:$0xff]   ;;  %5700 = vst [vmem:[#allocation37_spill] sm:$0xff] %v4903_v2 }
 0x276   :  { %v3618_v31 = vpop.eup %3617  ;;  %1745 = vmatprep.subr.bf16.mxu0 %v4272_v49  ;;  %1786 = vmatprep.subr.bf16.mxu1 %v4276_v50  ;;  %v1601_v50 = vpop.permute.xlu1 %1600 }
 0x277   :  { %v3620_v40 = vpop.eup %3619  ;;  %v1580_v42 = vmul.f32 0.5, %v3618_v31  ;;  %vm1602_vm0 = vcmp.eq.s32.totalorder %v1601_v50, 1  ;;  %v5702_v31 = vld [vmem:[#allocation58_spill] sm:$0xff] }
 0x278   :  { %v1584_v63 = vmul.f32 0.5, %v3620_v40  ;;  %v3622_v44 = vpop.eup %3621 }
 0x279   :  { %v1581_v43 = vadd.f32 0.5, %v1580_v42  ;;  %1746 = vmatpush1.bf16.msra.mxu0 %v4282_v51  ;;  %1787 = vmatpush1.bf16.msra.mxu1 %v4289_v53 }
 0x27a   :  { %v1585_v7 = vadd.f32 0.5, %v1584_v63  ;;  %1747 = vmatprep.subr.bf16.mxu0 %v4291_v54  ;;  %1788 = vmatprep.subr.bf16.mxu1 %v4294_v55  ;;  %v3624_v54 = vpop.eup %3623 }
 0x27b   :  { %v1592_v48 = vmul.f32 %v3622_v44, %v1581_v43  ;;  %v1589_v55 = vmul.f32 0.5, %v3624_v54  ;;  %v5703_v43 = vld [vmem:[#allocation57_spill] sm:$0xff] }
 0x27c   :  { %v1591_v49 = vmul.f32 %v1585_v7, %v1353_v46  ;;  %v5704_v7 = vld [vmem:[#allocation60_spill] sm:$0xff] }
 0x27d   :  { %1748 = vmatpush1.bf16.msra.mxu0 %v4298_v56  ;;  %1789 = vmatpush1.bf16.msra.mxu1 %v4302_v57  ;;  %v1590_v56 = vadd.f32 0.5, %v1589_v55 }
 0x27e   :  { %v1593_v51 = vadd.f32 %v1592_v48, %v1591_v49  ;;  %1749 = vmatprep.subr.bf16.mxu0 %v5638_v19  ;;  %1790 = vmatprep.subr.bf16.mxu1 %v5639_v20  ;;  %v1354_v20 = vsel %vm1352_vm13, %v4687_v34, 0.0  ;;  %v4846_v34 = vld [vmem:[#allocation13 + $0x60] ss:$16 sps:$4 sm:$0xff]  }
 0x27f   :  { %5681 = vst [vmem:[#allocation48_spill] sm:$0xff] %v4846_v34 }
 0x280   :  { %3625 = vtanh.f32 %v1593_v51  ;;  %v4781_v53 = vsel %vm1602_vm0, %v1593_v51, %v1353_v46 }
 0x281   :  { %1750 = vmatpush1.bf16.msra.mxu0 %v5640_v37  ;;  %1791 = vmatpush1.bf16.msra.mxu1 %v5641_v58  ;;  %v4822_v37 = vld [vmem:[#allocation13 + $0x20] ss:$16 sps:$4 sm:$0xff]   ;;  %v4825_v58 = vld [vmem:[#allocation13 + $0x28] ss:$16 sps:$4 sm:$0xff]  }
 0x282   :  { %1751 = vmatprep.subr.bf16.mxu0 %v5642_v27  ;;  %1792 = vmatprep.subr.bf16.mxu1 %v5643_v33  ;;  %v4828_v27 = vld [vmem:[#allocation13 + $0x44] ss:$16 sps:$4 sm:$0xff]   ;;  %v4831_v33 = vld [vmem:[#allocation13 + $0x4c] ss:$16 sps:$4 sm:$0xff]  }
 0x283   :  { %5676 = vst [vmem:[#allocation43_spill] sm:$0xff] %v4831_v33 }
 0x285   :  { %1752 = vmatpush1.bf16.msra.mxu0 %v5644_v39  ;;  %1793 = vmatpush1.bf16.msra.mxu1 %v4327_v25  ;;  %v4834_v39 = vld [vmem:[#allocation13 + $0x40] ss:$16 sps:$4 sm:$0xff]  }
 0x286   :  { %1753 = vmatprep.subr.bf16.mxu0 %v4329_v45  ;;  %1794 = vmatprep.subr.bf16.mxu1 %v5645_v28  ;;  %5677 = vst [vmem:[#allocation44_spill] sm:$0xff] %v4834_v39  ;;  %v4837_v28 = vld [vmem:[#allocation13 + $0x48] ss:$16 sps:$4 sm:$0xff]  }
 0x287   :  { %5678 = vst [vmem:[#allocation45_spill] sm:$0xff] %v4837_v28 }
 0x289   :  { %1754 = vmatpush1.bf16.msra.mxu0 %v4335_v61  ;;  %1795 = vmatpush1.bf16.msra.mxu1 %v4339_v62 }
 0x28a   :  { %v3626_v57 = vpop.eup %3625  ;;  %1755 = vmatprep.subr.bf16.mxu0 %v4341_v8  ;;  %1796 = vmatprep.subr.bf16.mxu1 %v5646_v16  ;;  %v4808_v8 = vld [vmem:[#allocation13] ss:$16 sps:$4 sm:$0xff]   ;;  %v4840_v16 = vld [vmem:[#allocation13 + $0x64] ss:$16 sps:$4 sm:$0xff]  }
 0x28b   :  { %v1595_v19 = vmul.f32 %v3626_v57, %v1590_v56  ;;  %5679 = vst [vmem:[#allocation46_spill] sm:$0xff] %v4840_v16 }
 0x28d   :  { %v1605_v25 = vsel %vm1602_vm0, %v1595_v19, 0.0  ;;  %1756 = vmatpush1.bf16.msra.mxu0 %v4347_v29  ;;  %1797 = vmatpush1.bf16.msra.mxu1 %v4351_v0  ;;  %v4802_v45 = vsel %vm1602_vm0, %v1595_v19, %v1354_v20  ;;  %v4811_v29 = vld [vmem:[#allocation13 + $0x8] ss:$16 sps:$4 sm:$0xff]   ;;  %v4814_v0 = vld [vmem:[#allocation13 + $0x24] ss:$16 sps:$4 sm:$0xff]  }
 0x28e   :  { %v3440_v61 = vpack.c.bf16 %v1354_v20, %v1605_v25  ;;  %v1740_v62 = vpack.c.bf16 %v4802_v45, %v4802_v45  ;;  %1866 = vmatprep.subr.bf16.mxu0 %v4693_v30  ;;  %1907 = vmatprep.subr.bf16.mxu1 %v4696_v23 }
 0x290   :  { %3447 = vst [vmem:[#allocation16 + $0x18] sm:$0xff] %v3440_v61   ;;  %1774 = vmatmul.mubr.bf16.vlgmr.msra.gmra.mrb[52].mxu0 %v1740_v62  ;;  %1815 = vmatmul.mubr.bf16.vlgmr.msra.gmra.mrb[52].mxu1 %v1740_v62 }
 0x291   :  { %1867 = vmatpush1.bf16.msra.mxu0 %v4808_v8  ;;  %1908 = vmatpush1.bf16.msra.mxu1 %v4811_v29 }
 0x292   :  { %1868 = vmatprep.subr.bf16.mxu0 %v4814_v0  ;;  %1909 = vmatprep.subr.bf16.mxu1 %v4817_v35 }
 0x293   :  { %1898 = vmatprep.mubr.bf16.mxu0 %v5577_v18  ;;  %1939 = vmatprep.mubr.bf16.mxu1 %v5577_v18 }
 0x295   :  { %1869 = vmatpush1.bf16.msra.mxu0 %v4822_v37  ;;  %1910 = vmatpush1.bf16.msra.mxu1 %v4825_v58 }
 0x296   :  { %1870 = vmatprep.subr.bf16.mxu0 %v4828_v27  ;;  %1911 = vmatprep.subr.bf16.mxu1 %v4831_v33 }
 0x299   :  { %1871 = vmatpush1.bf16.msra.mxu0 %v4834_v39  ;;  %1912 = vmatpush1.bf16.msra.mxu1 %v4837_v28 }
 0x29a   :  { %1872 = vmatprep.subr.bf16.mxu0 %v4840_v16  ;;  %1913 = vmatprep.subr.bf16.mxu1 %v4843_v41 }
 0x29d   :  { %1873 = vmatpush1.bf16.msra.mxu0 %v4846_v34  ;;  %1914 = vmatpush1.bf16.msra.mxu1 %v4849_v9 }
 0x29e   :  { %1874 = vmatprep.subr.bf16.mxu0 %v4852_v10  ;;  %1915 = vmatprep.subr.bf16.mxu1 %v4855_v11 }
 0x2a1   :  { %1875 = vmatpush1.bf16.msra.mxu0 %v4858_v52  ;;  %1916 = vmatpush1.bf16.msra.mxu1 %v4861_v22 }
 0x2a2   :  { %1876 = vmatprep.subr.bf16.mxu0 %v4864_v60  ;;  %1917 = vmatprep.subr.bf16.mxu1 %v4867_v17 }
 0x2a5   :  { %1877 = vmatpush1.bf16.msra.mxu0 %v4870_v15  ;;  %1918 = vmatpush1.bf16.msra.mxu1 %v4873_v26 }
 0x2a6   :  { %1878 = vmatprep.subr.bf16.mxu0 %v4876_v47  ;;  %1919 = vmatprep.subr.bf16.mxu1 %v4879_v12 }
 0x2a9   :  { %1879 = vmatpush1.bf16.msra.mxu0 %v4882_v13  ;;  %1920 = vmatpush1.bf16.msra.mxu1 %v4885_v14 }
 0x2aa   :  { %1880 = vmatprep.subr.bf16.mxu0 %v4888_v38  ;;  %1921 = vmatprep.subr.bf16.mxu1 %v4891_v24 }
 0x2ad   :  { %1881 = vmatpush1.bf16.msra.mxu0 %v4894_v36  ;;  %1922 = vmatpush1.bf16.msra.mxu1 %v4897_v21 }
 0x2ae   :  { %1991 = vmatprep.subr.bf16.mxu0 %v4900_v59  ;;  %2032 = vmatprep.subr.bf16.mxu1 %v4903_v2 }
 0x343   :  { %v1650_v4 = vpop.f32.mrb[48].mxu0  ;;  %v1691_v5 = vpop.f32.mrb[48].mxu1 }
 0x344   :  { %v1698_v32 = vadd.f32 %v1650_v4, %v5701_v6  ;;  %v1700_v40 = vadd.f32 %v1691_v5, %v5702_v31  ;;  %v1652_v42 = vpop.f32.mrb[49].mxu0  ;;  %v1693_v63 = vpop.f32.mrb[49].mxu1 }
 0x345   :  { %v1699_v44 = vadd.f32 %v1652_v42, %v5703_v43  ;;  %v1701_v46 = vadd.f32 %v1693_v63, %v5704_v7  ;;  %v1654_v48 = vpop.f32.mrb[50].mxu0  ;;  %v1695_v49 = vpop.f32.mrb[50].mxu1  ;;  %v5705_v7 = vld [vmem:[#allocation99_spill] sm:$0xff] }
 0x346   :  { %v1703_v50 = vmul.f32 0.5, %v1698_v32  ;;  %v1655_v51 = vpop.f32.mrb[51].mxu0  ;;  %v1696_v54 = vpop.f32.mrb[51].mxu1  ;;  %v5706_v48 = vld [vmem:[#allocation102_spill] sm:$0xff] }
 0x347   :  { %v1707_v55 = vmul.f32 0.5, %v1699_v44  ;;  %v1712_v56 = vmul.f32 0.5, %v1701_v46  ;;  %v1726_v31 = vpop.permute.xlu0 %1725 }
 0x348   :  { %3627 = vtanh.f32 %v1703_v50  ;;  %vm1727_vm1 = vcmp.eq.s32.totalorder %v1726_v31, 1 }
 0x349   :  { %3629 = vtanh.f32 %v1707_v55  ;;  %v5707_v55 = vld [vmem:[#allocation101_spill] sm:$0xff] }
 0x34a   :  { %3631 = vtanh.f32 %v1700_v40 }
 0x34b   :  { %3633 = vtanh.f32 %v1712_v56 }
 0x352   :  { %v3628_v57 = vpop.eup %3627 }
 0x353   :  { %v3630_v19 = vpop.eup %3629  ;;  %v1705_v20 = vmul.f32 0.5, %v3628_v57  ;;  %v5708_v57 = vld [vmem:[#allocation103_spill] sm:$0xff] }
 0x354   :  { %v1709_v25 = vmul.f32 0.5, %v3630_v19  ;;  %v3632_v62 = vpop.eup %3631 }
 0x355   :  { %v1706_v61 = vadd.f32 0.5, %v1705_v20  ;;  %v3634_v40 = vpop.eup %3633 }
 0x356   :  { %v1710_v4 = vadd.f32 0.5, %v1709_v25  ;;  %v1714_v63 = vmul.f32 0.5, %v3634_v40 }
 0x357   :  { %v1717_v5 = vmul.f32 %v3632_v62, %v1706_v61 }
 0x358   :  { %v1716_v6 = vmul.f32 %v1710_v4, %v4744_v1  ;;  %v1715_v54 = vadd.f32 0.5, %v1714_v63 }
 0x35a   :  { %v1718_v32 = vadd.f32 %v1717_v5, %v1716_v6 }
 0x35c   :  { %3635 = vtanh.f32 %v1718_v32  ;;  %v4913_v42 = vsel %vm1727_vm1, %v1718_v32, %v4744_v1 }
 0x363   :  { %v1775_v43 = vpop.f32.mrb[52].mxu0  ;;  %v1816_v44 = vpop.f32.mrb[52].mxu1 }
 0x364   :  { %v1823_v46 = vadd.f32 %v1775_v43, %v5705_v7  ;;  %v1825_v49 = vadd.f32 %v1816_v44, %v5706_v48  ;;  %v1777_v50 = vpop.f32.mrb[53].mxu0  ;;  %v1818_v51 = vpop.f32.mrb[53].mxu1  ;;  %v4928_v43 = vld [vmem:[#allocation13 + $0x100] ss:$16 sps:$4 sm:$0xff]   ;;  %v4931_v44 = vld [vmem:[#allocation13 + $0x108] ss:$16 sps:$4 sm:$0xff]  }
 0x365   :  { %v1824_v56 = vadd.f32 %v1777_v50, %v5707_v55  ;;  %v1826_v19 = vadd.f32 %v1818_v51, %v5708_v57  ;;  %v1779_v20 = vpop.f32.mrb[54].mxu0  ;;  %v1820_v25 = vpop.f32.mrb[54].mxu1  ;;  %v4934_v7 = vld [vmem:[#allocation13 + $0x124] ss:$16 sps:$4 sm:$0xff]   ;;  %v4945_v48 = vld [vmem:[#allocation13 + $0x128] ss:$16 sps:$4 sm:$0xff]  }
 0x366   :  { %v3636_v61 = vpop.eup %3635  ;;  %v1828_v1 = vmul.f32 0.5, %v1823_v46  ;;  %v1780_v62 = vpop.f32.mrb[55].mxu0  ;;  %v4942_v46 = vld [vmem:[#allocation13 + $0x120] ss:$16 sps:$4 sm:$0xff]   ;;  %v4948_v50 = vld [vmem:[#allocation13 + $0x144] ss:$16 sps:$4 sm:$0xff]  }
 0x367   :  { %v1821_v4 = vpop.f32.mrb[55].mxu1  ;;  %v1720_v5 = vmul.f32 %v3636_v61, %v1715_v54  ;;  %v1832_v6 = vmul.f32 0.5, %v1824_v56  ;;  %v1837_v31 = vmul.f32 0.5, %v1826_v19  ;;  %v4951_v51 = vld [vmem:[#allocation13 + $0x14c] ss:$16 sps:$4 sm:$0xff]  }
 0x368   :  { %3637 = vtanh.f32 %v1828_v1  ;;  %v4954_v19 = vld [vmem:[#allocation13 + $0x140] ss:$16 sps:$4 sm:$0xff]   ;;  %v4957_v20 = vld [vmem:[#allocation13 + $0x148] ss:$16 sps:$4 sm:$0xff]   ;;  %v4960_v1 = vld [vmem:[#allocation13 + $0x164] ss:$16 sps:$4 sm:$0xff]  }
 0x369   :  { %v4920_v32 = vsel %vm1727_vm1, %v1720_v5, 0.0  ;;  %3639 = vtanh.f32 %v1832_v6  ;;  %v4924_v40 = vsel %vm1727_vm1, %v1720_v5, %v4754_v3  ;;  %v4937_v3 = vld [vmem:[#allocation13 + $0x12c] ss:$16 sps:$4 sm:$0xff]   ;;  %v4967_v6 = vld [vmem:[#allocation13 + $0x160] ss:$16 sps:$4 sm:$0xff]  }
 0x36a   :  { %v1865_v63 = vpack.c.bf16 %v4924_v40, %v4924_v40  ;;  %3641 = vtanh.f32 %v1825_v49  ;;  %v4963_v62 = vld [vmem:[#allocation13 + $0x16c] ss:$16 sps:$4 sm:$0xff]  }
 0x36b   :  { %3643 = vtanh.f32 %v1837_v31  ;;  %v1851_v31 = vpop.permute.xlu1 %1850 }
 0x36c   :  { %1899 = vmatmul.mubr.bf16.vlgmr.msra.gmra.mrb[56].mxu0 %v1865_v63  ;;  %1940 = vmatmul.mubr.bf16.vlgmr.msra.gmra.mrb[56].mxu1 %v1865_v63  ;;  %v4970_v63 = vld [vmem:[#allocation13 + $0x168] ss:$16 sps:$4 sm:$0xff]   ;;  %vm1852_vm2 = vcmp.eq.s32.totalorder %v1851_v31, 1 }
 0x36d   :  { %1992 = vmatpush1.bf16.msra.mxu0 %v4928_v43  ;;  %2033 = vmatpush1.bf16.msra.mxu1 %v4931_v44 }
 0x36e   :  { %1993 = vmatprep.subr.bf16.mxu0 %v4934_v7  ;;  %2034 = vmatprep.subr.bf16.mxu1 %v4937_v3 }
 0x36f   :  { %2023 = vmatprep.mubr.bf16.mxu0 %v5577_v18  ;;  %2064 = vmatprep.mubr.bf16.mxu1 %v5577_v18 }
 0x371   :  { %1994 = vmatpush1.bf16.msra.mxu0 %v4942_v46  ;;  %2035 = vmatpush1.bf16.msra.mxu1 %v4945_v48 }
 0x372   :  { %v3638_v49 = vpop.eup %3637  ;;  %1995 = vmatprep.subr.bf16.mxu0 %v4948_v50  ;;  %2036 = vmatprep.subr.bf16.mxu1 %v4951_v51 }
 0x373   :  { %v3640_v54 = vpop.eup %3639  ;;  %v1830_v55 = vmul.f32 0.5, %v3638_v49 }
 0x374   :  { %v1834_v56 = vmul.f32 0.5, %v3640_v54  ;;  %v3642_v25 = vpop.eup %3641  ;;  %v4973_v54 = vld [vmem:[#allocation13 + $0x184] ss:$16 sps:$4 sm:$0xff]  }
 0x375   :  { %v1831_v57 = vadd.f32 0.5, %v1830_v55  ;;  %1996 = vmatpush1.bf16.msra.mxu0 %v4954_v19  ;;  %2037 = vmatpush1.bf16.msra.mxu1 %v4957_v20  ;;  %5709 = vst [vmem:[#allocation38_spill] sm:$0xff] %v4973_v54  ;;  %v4976_v55 = vld [vmem:[#allocation13 + $0x18c] ss:$16 sps:$4 sm:$0xff]  }
 0x376   :  { %v1835_v61 = vadd.f32 0.5, %v1834_v56  ;;  %1997 = vmatprep.subr.bf16.mxu0 %v4960_v1  ;;  %2038 = vmatprep.subr.bf16.mxu1 %v4963_v62  ;;  %5710 = vst [vmem:[#allocation39_spill] sm:$0xff] %v4976_v55 }
 0x377   :  { %v1842_v4 = vmul.f32 %v3642_v25, %v1831_v57  ;;  %v4983_v57 = vld [vmem:[#allocation13 + $0x180] ss:$16 sps:$4 sm:$0xff]   ;;  %v4986_v25 = vld [vmem:[#allocation13 + $0x188] ss:$16 sps:$4 sm:$0xff]  }
 0x378   :  { %v1841_v5 = vmul.f32 %v1835_v61, %v4781_v53  ;;  %5711 = vst [vmem:[#allocation40_spill] sm:$0xff] %v4983_v57  ;;  %5712 = vst [vmem:[#allocation41_spill] sm:$0xff] %v4986_v25  ;;  %v3644_v61 = vpop.eup %3643 }
 0x379   :  { %1998 = vmatpush1.bf16.msra.mxu0 %v4967_v6  ;;  %2039 = vmatpush1.bf16.msra.mxu1 %v4970_v63 }
 0x37a   :  { %v1843_v49 = vadd.f32 %v1842_v4, %v1841_v5  ;;  %1999 = vmatprep.subr.bf16.mxu0 %v4973_v54  ;;  %2040 = vmatprep.subr.bf16.mxu1 %v4976_v55  ;;  %v4989_v4 = vld [vmem:[#allocation13 + $0x1a4] ss:$16 sps:$4 sm:$0xff]   ;;  %v4992_v5 = vld [vmem:[#allocation13 + $0x1ac] ss:$16 sps:$4 sm:$0xff]   ;;  %v1839_v55 = vmul.f32 0.5, %v3644_v61 }
 0x37b   :  { %5713 = vst [vmem:[#allocation42_spill] sm:$0xff] %v4989_v4  ;;  %5714 = vst [vmem:[#allocation52_spill] sm:$0xff] %v4992_v5  ;;  %v5007_v54 = vld [vmem:[#allocation13 + $0x1c0] ss:$16 sps:$4 sm:$0xff]   ;;  %v5010_v61 = vld [vmem:[#allocation13 + $0x1c8] ss:$16 sps:$4 sm:$0xff]  }
 0x37c   :  { %3645 = vtanh.f32 %v1843_v49  ;;  %v4981_v56 = vsel %vm1852_vm2, %v1843_v49, %v4781_v53  ;;  %v4995_v53 = vld [vmem:[#allocation13 + $0x1a0] ss:$16 sps:$4 sm:$0xff]   ;;  %v4998_v49 = vld [vmem:[#allocation13 + $0x1a8] ss:$16 sps:$4 sm:$0xff]   ;;  %5719 = vst [vmem:[#allocation106_spill] sm:$0xff] %v5007_v54  ;;  %5720 = vst [vmem:[#allocation105_spill] sm:$0xff] %v5010_v61 }
 0x37d   :  { %2000 = vmatpush1.bf16.msra.mxu0 %v4983_v57  ;;  %2041 = vmatpush1.bf16.msra.mxu1 %v4986_v25  ;;  %5715 = vst [vmem:[#allocation54_spill] sm:$0xff] %v4995_v53  ;;  %5716 = vst [vmem:[#allocation53_spill] sm:$0xff] %v4998_v49  ;;  %v5001_v57 = vld [vmem:[#allocation13 + $0x1c4] ss:$16 sps:$4 sm:$0xff]   ;;  %v5004_v25 = vld [vmem:[#allocation13 + $0x1cc] ss:$16 sps:$4 sm:$0xff]  }
 0x37e   :  { %2001 = vmatprep.subr.bf16.mxu0 %v4989_v4  ;;  %2042 = vmatprep.subr.bf16.mxu1 %v4992_v5  ;;  %5717 = vst [vmem:[#allocation55_spill] sm:$0xff] %v5001_v57  ;;  %5718 = vst [vmem:[#allocation104_spill] sm:$0xff] %v5004_v25  ;;  %v1840_v4 = vadd.f32 0.5, %v1839_v55  ;;  %v5013_v5 = vld [vmem:[#allocation13 + $0x1e4] ss:$16 sps:$4 sm:$0xff]  }
 0x37f   :  { %5721 = vst [vmem:[#allocation107_spill] sm:$0xff] %v5013_v5 }
 0x381   :  { %2002 = vmatpush1.bf16.msra.mxu0 %v4995_v53  ;;  %2043 = vmatpush1.bf16.msra.mxu1 %v4998_v49  ;;  %v5016_v49 = vld [vmem:[#allocation13 + $0x1ec] ss:$16 sps:$4 sm:$0xff]  }
 0x382   :  { %2003 = vmatprep.subr.bf16.mxu0 %v5001_v57  ;;  %2044 = vmatprep.subr.bf16.mxu1 %v5004_v25  ;;  %v5022_v25 = vld [vmem:[#allocation13 + $0x1e0] ss:$16 sps:$4 sm:$0xff]  }
 0x385   :  { %2004 = vmatpush1.bf16.msra.mxu0 %v5007_v54  ;;  %2045 = vmatpush1.bf16.msra.mxu1 %v5010_v61  ;;  %v5025_v54 = vld [vmem:[#allocation13 + $0x1e8] ss:$16 sps:$4 sm:$0xff]  }
 0x386   :  { %v3646_v53 = vpop.eup %3645  ;;  %2005 = vmatprep.subr.bf16.mxu0 %v5013_v5  ;;  %2046 = vmatprep.subr.bf16.mxu1 %v5016_v49 }
 0x387   :  { %v1845_v57 = vmul.f32 %v3646_v53, %v1840_v4 }
 0x389   :  { %v5020_v55 = vsel %vm1852_vm2, %v1845_v57, 0.0  ;;  %2006 = vmatpush1.bf16.msra.mxu0 %v5022_v25  ;;  %2047 = vmatpush1.bf16.msra.mxu1 %v5025_v54  ;;  %v5030_v61 = vsel %vm1852_vm2, %v1845_v57, %v4802_v45  ;;  %v5722_v57 = vld [vmem:[#allocation59_spill] sm:$0xff] }
 0x38a   :  { %v1990_v5 = vpack.c.bf16 %v5030_v61, %v5030_v61  ;;  %2115 = vmatprep.subr.bf16.mxu0 %v4693_v30  ;;  %2156 = vmatprep.subr.bf16.mxu1 %v4696_v23 }
 0x38c   :  { %2024 = vmatmul.mubr.bf16.vlgmr.msra.gmra.mrb[60].mxu0 %v1990_v5  ;;  %2065 = vmatmul.mubr.bf16.vlgmr.msra.gmra.mrb[60].mxu1 %v1990_v5  ;;  %v5723_v5 = vld [vmem:[#allocation62_spill] sm:$0xff] }
 0x38d   :  { %2116 = vmatpush1.bf16.msra.mxu0 %v4808_v8  ;;  %2157 = vmatpush1.bf16.msra.mxu1 %v4811_v29 }
 0x38e   :  { %2117 = vmatprep.subr.bf16.mxu0 %v4814_v0  ;;  %2158 = vmatprep.subr.bf16.mxu1 %v4817_v35 }
 0x38f   :  { %2147 = vmatprep.mubr.bf16.mxu0 %v5577_v18  ;;  %2188 = vmatprep.mubr.bf16.mxu1 %v5577_v18 }
 0x391   :  { %2118 = vmatpush1.bf16.msra.mxu0 %v4822_v37  ;;  %2159 = vmatpush1.bf16.msra.mxu1 %v4825_v58 }
 0x392   :  { %2119 = vmatprep.subr.bf16.mxu0 %v4828_v27  ;;  %2160 = vmatprep.subr.bf16.mxu1 %v4831_v33 }
 0x395   :  { %2120 = vmatpush1.bf16.msra.mxu0 %v4834_v39  ;;  %2161 = vmatpush1.bf16.msra.mxu1 %v4837_v28 }
 0x396   :  { %2121 = vmatprep.subr.bf16.mxu0 %v4840_v16  ;;  %2162 = vmatprep.subr.bf16.mxu1 %v4843_v41 }
 0x399   :  { %2122 = vmatpush1.bf16.msra.mxu0 %v4846_v34  ;;  %2163 = vmatpush1.bf16.msra.mxu1 %v4849_v9 }
 0x39a   :  { %2123 = vmatprep.subr.bf16.mxu0 %v4852_v10  ;;  %2164 = vmatprep.subr.bf16.mxu1 %v4855_v11 }
 0x39d   :  { %2124 = vmatpush1.bf16.msra.mxu0 %v4858_v52  ;;  %2165 = vmatpush1.bf16.msra.mxu1 %v4861_v22 }
 0x39e   :  { %2125 = vmatprep.subr.bf16.mxu0 %v4864_v60  ;;  %2166 = vmatprep.subr.bf16.mxu1 %v4867_v17 }
 0x3a1   :  { %2126 = vmatpush1.bf16.msra.mxu0 %v4870_v15  ;;  %2167 = vmatpush1.bf16.msra.mxu1 %v4873_v26 }
 0x3a2   :  { %2127 = vmatprep.subr.bf16.mxu0 %v4876_v47  ;;  %2168 = vmatprep.subr.bf16.mxu1 %v4879_v12  ;;  %v5724_v12 = vld [vmem:[#allocation61_spill] sm:$0xff]  ;;  %v5725_v47 = vld [vmem:[#allocation63_spill] sm:$0xff] }
 0x3a5   :  { %2128 = vmatpush1.bf16.msra.mxu0 %v4882_v13  ;;  %2169 = vmatpush1.bf16.msra.mxu1 %v4885_v14 }
 0x3a6   :  { %2129 = vmatprep.subr.bf16.mxu0 %v4888_v38  ;;  %2170 = vmatprep.subr.bf16.mxu1 %v4891_v24 }
 0x3a9   :  { %2130 = vmatpush1.bf16.msra.mxu0 %v4894_v36  ;;  %2171 = vmatpush1.bf16.msra.mxu1 %v4897_v21 }
 0x3aa   :  { %2239 = vmatprep.subr.bf16.mxu0 %v4900_v59  ;;  %2280 = vmatprep.subr.bf16.mxu1 %v4903_v2 }
 0x43f   :  { %v1900_v45 = vpop.f32.mrb[56].mxu0  ;;  %v1941_v31 = vpop.f32.mrb[56].mxu1 }
 0x440   :  { %v1948_v4 = vadd.f32 %v1900_v45, %v5722_v57  ;;  %v1950_v53 = vadd.f32 %v1941_v31, %v5723_v5  ;;  %v1902_v13 = vpop.f32.mrb[57].mxu0  ;;  %v1943_v14 = vpop.f32.mrb[57].mxu1 }
 0x441   :  { %v1949_v38 = vadd.f32 %v1902_v13, %v5724_v12  ;;  %v1951_v24 = vadd.f32 %v1943_v14, %v5725_v47  ;;  %v1904_v26 = vpop.f32.mrb[58].mxu0  ;;  %v1945_v36 = vpop.f32.mrb[58].mxu1 }
 0x442   :  { %v1953_v15 = vmul.f32 0.5, %v1948_v4  ;;  %v1905_v21 = vpop.f32.mrb[59].mxu0  ;;  %v1946_v17 = vpop.f32.mrb[59].mxu1  ;;  %v5727_v36 = vld [vmem:[#allocation96_spill] sm:$0xff] }
 0x443   :  { %v1957_v59 = vmul.f32 0.5, %v1949_v38  ;;  %v1962_v2 = vmul.f32 0.5, %v1951_v24  ;;  %v1976_v47 = vpop.permute.xlu0 %1975 }
 0x444   :  { %3647 = vtanh.f32 %v1953_v15  ;;  %vm1977_vm3 = vcmp.eq.s32.totalorder %v1976_v47, 1 }
 0x445   :  { %3649 = vtanh.f32 %v1957_v59  ;;  %v5728_v59 = vld [vmem:[#allocation98_spill] sm:$0xff] }
 0x446   :  { %3651 = vtanh.f32 %v1950_v53 }
 0x447   :  { %3653 = vtanh.f32 %v1962_v2 }
 0x44e   :  { %v3648_v60 = vpop.eup %3647 }
 0x44f   :  { %v3650_v45 = vpop.eup %3649  ;;  %v1955_v57 = vmul.f32 0.5, %v3648_v60 }
 0x450   :  { %v1959_v31 = vmul.f32 0.5, %v3650_v45  ;;  %v3652_v22 = vpop.eup %3651  ;;  %v5729_v45 = vld [vmem:[#allocation97_spill] sm:$0xff] }
 0x451   :  { %v1956_v5 = vadd.f32 0.5, %v1955_v57  ;;  %v3654_v15 = vpop.eup %3653 }
 0x452   :  { %v1960_v12 = vadd.f32 0.5, %v1959_v31  ;;  %v1964_v38 = vmul.f32 0.5, %v3654_v15  ;;  %v5730_v31 = vld [vmem:[#allocation100_spill] sm:$0xff] }
 0x453   :  { %v1967_v13 = vmul.f32 %v3652_v22, %v1956_v5 }
 0x454   :  { %v1966_v26 = vmul.f32 %v1960_v12, %v4913_v42  ;;  %v1965_v53 = vadd.f32 0.5, %v1964_v38 }
 0x456   :  { %v1968_v14 = vadd.f32 %v1967_v13, %v1966_v26 }
 0x458   :  { %3655 = vtanh.f32 %v1968_v14  ;;  %v5077_v17 = vsel %vm1977_vm3, %v1968_v14, %v4913_v42 }
 0x459   :  { %5726 = vst [vmem:[#allocation56_spill] sm:$0xff] %v5077_v17 }
 0x45f   :  { %v2025_v24 = vpop.f32.mrb[60].mxu0  ;;  %v2066_v60 = vpop.f32.mrb[60].mxu1 }
 0x460   :  { %v2073_v21 = vadd.f32 %v2025_v24, %v5727_v36  ;;  %v2075_v2 = vadd.f32 %v2066_v60, %v5728_v59  ;;  %v2027_v4 = vpop.f32.mrb[61].mxu0  ;;  %v2068_v22 = vpop.f32.mrb[61].mxu1 }
 0x461   :  { %v2074_v57 = vadd.f32 %v2027_v4, %v5729_v45  ;;  %v2076_v5 = vadd.f32 %v2068_v22, %v5730_v31  ;;  %v2029_v12 = vpop.f32.mrb[62].mxu0  ;;  %v2070_v13 = vpop.f32.mrb[62].mxu1  ;;  %v5732_v31 = vld [vmem:[#allocation39_spill] sm:$0xff] }
 0x462   :  { %v3656_v26 = vpop.eup %3655  ;;  %v2078_v42 = vmul.f32 0.5, %v2073_v21  ;;  %v2030_v14 = vpop.f32.mrb[63].mxu0  ;;  %v5733_v12 = vld [vmem:[#allocation40_spill] sm:$0xff]  ;;  %v5734_v13 = vld [vmem:[#allocation41_spill] sm:$0xff] }
 0x463   :  { %v2071_v17 = vpop.f32.mrb[63].mxu1  ;;  %v1970_v15 = vmul.f32 %v3656_v26, %v1965_v53  ;;  %v2082_v52 = vmul.f32 0.5, %v2074_v57  ;;  %v2101_v53 = vpop.permute.xlu1 %2100  ;;  %v5731_v57 = vld [vmem:[#allocation38_spill] sm:$0xff]  ;;  %v5736_v14 = vld [vmem:[#allocation52_spill] sm:$0xff] }
 0x464   :  { %3657 = vtanh.f32 %v2078_v42  ;;  %vm2102_vm4 = vcmp.eq.s32.totalorder %v2101_v53, 1  ;;  %v5735_v42 = vld [vmem:[#allocation42_spill] sm:$0xff] }
 0x465   :  { %v1980_v24 = vsel %vm1977_vm3, %v1970_v15, 0.0  ;;  %3659 = vtanh.f32 %v2082_v52  ;;  %v5086_v60 = vsel %vm1977_vm3, %v1970_v15, %v4924_v40  ;;  %v2087_v52 = vmul.f32 0.5, %v2076_v5  ;;  %v5748_v53 = vld [vmem:[#allocation26_spill] sm:$0xff] }
 0x466   :  { %v3410_v38 = vpack.c.bf16 %v1980_v24, %v4920_v32  ;;  %v2114_v36 = vpack.c.bf16 %v5086_v60, %v5086_v60  ;;  %3661 = vtanh.f32 %v2075_v2  ;;  %v5737_v24 = vld [vmem:[#allocation54_spill] sm:$0xff] }
 0x467   :  { %3663 = vtanh.f32 %v2087_v52  ;;  %v5740_v52 = vld [vmem:[#allocation104_spill] sm:$0xff] }
 0x468   :  { %3442 = vst [vmem:[#allocation15 + $0x8] sm:$0xff] %v3410_v38   ;;  %2148 = vmatmul.mubr.bf16.vlgmr.msra.gmra.mrb[64].mxu0 %v2114_v36  ;;  %2189 = vmatmul.mubr.bf16.vlgmr.msra.gmra.mrb[64].mxu1 %v2114_v36  ;;  %v5738_v38 = vld [vmem:[#allocation53_spill] sm:$0xff]  ;;  %v5739_v36 = vld [vmem:[#allocation55_spill] sm:$0xff] }
 0x469   :  { %2240 = vmatpush1.bf16.msra.mxu0 %v4928_v43  ;;  %2281 = vmatpush1.bf16.msra.mxu1 %v4931_v44 }
 0x46a   :  { %2241 = vmatprep.subr.bf16.mxu0 %v4934_v7  ;;  %2282 = vmatprep.subr.bf16.mxu1 %v4937_v3 }
 0x46b   :  { %2271 = vmatprep.mubr.bf16.mxu0 %v5577_v18  ;;  %2312 = vmatprep.mubr.bf16.mxu1 %v5577_v18 }
 0x46d   :  { %2242 = vmatpush1.bf16.msra.mxu0 %v4942_v46  ;;  %2283 = vmatpush1.bf16.msra.mxu1 %v4945_v48 }
 0x46e   :  { %v3658_v32 = vpop.eup %3657  ;;  %2243 = vmatprep.subr.bf16.mxu0 %v4948_v50  ;;  %2284 = vmatprep.subr.bf16.mxu1 %v4951_v51 }
 0x46f   :  { %v3660_v40 = vpop.eup %3659  ;;  %v2080_v47 = vmul.f32 0.5, %v3658_v32  ;;  %v5741_v32 = vld [vmem:[#allocation106_spill] sm:$0xff] }
 0x470   :  { %v2084_v17 = vmul.f32 0.5, %v3660_v40  ;;  %v3662_v59 = vpop.eup %3661  ;;  %v5742_v40 = vld [vmem:[#allocation105_spill] sm:$0xff] }
 0x471   :  { %v2081_v21 = vadd.f32 0.5, %v2080_v47  ;;  %2244 = vmatpush1.bf16.msra.mxu0 %v4954_v19  ;;  %2285 = vmatpush1.bf16.msra.mxu1 %v4957_v20  ;;  %v3664_v26 = vpop.eup %3663 }
 0x472   :  { %v2085_v2 = vadd.f32 0.5, %v2084_v17  ;;  %2245 = vmatprep.subr.bf16.mxu0 %v4960_v1  ;;  %2286 = vmatprep.subr.bf16.mxu1 %v4963_v62  ;;  %v2089_v15 = vmul.f32 0.5, %v3664_v26  ;;  %v5743_v17 = vld [vmem:[#allocation107_spill] sm:$0xff]  ;;  %v5750_v26 = vld [vmem:[#allocation28_spill] sm:$0xff] }
 0x473   :  { %v2092_v4 = vmul.f32 %v3662_v59, %v2081_v21 }
 0x474   :  { %v2091_v22 = vmul.f32 %v2085_v2, %v4981_v56 }
 0x475   :  { %2246 = vmatpush1.bf16.msra.mxu0 %v4967_v6  ;;  %2287 = vmatpush1.bf16.msra.mxu1 %v4970_v63 }
 0x476   :  { %v2093_v45 = vadd.f32 %v2092_v4, %v2091_v22  ;;  %2247 = vmatprep.subr.bf16.mxu0 %v5731_v57  ;;  %2288 = vmatprep.subr.bf16.mxu1 %v5732_v31 }
 0x478   :  { %3665 = vtanh.f32 %v2093_v45  ;;  %v5112_v5 = vsel %vm2102_vm4, %v2093_v45, %v4981_v56  ;;  %v2090_v56 = vadd.f32 0.5, %v2089_v15  ;;  %v5749_v45 = vld [vmem:[#allocation27_spill] sm:$0xff]  ;;  %v5751_v15 = vld [vmem:[#allocation29_spill] sm:$0xff] }
 0x479   :  { %2248 = vmatpush1.bf16.msra.mxu0 %v5733_v12  ;;  %2289 = vmatpush1.bf16.msra.mxu1 %v5734_v13 }
 0x47a   :  { %2249 = vmatprep.subr.bf16.mxu0 %v5735_v42  ;;  %2290 = vmatprep.subr.bf16.mxu1 %v5736_v14 }
 0x47d   :  { %2250 = vmatpush1.bf16.msra.mxu0 %v5737_v24  ;;  %2291 = vmatpush1.bf16.msra.mxu1 %v5738_v38 }
 0x47e   :  { %2251 = vmatprep.subr.bf16.mxu0 %v5739_v36  ;;  %2292 = vmatprep.subr.bf16.mxu1 %v5740_v52 }
 0x481   :  { %2252 = vmatpush1.bf16.msra.mxu0 %v5741_v32  ;;  %2293 = vmatpush1.bf16.msra.mxu1 %v5742_v40 }
 0x482   :  { %v3666_v47 = vpop.eup %3665  ;;  %2253 = vmatprep.subr.bf16.mxu0 %v5743_v17  ;;  %2294 = vmatprep.subr.bf16.mxu1 %v5016_v49 }
 0x483   :  { %v2095_v21 = vmul.f32 %v3666_v47, %v2090_v56  ;;  %v5752_v56 = vld [vmem:[#allocation30_spill] sm:$0xff]  ;;  %v5753_v47 = vld [vmem:[#allocation31_spill] sm:$0xff] }
 0x485   :  { %v2105_v59 = vsel %vm2102_vm4, %v2095_v21, 0.0  ;;  %2254 = vmatpush1.bf16.msra.mxu0 %v5022_v25  ;;  %2295 = vmatpush1.bf16.msra.mxu1 %v5025_v54  ;;  %v5131_v2 = vsel %vm2102_vm4, %v2095_v21, %v5030_v61  ;;  %v5746_v61 = vld [vmem:[#allocation24_spill] sm:$0xff] }
 0x486   :  { %v3435_v4 = vpack.c.bf16 %v5020_v55, %v2105_v59  ;;  %v2238_v22 = vpack.c.bf16 %v5131_v2, %v5131_v2  ;;  %2363 = vmatprep.subr.bf16.mxu0 %v4693_v30  ;;  %2404 = vmatprep.subr.bf16.mxu1 %v4696_v23  ;;  %v5744_v30 = vld [vmem:[#allocation22_spill] sm:$0xff]  ;;  %v5745_v23 = vld [vmem:[#allocation23_spill] sm:$0xff]  ;;  %v5747_v55 = vld [vmem:[#allocation25_spill] sm:$0xff] }
 0x487   :  { %v5754_v21 = vld [vmem:[#allocation32_spill] sm:$0xff]  ;;  %v5755_v59 = vld [vmem:[#allocation33_spill] sm:$0xff] }
 0x488   :  { %3446 = vst [vmem:[#allocation16 + $0x10] sm:$0xff] %v3435_v4   ;;  %2272 = vmatmul.mubr.bf16.vlgmr.msra.gmra.mrb[68].mxu0 %v2238_v22  ;;  %2313 = vmatmul.mubr.bf16.vlgmr.msra.gmra.mrb[68].mxu1 %v2238_v22  ;;  %v5756_v4 = vld [vmem:[#allocation34_spill] sm:$0xff]  ;;  %v5757_v22 = vld [vmem:[#allocation35_spill] sm:$0xff] }
 0x489   :  { %2364 = vmatpush1.bf16.msra.mxu0 %v4808_v8  ;;  %2405 = vmatpush1.bf16.msra.mxu1 %v4811_v29 }
 0x48a   :  { %2365 = vmatprep.subr.bf16.mxu0 %v4814_v0  ;;  %2406 = vmatprep.subr.bf16.mxu1 %v4817_v35 }
 0x48b   :  { %2395 = vmatprep.mubr.bf16.mxu0 %v5577_v18  ;;  %2436 = vmatprep.mubr.bf16.mxu1 %v5577_v18 }
 0x48d   :  { %2366 = vmatpush1.bf16.msra.mxu0 %v4822_v37  ;;  %2407 = vmatpush1.bf16.msra.mxu1 %v4825_v58 }
 0x48e   :  { %2367 = vmatprep.subr.bf16.mxu0 %v4828_v27  ;;  %2408 = vmatprep.subr.bf16.mxu1 %v4831_v33 }
 0x491   :  { %2368 = vmatpush1.bf16.msra.mxu0 %v4834_v39  ;;  %2409 = vmatpush1.bf16.msra.mxu1 %v4837_v28 }
 0x492   :  { %2369 = vmatprep.subr.bf16.mxu0 %v4840_v16  ;;  %2410 = vmatprep.subr.bf16.mxu1 %v4843_v41 }
 0x495   :  { %2370 = vmatpush1.bf16.msra.mxu0 %v4846_v34  ;;  %2411 = vmatpush1.bf16.msra.mxu1 %v4849_v9 }
 0x496   :  { %2371 = vmatprep.subr.bf16.mxu0 %v4852_v10  ;;  %2412 = vmatprep.subr.bf16.mxu1 %v4855_v11  ;;  %v5762_v11 = vld [vmem:[#allocation65_spill] sm:$0xff]  ;;  %v5763_v10 = vld [vmem:[#allocation68_spill] sm:$0xff] }
 0x499   :  { %2372 = vmatpush1.bf16.msra.mxu0 %v5744_v30  ;;  %2413 = vmatpush1.bf16.msra.mxu1 %v5745_v23  ;;  %v5761_v23 = vld [vmem:[#allocation66_spill] sm:$0xff] }
 0x49a   :  { %2373 = vmatprep.subr.bf16.mxu0 %v5746_v61  ;;  %2414 = vmatprep.subr.bf16.mxu1 %v5747_v55  ;;  %v5758_v55 = vld [vmem:[#allocation36_spill] sm:$0xff] }
 0x49b   :  { %v5760_v61 = vld [vmem:[#allocation64_spill] sm:$0xff] }
 0x49d   :  { %2374 = vmatpush1.bf16.msra.mxu0 %v5748_v53  ;;  %2415 = vmatpush1.bf16.msra.mxu1 %v5749_v45  ;;  %v5759_v53 = vld [vmem:[#allocation37_spill] sm:$0xff] }
 0x49e   :  { %2375 = vmatprep.subr.bf16.mxu0 %v5750_v26  ;;  %2416 = vmatprep.subr.bf16.mxu1 %v5751_v15 }
 0x4a1   :  { %2376 = vmatpush1.bf16.msra.mxu0 %v5752_v56  ;;  %2417 = vmatpush1.bf16.msra.mxu1 %v5753_v47 }
 0x4a2   :  { %2377 = vmatprep.subr.bf16.mxu0 %v5754_v21  ;;  %2418 = vmatprep.subr.bf16.mxu1 %v5755_v59 }
 0x4a5   :  { %2378 = vmatpush1.bf16.msra.mxu0 %v5756_v4  ;;  %2419 = vmatpush1.bf16.msra.mxu1 %v5757_v22 }
 0x4a6   :  { %2487 = vmatprep.subr.bf16.mxu0 %v5758_v55  ;;  %2528 = vmatprep.subr.bf16.mxu1 %v5759_v53 }
 0x53b   :  { %v2149_v45 = vpop.f32.mrb[64].mxu0  ;;  %v2190_v26 = vpop.f32.mrb[64].mxu1 }
 0x53c   :  { %v2197_v15 = vadd.f32 %v2149_v45, %v5760_v61  ;;  %v2199_v56 = vadd.f32 %v2190_v26, %v5761_v23  ;;  %v2151_v30 = vpop.f32.mrb[65].mxu0  ;;  %v2192_v47 = vpop.f32.mrb[65].mxu1 }
 0x53d   :  { %v2198_v21 = vadd.f32 %v2151_v30, %v5762_v11  ;;  %v2200_v59 = vadd.f32 %v2192_v47, %v5763_v10  ;;  %v2153_v9 = vpop.f32.mrb[66].mxu0  ;;  %v2194_v4 = vpop.f32.mrb[66].mxu1  ;;  %v5764_v10 = vld [vmem:[#allocation56_spill] sm:$0xff] }
 0x53e   :  { %v2202_v34 = vmul.f32 0.5, %v2197_v15  ;;  %v2154_v22 = vpop.f32.mrb[67].mxu0  ;;  %v2195_v41 = vpop.f32.mrb[67].mxu1 }
 0x53f   :  { %v2206_v55 = vmul.f32 0.5, %v2198_v21  ;;  %v2211_v53 = vmul.f32 0.5, %v2200_v59  ;;  %v2225_v47 = vpop.permute.xlu0 %2224  ;;  %v5766_v21 = vld [vmem:[#allocation91_spill] sm:$0xff]  ;;  %v5767_v59 = vld [vmem:[#allocation94_spill] sm:$0xff] }
 0x540   :  { %3667 = vtanh.f32 %v2202_v34  ;;  %vm2226_vm5 = vcmp.eq.s32.totalorder %v2225_v47, 1 }
 0x541   :  { %3669 = vtanh.f32 %v2206_v55 }
 0x542   :  { %3671 = vtanh.f32 %v2199_v56 }
 0x543   :  { %3673 = vtanh.f32 %v2211_v53 }
 0x54a   :  { %v3668_v16 = vpop.eup %3667 }
 0x54b   :  { %v3670_v61 = vpop.eup %3669  ;;  %v2204_v45 = vmul.f32 0.5, %v3668_v16 }
 0x54c   :  { %v2208_v23 = vmul.f32 0.5, %v3670_v61  ;;  %v3672_v28 = vpop.eup %3671 }
 0x54d   :  { %v2205_v26 = vadd.f32 0.5, %v2204_v45  ;;  %v3674_v34 = vpop.eup %3673  ;;  %v5768_v45 = vld [vmem:[#allocation93_spill] sm:$0xff] }
 0x54e   :  { %v2209_v11 = vadd.f32 0.5, %v2208_v23  ;;  %v2213_v55 = vmul.f32 0.5, %v3674_v34 }
 0x54f   :  { %v2216_v30 = vmul.f32 %v3672_v28, %v2205_v26  ;;  %v5769_v26 = vld [vmem:[#allocation95_spill] sm:$0xff] }
 0x550   :  { %v2215_v9 = vmul.f32 %v2209_v11, %v5764_v10  ;;  %v2214_v61 = vadd.f32 0.5, %v2213_v55 }
 0x552   :  { %v2217_v15 = vadd.f32 %v2216_v30, %v2215_v9 }
 0x554   :  { %3675 = vtanh.f32 %v2217_v15  ;;  %v5179_v41 = vsel %vm2226_vm5, %v2217_v15, %v5764_v10 }
 0x555   :  { %5765 = vst [vmem:[#allocation58_spill] sm:$0xff] %v5179_v41 }
 0x55b   :  { %v2273_v56 = vpop.f32.mrb[68].mxu0  ;;  %v2314_v16 = vpop.f32.mrb[68].mxu1 }
 0x55c   :  { %v2321_v53 = vadd.f32 %v2273_v56, %v5766_v21  ;;  %v2323_v4 = vadd.f32 %v2314_v16, %v5767_v59  ;;  %v2275_v22 = vpop.f32.mrb[69].mxu0  ;;  %v2316_v28 = vpop.f32.mrb[69].mxu1 }
 0x55d   :  { %v2322_v23 = vadd.f32 %v2275_v22, %v5768_v45  ;;  %v2324_v11 = vadd.f32 %v2316_v28, %v5769_v26  ;;  %v2277_v30 = vpop.f32.mrb[70].mxu0  ;;  %v2318_v9 = vpop.f32.mrb[70].mxu1 }
 0x55e   :  { %v3676_v39 = vpop.eup %3675  ;;  %v2326_v10 = vmul.f32 0.5, %v2321_v53  ;;  %v2278_v15 = vpop.f32.mrb[71].mxu0 }
 0x55f   :  { %v2319_v41 = vpop.f32.mrb[71].mxu1  ;;  %v2219_v34 = vmul.f32 %v3676_v39, %v2214_v61  ;;  %v2330_v33 = vmul.f32 0.5, %v2322_v23  ;;  %v2349_v28 = vpop.permute.xlu1 %2348 }
 0x560   :  { %3677 = vtanh.f32 %v2326_v10  ;;  %vm2350_vm6 = vcmp.eq.s32.totalorder %v2349_v28, 1  ;;  %v5788_v28 = vld [vmem:[#allocation31_spill] sm:$0xff] }
 0x561   :  { %v5186_v56 = vsel %vm2226_vm5, %v2219_v34, 0.0  ;;  %3679 = vtanh.f32 %v2330_v33  ;;  %v5190_v55 = vsel %vm2226_vm5, %v2219_v34, %v5086_v60  ;;  %v2335_v33 = vmul.f32 0.5, %v2324_v11  ;;  %v5240_v34 = vld [vmem:[#allocation13 + $0x4] ss:$16 sps:$4 sm:$0xff]  }
 0x562   :  { %v2362_v16 = vpack.c.bf16 %v5190_v55, %v5190_v55  ;;  %3681 = vtanh.f32 %v2323_v4 }
 0x563   :  { %3683 = vtanh.f32 %v2335_v33  ;;  %v5771_v33 = vld [vmem:[#allocation44_spill] sm:$0xff] }
 0x564   :  { %2396 = vmatmul.mubr.bf16.vlgmr.msra.gmra.mrb[72].mxu0 %v2362_v16  ;;  %2437 = vmatmul.mubr.bf16.vlgmr.msra.gmra.mrb[72].mxu1 %v2362_v16  ;;  %v5243_v16 = vld [vmem:[#allocation13 + $0xc] ss:$16 sps:$4 sm:$0xff]  }
 0x565   :  { %2488 = vmatpush1.bf16.msra.mxu0 %v4928_v43  ;;  %2529 = vmatpush1.bf16.msra.mxu1 %v4931_v44 }
 0x566   :  { %2489 = vmatprep.subr.bf16.mxu0 %v4934_v7  ;;  %2530 = vmatprep.subr.bf16.mxu1 %v4937_v3 }
 0x567   :  { %2519 = vmatprep.mubr.bf16.mxu0 %v5577_v18  ;;  %2560 = vmatprep.mubr.bf16.mxu1 %v5577_v18 }
 0x569   :  { %2490 = vmatpush1.bf16.msra.mxu0 %v4942_v46  ;;  %2531 = vmatpush1.bf16.msra.mxu1 %v4945_v48 }
 0x56a   :  { %v3678_v39 = vpop.eup %3677  ;;  %2491 = vmatprep.subr.bf16.mxu0 %v4948_v50  ;;  %2532 = vmatprep.subr.bf16.mxu1 %v4951_v51 }
 0x56b   :  { %v3680_v60 = vpop.eup %3679  ;;  %v2328_v47 = vmul.f32 0.5, %v3678_v39  ;;  %v5776_v39 = vld [vmem:[#allocation49_spill] sm:$0xff] }
 0x56c   :  { %v2332_v41 = vmul.f32 0.5, %v3680_v60  ;;  %v3682_v53 = vpop.eup %3681  ;;  %v5777_v60 = vld [vmem:[#allocation50_spill] sm:$0xff] }
 0x56d   :  { %v2329_v21 = vadd.f32 0.5, %v2328_v47  ;;  %2492 = vmatpush1.bf16.msra.mxu0 %v4954_v19  ;;  %2533 = vmatpush1.bf16.msra.mxu1 %v4957_v20  ;;  %v3684_v23 = vpop.eup %3683  ;;  %v5781_v47 = vld [vmem:[#allocation24_spill] sm:$0xff] }
 0x56e   :  { %v2333_v59 = vadd.f32 0.5, %v2332_v41  ;;  %2493 = vmatprep.subr.bf16.mxu0 %v4960_v1  ;;  %2534 = vmatprep.subr.bf16.mxu1 %v4963_v62  ;;  %v2337_v26 = vmul.f32 0.5, %v3684_v23  ;;  %v5782_v41 = vld [vmem:[#allocation25_spill] sm:$0xff] }
 0x56f   :  { %v2340_v4 = vmul.f32 %v3682_v53, %v2329_v21  ;;  %v5783_v21 = vld [vmem:[#allocation26_spill] sm:$0xff]  ;;  %v5784_v53 = vld [vmem:[#allocation27_spill] sm:$0xff]  ;;  %v5790_v23 = vld [vmem:[#allocation33_spill] sm:$0xff] }
 0x570   :  { %v2339_v22 = vmul.f32 %v2333_v59, %v5112_v5  ;;  %v5785_v59 = vld [vmem:[#allocation28_spill] sm:$0xff] }
 0x571   :  { %2494 = vmatpush1.bf16.msra.mxu0 %v4967_v6  ;;  %2535 = vmatpush1.bf16.msra.mxu1 %v4970_v63 }
 0x572   :  { %v2341_v61 = vadd.f32 %v2340_v4, %v2339_v22  ;;  %2495 = vmatprep.subr.bf16.mxu0 %v5731_v57  ;;  %2536 = vmatprep.subr.bf16.mxu1 %v5732_v31  ;;  %v5786_v4 = vld [vmem:[#allocation29_spill] sm:$0xff]  ;;  %v5787_v22 = vld [vmem:[#allocation30_spill] sm:$0xff] }
 0x574   :  { %3685 = vtanh.f32 %v2341_v61  ;;  %v5215_v45 = vsel %vm2350_vm6, %v2341_v61, %v5112_v5  ;;  %v2338_v5 = vadd.f32 0.5, %v2337_v26  ;;  %v5789_v61 = vld [vmem:[#allocation32_spill] sm:$0xff]  ;;  %v5791_v26 = vld [vmem:[#allocation34_spill] sm:$0xff] }
 0x575   :  { %2496 = vmatpush1.bf16.msra.mxu0 %v5733_v12  ;;  %2537 = vmatpush1.bf16.msra.mxu1 %v5734_v13 }
 0x576   :  { %2497 = vmatprep.subr.bf16.mxu0 %v5735_v42  ;;  %2538 = vmatprep.subr.bf16.mxu1 %v5736_v14 }
 0x579   :  { %2498 = vmatpush1.bf16.msra.mxu0 %v5737_v24  ;;  %2539 = vmatpush1.bf16.msra.mxu1 %v5738_v38 }
 0x57a   :  { %2499 = vmatprep.subr.bf16.mxu0 %v5739_v36  ;;  %2540 = vmatprep.subr.bf16.mxu1 %v5740_v52 }
 0x57d   :  { %2500 = vmatpush1.bf16.msra.mxu0 %v5741_v32  ;;  %2541 = vmatpush1.bf16.msra.mxu1 %v5742_v40 }
 0x57e   :  { %v3686_v11 = vpop.eup %3685  ;;  %2501 = vmatprep.subr.bf16.mxu0 %v5743_v17  ;;  %2542 = vmatprep.subr.bf16.mxu1 %v5016_v49 }
 0x57f   :  { %v2343_v30 = vmul.f32 %v3686_v11, %v2338_v5  ;;  %v5792_v5 = vld [vmem:[#allocation35_spill] sm:$0xff]  ;;  %v5793_v11 = vld [vmem:[#allocation36_spill] sm:$0xff] }
 0x581   :  { %v5230_v9 = vsel %vm2350_vm6, %v2343_v30, 0.0  ;;  %2502 = vmatpush1.bf16.msra.mxu0 %v5022_v25  ;;  %2543 = vmatpush1.bf16.msra.mxu1 %v5025_v54  ;;  %v5236_v10 = vsel %vm2350_vm6, %v2343_v30, %v5131_v2  ;;  %v5770_v2 = vld [vmem:[#allocation43_spill] sm:$0xff]  ;;  %v5794_v30 = vld [vmem:[#allocation37_spill] sm:$0xff] }
 0x582   :  { %v2486_v15 = vpack.c.bf16 %v5236_v10, %v5236_v10  ;;  %2611 = vmatprep.subr.bf16.mxu0 %v5240_v34  ;;  %2652 = vmatprep.subr.bf16.mxu1 %v5243_v16 }
 0x584   :  { %2520 = vmatmul.mubr.bf16.vlgmr.msra.gmra.mrb[76].mxu0 %v2486_v15  ;;  %2561 = vmatmul.mubr.bf16.vlgmr.msra.gmra.mrb[76].mxu1 %v2486_v15 }
 0x585   :  { %2612 = vmatpush1.bf16.msra.mxu0 %v4808_v8  ;;  %2653 = vmatpush1.bf16.msra.mxu1 %v4811_v29  ;;  %v5772_v8 = vld [vmem:[#allocation45_spill] sm:$0xff]  ;;  %v5773_v29 = vld [vmem:[#allocation46_spill] sm:$0xff] }
 0x586   :  { %2613 = vmatprep.subr.bf16.mxu0 %v4814_v0  ;;  %2654 = vmatprep.subr.bf16.mxu1 %v4817_v35  ;;  %v5774_v0 = vld [vmem:[#allocation47_spill] sm:$0xff]  ;;  %v5775_v35 = vld [vmem:[#allocation48_spill] sm:$0xff] }
 0x587   :  { %2643 = vmatprep.mubr.bf16.mxu0 %v5577_v18  ;;  %2684 = vmatprep.mubr.bf16.mxu1 %v5577_v18 }
 0x589   :  { %2614 = vmatpush1.bf16.msra.mxu0 %v4822_v37  ;;  %2655 = vmatpush1.bf16.msra.mxu1 %v4825_v58  ;;  %v5778_v37 = vld [vmem:[#allocation51_spill] sm:$0xff]  ;;  %v5779_v58 = vld [vmem:[#allocation22_spill] sm:$0xff] }
 0x58a   :  { %2615 = vmatprep.subr.bf16.mxu0 %v4828_v27  ;;  %2656 = vmatprep.subr.bf16.mxu1 %v5770_v2  ;;  %v5780_v27 = vld [vmem:[#allocation23_spill] sm:$0xff] }
 0x58d   :  { %2616 = vmatpush1.bf16.msra.mxu0 %v5771_v33  ;;  %2657 = vmatpush1.bf16.msra.mxu1 %v5772_v8  ;;  %v5795_v33 = vld [vmem:[#allocation67_spill] sm:$0xff] }
 0x58e   :  { %2617 = vmatprep.subr.bf16.mxu0 %v5773_v29  ;;  %2658 = vmatprep.subr.bf16.mxu1 %v5774_v0  ;;  %v5796_v29 = vld [vmem:[#allocation70_spill] sm:$0xff] }
 0x591   :  { %2618 = vmatpush1.bf16.msra.mxu0 %v5775_v35  ;;  %2659 = vmatpush1.bf16.msra.mxu1 %v5776_v39 }
 0x592   :  { %2619 = vmatprep.subr.bf16.mxu0 %v5777_v60  ;;  %2660 = vmatprep.subr.bf16.mxu1 %v5778_v37  ;;  %v5797_v60 = vld [vmem:[#allocation69_spill] sm:$0xff] }
 0x595   :  { %2620 = vmatpush1.bf16.msra.mxu0 %v5779_v58  ;;  %2661 = vmatpush1.bf16.msra.mxu1 %v5780_v27  ;;  %v5798_v58 = vld [vmem:[#allocation71_spill] sm:$0xff] }
 0x596   :  { %2621 = vmatprep.subr.bf16.mxu0 %v5781_v47  ;;  %2662 = vmatprep.subr.bf16.mxu1 %v5782_v41 }
 0x599   :  { %2622 = vmatpush1.bf16.msra.mxu0 %v5783_v21  ;;  %2663 = vmatpush1.bf16.msra.mxu1 %v5784_v53 }
 0x59a   :  { %2623 = vmatprep.subr.bf16.mxu0 %v5785_v59  ;;  %2664 = vmatprep.subr.bf16.mxu1 %v5786_v4 }
 0x59d   :  { %2624 = vmatpush1.bf16.msra.mxu0 %v5787_v22  ;;  %2665 = vmatpush1.bf16.msra.mxu1 %v5788_v28 }
 0x59e   :  { %2625 = vmatprep.subr.bf16.mxu0 %v5789_v61  ;;  %2666 = vmatprep.subr.bf16.mxu1 %v5790_v23 }
 0x5a1   :  { %2626 = vmatpush1.bf16.msra.mxu0 %v5791_v26  ;;  %2667 = vmatpush1.bf16.msra.mxu1 %v5792_v5 }
 0x5a2   :  { %2735 = vmatprep.subr.bf16.mxu0 %v5793_v11  ;;  %2776 = vmatprep.subr.bf16.mxu1 %v5794_v30 }
 0x637   :  { %v2397_v15 = vpop.f32.mrb[72].mxu0  ;;  %v2438_v2 = vpop.f32.mrb[72].mxu1 }
 0x638   :  { %v2445_v8 = vadd.f32 %v2397_v15, %v5795_v33  ;;  %v2447_v0 = vadd.f32 %v2438_v2, %v5796_v29  ;;  %v2399_v35 = vpop.f32.mrb[73].mxu0  ;;  %v2440_v39 = vpop.f32.mrb[73].mxu1  ;;  %v5799_v2 = vld [vmem:[#allocation58_spill] sm:$0xff] }
 0x639   :  { %v2446_v37 = vadd.f32 %v2399_v35, %v5797_v60  ;;  %v2448_v27 = vadd.f32 %v2440_v39, %v5798_v58  ;;  %v2401_v47 = vpop.f32.mrb[74].mxu0  ;;  %v2442_v41 = vpop.f32.mrb[74].mxu1  ;;  %v5800_v58 = vld [vmem:[#allocation88_spill] sm:$0xff] }
 0x63a   :  { %v2450_v21 = vmul.f32 0.5, %v2445_v8  ;;  %v2402_v53 = vpop.f32.mrb[75].mxu0  ;;  %v2443_v59 = vpop.f32.mrb[75].mxu1  ;;  %v5801_v47 = vld [vmem:[#allocation90_spill] sm:$0xff] }
 0x63b   :  { %v2454_v4 = vmul.f32 0.5, %v2446_v37  ;;  %v2459_v22 = vmul.f32 0.5, %v2448_v27  ;;  %v2473_v29 = vpop.permute.xlu0 %2472 }
 0x63c   :  { %3687 = vtanh.f32 %v2450_v21  ;;  %vm2474_vm7 = vcmp.eq.s32.totalorder %v2473_v29, 1 }
 0x63d   :  { %3689 = vtanh.f32 %v2454_v4  ;;  %v5802_v4 = vld [vmem:[#allocation89_spill] sm:$0xff] }
 0x63e   :  { %3691 = vtanh.f32 %v2447_v0 }
 0x63f   :  { %3693 = vtanh.f32 %v2459_v22 }
 0x646   :  { %v3688_v28 = vpop.eup %3687 }
 0x647   :  { %v3690_v61 = vpop.eup %3689  ;;  %v2452_v23 = vmul.f32 0.5, %v3688_v28  ;;  %v5803_v28 = vld [vmem:[#allocation92_spill] sm:$0xff] }
 0x648   :  { %v2456_v26 = vmul.f32 0.5, %v3690_v61  ;;  %v3692_v11 = vpop.eup %3691 }
 0x649   :  { %v2453_v5 = vadd.f32 0.5, %v2452_v23  ;;  %v3694_v0 = vpop.eup %3693 }
 0x64a   :  { %v2457_v30 = vadd.f32 0.5, %v2456_v26  ;;  %v2461_v39 = vmul.f32 0.5, %v3694_v0 }
 0x64b   :  { %v2464_v15 = vmul.f32 %v3692_v11, %v2453_v5 }
 0x64c   :  { %v2463_v33 = vmul.f32 %v2457_v30, %v5799_v2  ;;  %v2462_v59 = vadd.f32 0.5, %v2461_v39 }
 0x64e   :  { %v2465_v8 = vadd.f32 %v2464_v15, %v2463_v33 }
 0x650   :  { %3695 = vtanh.f32 %v2465_v8  ;;  %v5287_v35 = vsel %vm2474_vm7, %v2465_v8, %v5799_v2 }
 0x657   :  { %v2521_v60 = vpop.f32.mrb[76].mxu0  ;;  %v2562_v37 = vpop.f32.mrb[76].mxu1 }
 0x658   :  { %v2569_v27 = vadd.f32 %v2521_v60, %v5800_v58  ;;  %v2571_v41 = vadd.f32 %v2562_v37, %v5801_v47  ;;  %v2523_v21 = vpop.f32.mrb[77].mxu0  ;;  %v2564_v53 = vpop.f32.mrb[77].mxu1  ;;  %v3830_v58 = vld [vmem:[#allocation13 + $0x88] ss:$16 sps:$4 sm:$0xff]   ;;  %v3832_v47 = vld [vmem:[#allocation13 + $0xac] ss:$16 sps:$4 sm:$0xff]  }
 0x659   :  { %v2570_v22 = vadd.f32 %v2523_v21, %v5802_v4  ;;  %v2572_v61 = vadd.f32 %v2564_v53, %v5803_v28  ;;  %v2525_v23 = vpop.f32.mrb[78].mxu0  ;;  %v2566_v26 = vpop.f32.mrb[78].mxu1  ;;  %v3834_v21 = vld [vmem:[#allocation13 + $0xa8] ss:$16 sps:$4 sm:$0xff]   ;;  %v3835_v53 = vld [vmem:[#allocation13 + $0xc4] ss:$16 sps:$4 sm:$0xff]  }
 0x65a   :  { %v3696_v5 = vpop.eup %3695  ;;  %v2574_v11 = vmul.f32 0.5, %v2569_v27  ;;  %v2526_v30 = vpop.f32.mrb[79].mxu0  ;;  %v3831_v27 = vld [vmem:[#allocation13 + $0xa4] ss:$16 sps:$4 sm:$0xff]   ;;  %v3837_v4 = vld [vmem:[#allocation13 + $0xc0] ss:$16 sps:$4 sm:$0xff]  }
 0x65b   :  { %v2567_v15 = vpop.f32.mrb[79].mxu1  ;;  %v2467_v2 = vmul.f32 %v3696_v5, %v2462_v59  ;;  %v2578_v33 = vmul.f32 0.5, %v2570_v22  ;;  %v3836_v59 = vld [vmem:[#allocation13 + $0xcc] ss:$16 sps:$4 sm:$0xff]   ;;  %v3838_v22 = vld [vmem:[#allocation13 + $0xc8] ss:$16 sps:$4 sm:$0xff]  }
 0x65c   :  { %3697 = vtanh.f32 %v2574_v11  ;;  %v3839_v28 = vld [vmem:[#allocation13 + $0xe4] ss:$16 sps:$4 sm:$0xff]   ;;  %v3841_v23 = vld [vmem:[#allocation13 + $0xe0] ss:$16 sps:$4 sm:$0xff]   ;;  %v3842_v26 = vld [vmem:[#allocation13 + $0xe8] ss:$16 sps:$4 sm:$0xff]  }
 0x65d   :  { %v2477_v8 = vsel %vm2474_vm7, %v2467_v2, 0.0  ;;  %3699 = vtanh.f32 %v2578_v33  ;;  %v5296_v0 = vsel %vm2474_vm7, %v2467_v2, %v5190_v55  ;;  %v3843_v5 = vld [vmem:[#allocation13 + $0x104] ss:$16 sps:$4 sm:$0xff]   ;;  %v3844_v11 = vld [vmem:[#allocation13 + $0x10c] ss:$16 sps:$4 sm:$0xff]  }
 0x65e   :  { %v3415_v39 = vpack.c.bf16 %v2477_v8, %v5186_v56  ;;  %v2610_v60 = vpack.c.bf16 %v5296_v0, %v5296_v0  ;;  %3701 = vtanh.f32 %v2571_v41  ;;  %v2583_v56 = vmul.f32 0.5, %v2572_v61  ;;  %v3833_v41 = vld [vmem:[#allocation13 + $0xa0] ss:$16 sps:$4 sm:$0xff]   ;;  %v3840_v61 = vld [vmem:[#allocation13 + $0xec] ss:$16 sps:$4 sm:$0xff]  }
 0x65f   :  { %v5804_v2 = vld [vmem:[#allocation72_spill] sm:$0xff]  ;;  %v5805_v8 = vld [vmem:[#allocation74_spill] sm:$0xff] }
 0x660   :  { %3443 = vst [vmem:[#allocation15 + $0x10] sm:$0xff] %v3415_v39   ;;  %2644 = vmatmul.mubr.bf16.vlgmr.msra.gmra.mrb[80].mxu0 %v2610_v60  ;;  %2685 = vmatmul.mubr.bf16.vlgmr.msra.gmra.mrb[80].mxu1 %v2610_v60  ;;  %3703 = vtanh.f32 %v2583_v56 }
 0x661   :  { %2736 = vmatpush1.bf16.msra.mxu0 %v4928_v43  ;;  %2777 = vmatpush1.bf16.msra.mxu1 %v4931_v44 }
 0x662   :  { %2737 = vmatprep.subr.bf16.mxu0 %v4934_v7  ;;  %2778 = vmatprep.subr.bf16.mxu1 %v4937_v3 }
 0x663   :  { %2767 = vmatprep.mubr.bf16.mxu0 %v5577_v18  ;;  %2808 = vmatprep.mubr.bf16.mxu1 %v5577_v18 }
 0x665   :  { %2738 = vmatpush1.bf16.msra.mxu0 %v4942_v46  ;;  %2779 = vmatpush1.bf16.msra.mxu1 %v4945_v48 }
 0x666   :  { %v3698_v55 = vpop.eup %3697  ;;  %2739 = vmatprep.subr.bf16.mxu0 %v4948_v50  ;;  %2780 = vmatprep.subr.bf16.mxu1 %v4951_v51  ;;  %v2597_v50 = vpop.permute.xlu1 %2596 }
 0x667   :  { %v3700_v43 = vpop.eup %3699  ;;  %v2576_v44 = vmul.f32 0.5, %v3698_v55  ;;  %vm2598_vm8 = vcmp.eq.s32.totalorder %v2597_v50, 1  ;;  %v5806_v55 = vld [vmem:[#allocation73_spill] sm:$0xff] }
 0x668   :  { %v2580_v29 = vmul.f32 0.5, %v3700_v43  ;;  %v3702_v3 = vpop.eup %3701 }
 0x669   :  { %v2577_v7 = vadd.f32 0.5, %v2576_v44  ;;  %2740 = vmatpush1.bf16.msra.mxu0 %v4954_v19  ;;  %2781 = vmatpush1.bf16.msra.mxu1 %v4957_v20  ;;  %v5807_v44 = vld [vmem:[#allocation76_spill] sm:$0xff] }
 0x66a   :  { %v2581_v37 = vadd.f32 0.5, %v2580_v29  ;;  %2741 = vmatprep.subr.bf16.mxu0 %v4960_v1  ;;  %2782 = vmatprep.subr.bf16.mxu1 %v4963_v62  ;;  %v3704_v20 = vpop.eup %3703 }
 0x66b   :  { %v2588_v46 = vmul.f32 %v3702_v3, %v2577_v7  ;;  %v2585_v1 = vmul.f32 0.5, %v3704_v20 }
 0x66c   :  { %v2587_v48 = vmul.f32 %v2581_v37, %v5215_v45 }
 0x66d   :  { %2742 = vmatpush1.bf16.msra.mxu0 %v4967_v6  ;;  %2783 = vmatpush1.bf16.msra.mxu1 %v4970_v63  ;;  %v2586_v62 = vadd.f32 0.5, %v2585_v1 }
 0x66e   :  { %v2589_v51 = vadd.f32 %v2588_v46, %v2587_v48  ;;  %2743 = vmatprep.subr.bf16.mxu0 %v5731_v57  ;;  %2784 = vmatprep.subr.bf16.mxu1 %v5732_v31 }
 0x670   :  { %3705 = vtanh.f32 %v2589_v51  ;;  %v5322_v19 = vsel %vm2598_vm8, %v2589_v51, %v5215_v45  ;;  %v3825_v45 = vld [vmem:[#allocation13 + $0x60] ss:$16 sps:$4 sm:$0xff]  }
 0x671   :  { %2744 = vmatpush1.bf16.msra.mxu0 %v5733_v12  ;;  %2785 = vmatpush1.bf16.msra.mxu1 %v5734_v13 }
 0x672   :  { %2745 = vmatprep.subr.bf16.mxu0 %v5735_v42  ;;  %2786 = vmatprep.subr.bf16.mxu1 %v5736_v14  ;;  %v3816_v42 = vld [vmem:[#allocation13 + $0x2c] ss:$16 sps:$4 sm:$0xff]   ;;  %v3817_v14 = vld [vmem:[#allocation13 + $0x20] ss:$16 sps:$4 sm:$0xff]  }
 0x675   :  { %2746 = vmatpush1.bf16.msra.mxu0 %v5737_v24  ;;  %2787 = vmatpush1.bf16.msra.mxu1 %v5738_v38  ;;  %v3818_v24 = vld [vmem:[#allocation13 + $0x28] ss:$16 sps:$4 sm:$0xff]   ;;  %v3819_v38 = vld [vmem:[#allocation13 + $0x44] ss:$16 sps:$4 sm:$0xff]  }
 0x676   :  { %2747 = vmatprep.subr.bf16.mxu0 %v5739_v36  ;;  %2788 = vmatprep.subr.bf16.mxu1 %v5740_v52  ;;  %v3820_v36 = vld [vmem:[#allocation13 + $0x4c] ss:$16 sps:$4 sm:$0xff]   ;;  %v3821_v52 = vld [vmem:[#allocation13 + $0x40] ss:$16 sps:$4 sm:$0xff]  }
 0x679   :  { %2748 = vmatpush1.bf16.msra.mxu0 %v5741_v32  ;;  %2789 = vmatpush1.bf16.msra.mxu1 %v5742_v40  ;;  %v3822_v32 = vld [vmem:[#allocation13 + $0x48] ss:$16 sps:$4 sm:$0xff]   ;;  %v3823_v40 = vld [vmem:[#allocation13 + $0x64] ss:$16 sps:$4 sm:$0xff]  }
 0x67a   :  { %v3706_v6 = vpop.eup %3705  ;;  %2749 = vmatprep.subr.bf16.mxu0 %v5743_v17  ;;  %2790 = vmatprep.subr.bf16.mxu1 %v5016_v49  ;;  %v3813_v49 = vld [vmem:[#allocation13] ss:$16 sps:$4 sm:$0xff]   ;;  %v3824_v17 = vld [vmem:[#allocation13 + $0x6c] ss:$16 sps:$4 sm:$0xff]  }
 0x67b   :  { %v2591_v63 = vmul.f32 %v3706_v6, %v2586_v62 }
 0x67d   :  { %v2601_v57 = vsel %vm2598_vm8, %v2591_v63, 0.0  ;;  %2750 = vmatpush1.bf16.msra.mxu0 %v5022_v25  ;;  %2791 = vmatpush1.bf16.msra.mxu1 %v5025_v54  ;;  %v5341_v31 = vsel %vm2598_vm8, %v2591_v63, %v5236_v10  ;;  %v3814_v25 = vld [vmem:[#allocation13 + $0x8] ss:$16 sps:$4 sm:$0xff]   ;;  %v3815_v54 = vld [vmem:[#allocation13 + $0x24] ss:$16 sps:$4 sm:$0xff]  }
 0x67e   :  { %v3430_v12 = vpack.c.bf16 %v5230_v9, %v2601_v57  ;;  %v2734_v13 = vpack.c.bf16 %v5341_v31, %v5341_v31  ;;  %2859 = vmatprep.subr.bf16.mxu0 %v5240_v34  ;;  %2900 = vmatprep.subr.bf16.mxu1 %v5243_v16  ;;  %v3826_v9 = vld [vmem:[#allocation13 + $0x68] ss:$16 sps:$4 sm:$0xff]   ;;  %v3827_v10 = vld [vmem:[#allocation13 + $0x84] ss:$16 sps:$4 sm:$0xff]   ;;  %v3828_v34 = vld [vmem:[#allocation13 + $0x8c] ss:$16 sps:$4 sm:$0xff]  }
 0x67f   :  { %v3829_v16 = vld [vmem:[#allocation13 + $0x80] ss:$16 sps:$4 sm:$0xff]  }
 0x680   :  { %3445 = vst [vmem:[#allocation16 + $0x8] sm:$0xff] %v3430_v12   ;;  %2768 = vmatmul.mubr.bf16.vlgmr.msra.gmra.mrb[84].mxu0 %v2734_v13  ;;  %2809 = vmatmul.mubr.bf16.vlgmr.msra.gmra.mrb[84].mxu1 %v2734_v13 }
 0x681   :  { %2860 = vmatpush1.bf16.msra.mxu0 %v3813_v49  ;;  %2901 = vmatpush1.bf16.msra.mxu1 %v3814_v25  ;;  %v2721_v25 = vpop.permute.xlu0 %2720 }
 0x682   :  { %2861 = vmatprep.subr.bf16.mxu0 %v3815_v54  ;;  %2902 = vmatprep.subr.bf16.mxu1 %v3816_v42  ;;  %vm2722_vm9 = vcmp.eq.s32.totalorder %v2721_v25, 1  ;;  %v3864_v25 = vld [vmem:[#allocation13 + $0x1ac] ss:$16 sps:$4 sm:$0xff]  }
 0x683   :  { %2891 = vmatprep.mubr.bf16.mxu0 %v5577_v18  ;;  %2932 = vmatprep.mubr.bf16.mxu1 %v5577_v18 }
 0x685   :  { %2862 = vmatpush1.bf16.msra.mxu0 %v3817_v14  ;;  %2903 = vmatpush1.bf16.msra.mxu1 %v3818_v24 }
 0x686   :  { %2863 = vmatprep.subr.bf16.mxu0 %v3819_v38  ;;  %2904 = vmatprep.subr.bf16.mxu1 %v3820_v36 }
 0x689   :  { %2864 = vmatpush1.bf16.msra.mxu0 %v3821_v52  ;;  %2905 = vmatpush1.bf16.msra.mxu1 %v3822_v32  ;;  %v5808_v52 = vld [vmem:[#allocation83_spill] sm:$0xff] }
 0x68a   :  { %2865 = vmatprep.subr.bf16.mxu0 %v3823_v40  ;;  %2906 = vmatprep.subr.bf16.mxu1 %v3824_v17  ;;  %v5809_v40 = vld [vmem:[#allocation86_spill] sm:$0xff] }
 0x68d   :  { %2866 = vmatpush1.bf16.msra.mxu0 %v3825_v45  ;;  %2907 = vmatpush1.bf16.msra.mxu1 %v3826_v9 }
 0x68e   :  { %2867 = vmatprep.subr.bf16.mxu0 %v3827_v10  ;;  %2908 = vmatprep.subr.bf16.mxu1 %v3828_v34  ;;  %v5810_v34 = vld [vmem:[#allocation85_spill] sm:$0xff] }
 0x691   :  { %2868 = vmatpush1.bf16.msra.mxu0 %v3829_v16  ;;  %2909 = vmatpush1.bf16.msra.mxu1 %v3830_v58  ;;  %v5811_v58 = vld [vmem:[#allocation87_spill] sm:$0xff] }
 0x692   :  { %2869 = vmatprep.subr.bf16.mxu0 %v3831_v27  ;;  %2910 = vmatprep.subr.bf16.mxu1 %v3832_v47 }
 0x695   :  { %2870 = vmatpush1.bf16.msra.mxu0 %v3833_v41  ;;  %2911 = vmatpush1.bf16.msra.mxu1 %v3834_v21 }
 0x696   :  { %2871 = vmatprep.subr.bf16.mxu0 %v3835_v53  ;;  %2912 = vmatprep.subr.bf16.mxu1 %v3836_v59 }
 0x699   :  { %2872 = vmatpush1.bf16.msra.mxu0 %v3837_v4  ;;  %2913 = vmatpush1.bf16.msra.mxu1 %v3838_v22 }
 0x69a   :  { %2873 = vmatprep.subr.bf16.mxu0 %v3839_v28  ;;  %2914 = vmatprep.subr.bf16.mxu1 %v3840_v61 }
 0x69d   :  { %2874 = vmatpush1.bf16.msra.mxu0 %v3841_v23  ;;  %2915 = vmatpush1.bf16.msra.mxu1 %v3842_v26  ;;  %v3845_v26 = vld [vmem:[#allocation13 + $0x100] ss:$16 sps:$4 sm:$0xff]  }
 0x69e   :  { %2983 = vmatprep.subr.bf16.mxu0 %v3843_v5  ;;  %3024 = vmatprep.subr.bf16.mxu1 %v3844_v11  ;;  %v3846_v5 = vld [vmem:[#allocation13 + $0x108] ss:$16 sps:$4 sm:$0xff]   ;;  %v3847_v11 = vld [vmem:[#allocation13 + $0x124] ss:$16 sps:$4 sm:$0xff]  }
 0x733   :  { %v2645_v30 = vpop.f32.mrb[80].mxu0  ;;  %v2686_v15 = vpop.f32.mrb[80].mxu1 }
 0x734   :  { %v2693_v33 = vadd.f32 %v2645_v30, %v5804_v2  ;;  %v2695_v39 = vadd.f32 %v2686_v15, %v5805_v8  ;;  %v2647_v60 = vpop.f32.mrb[81].mxu0  ;;  %v2688_v56 = vpop.f32.mrb[81].mxu1  ;;  %v3848_v30 = vld [vmem:[#allocation13 + $0x12c] ss:$16 sps:$4 sm:$0xff]   ;;  %v3849_v2 = vld [vmem:[#allocation13 + $0x120] ss:$16 sps:$4 sm:$0xff]  }
 0x735   :  { %v2694_v43 = vadd.f32 %v2647_v60, %v5806_v55  ;;  %v2696_v29 = vadd.f32 %v2688_v56, %v5807_v44  ;;  %v2649_v7 = vpop.f32.mrb[82].mxu0  ;;  %v2690_v3 = vpop.f32.mrb[82].mxu1  ;;  %v3851_v8 = vld [vmem:[#allocation13 + $0x144] ss:$16 sps:$4 sm:$0xff]   ;;  %v3853_v44 = vld [vmem:[#allocation13 + $0x140] ss:$16 sps:$4 sm:$0xff]  }
 0x736   :  { %v2698_v37 = vmul.f32 0.5, %v2693_v33  ;;  %v2650_v46 = vpop.f32.mrb[83].mxu0  ;;  %v2691_v48 = vpop.f32.mrb[83].mxu1  ;;  %v3855_v3 = vld [vmem:[#allocation13 + $0x164] ss:$16 sps:$4 sm:$0xff]  }
 0x737   :  { %v2702_v50 = vmul.f32 0.5, %v2694_v43  ;;  %v2707_v51 = vmul.f32 0.5, %v2696_v29  ;;  %v3854_v29 = vld [vmem:[#allocation13 + $0x148] ss:$16 sps:$4 sm:$0xff]  }
 0x738   :  { %3707 = vtanh.f32 %v2698_v37  ;;  %v3856_v37 = vld [vmem:[#allocation13 + $0x16c] ss:$16 sps:$4 sm:$0xff]  }
 0x739   :  { %3709 = vtanh.f32 %v2702_v50  ;;  %v3857_v50 = vld [vmem:[#allocation13 + $0x160] ss:$16 sps:$4 sm:$0xff]  }
 0x73a   :  { %3711 = vtanh.f32 %v2695_v39  ;;  %v3852_v39 = vld [vmem:[#allocation13 + $0x14c] ss:$16 sps:$4 sm:$0xff]  }
 0x73b   :  { %3713 = vtanh.f32 %v2707_v51  ;;  %v3858_v51 = vld [vmem:[#allocation13 + $0x168] ss:$16 sps:$4 sm:$0xff]  }
 0x742   :  { %v3708_v20 = vpop.eup %3707 }
 0x743   :  { %v3710_v1 = vpop.eup %3709  ;;  %v2700_v62 = vmul.f32 0.5, %v3708_v20  ;;  %v2845_v20 = vpop.permute.xlu1 %2844 }
 0x744   :  { %v2704_v6 = vmul.f32 0.5, %v3710_v1  ;;  %v3712_v57 = vpop.eup %3711  ;;  %vm2846_vm10 = vcmp.eq.s32.totalorder %v2845_v20, 1 }
 0x745   :  { %v2701_v63 = vadd.f32 0.5, %v2700_v62  ;;  %v3714_v14 = vpop.eup %3713  ;;  %v3859_v62 = vld [vmem:[#allocation13 + $0x184] ss:$16 sps:$4 sm:$0xff]  }
 0x746   :  { %v2705_v12 = vadd.f32 0.5, %v2704_v6  ;;  %v2709_v24 = vmul.f32 0.5, %v3714_v14  ;;  %v3860_v6 = vld [vmem:[#allocation13 + $0x18c] ss:$16 sps:$4 sm:$0xff]   ;;  %v3865_v14 = vld [vmem:[#allocation13 + $0x1a0] ss:$16 sps:$4 sm:$0xff]  }
 0x747   :  { %v2712_v13 = vmul.f32 %v3712_v57, %v2701_v63  ;;  %v3861_v57 = vld [vmem:[#allocation13 + $0x180] ss:$16 sps:$4 sm:$0xff]  }
 0x748   :  { %v2711_v49 = vmul.f32 %v2705_v12, %v5287_v35  ;;  %v2710_v10 = vadd.f32 0.5, %v2709_v24  ;;  %v3862_v12 = vld [vmem:[#allocation13 + $0x188] ss:$16 sps:$4 sm:$0xff]  }
 0x749   :  { %v3866_v24 = vld [vmem:[#allocation13 + $0x1a8] ss:$16 sps:$4 sm:$0xff]  }
 0x74a   :  { %v2713_v54 = vadd.f32 %v2712_v13, %v2711_v49  ;;  %v3863_v49 = vld [vmem:[#allocation13 + $0x1a4] ss:$16 sps:$4 sm:$0xff]  }
 0x74c   :  { %3715 = vtanh.f32 %v2713_v54  ;;  %v5357_v42 = vsel %vm2722_vm9, %v2713_v54, %v5287_v35 }
 0x753   :  { %v2769_v38 = vpop.f32.mrb[84].mxu0  ;;  %v2810_v36 = vpop.f32.mrb[84].mxu1 }
 0x754   :  { %v2817_v32 = vadd.f32 %v2769_v38, %v5808_v52  ;;  %v2819_v17 = vadd.f32 %v2810_v36, %v5809_v40  ;;  %v2771_v45 = vpop.f32.mrb[85].mxu0  ;;  %v2812_v9 = vpop.f32.mrb[85].mxu1  ;;  %v3867_v38 = vld [vmem:[#allocation13 + $0x1c4] ss:$16 sps:$4 sm:$0xff]   ;;  %v3868_v36 = vld [vmem:[#allocation13 + $0x1cc] ss:$16 sps:$4 sm:$0xff]  }
 0x755   :  { %v2818_v16 = vadd.f32 %v2771_v45, %v5810_v34  ;;  %v2820_v27 = vadd.f32 %v2812_v9, %v5811_v58  ;;  %v2773_v47 = vpop.f32.mrb[86].mxu0  ;;  %v2814_v41 = vpop.f32.mrb[86].mxu1  ;;  %v3869_v52 = vld [vmem:[#allocation13 + $0x1c0] ss:$16 sps:$4 sm:$0xff]   ;;  %v3872_v45 = vld [vmem:[#allocation13 + $0x1ec] ss:$16 sps:$4 sm:$0xff]  }
 0x756   :  { %v3716_v21 = vpop.eup %3715  ;;  %v2822_v35 = vmul.f32 0.5, %v2817_v32  ;;  %v2774_v53 = vpop.f32.mrb[87].mxu0  ;;  %v3870_v32 = vld [vmem:[#allocation13 + $0x1c8] ss:$16 sps:$4 sm:$0xff]   ;;  %v3873_v34 = vld [vmem:[#allocation13 + $0x1e0] ss:$16 sps:$4 sm:$0xff]  }
 0x757   :  { %v2815_v59 = vpop.f32.mrb[87].mxu1  ;;  %v2715_v4 = vmul.f32 %v3716_v21, %v2710_v10  ;;  %v2826_v22 = vmul.f32 0.5, %v2818_v16  ;;  %v2831_v15 = vmul.f32 0.5, %v2820_v27  ;;  %v3874_v16 = vld [vmem:[#allocation13 + $0x1e8] ss:$16 sps:$4 sm:$0xff]   ;;  %v5813_v53 = vld [vmem:[#allocation78_spill] sm:$0xff] }
 0x758   :  { %3717 = vtanh.f32 %v2822_v35  ;;  %v5812_v21 = vld [vmem:[#allocation75_spill] sm:$0xff] }
 0x759   :  { %v5364_v28 = vsel %vm2722_vm9, %v2715_v4, 0.0  ;;  %3719 = vtanh.f32 %v2826_v22  ;;  %v2724_v61 = vsel %vm2722_vm9, %v2715_v4, %v5296_v0  ;;  %v3850_v0 = vld [vmem:[#allocation13 + $0x128] ss:$16 sps:$4 sm:$0xff]  }
 0x75a   :  { %v2858_v23 = vpack.c.bf16 %v2724_v61, %v2724_v61  ;;  %3721 = vtanh.f32 %v2819_v17  ;;  %v3871_v17 = vld [vmem:[#allocation13 + $0x1e4] ss:$16 sps:$4 sm:$0xff]   ;;  %v5814_v61 = vld [vmem:[#allocation77_spill] sm:$0xff] }
 0x75b   :  { %3723 = vtanh.f32 %v2831_v15 }
 0x75c   :  { %2892 = vmatmul.mubr.bf16.vlgmr.msra.gmra.mrb[88].mxu0 %v2858_v23  ;;  %2933 = vmatmul.mubr.bf16.vlgmr.msra.gmra.mrb[88].mxu1 %v2858_v23 }
 0x75d   :  { %2984 = vmatpush1.bf16.msra.mxu0 %v3845_v26  ;;  %3025 = vmatpush1.bf16.msra.mxu1 %v3846_v5  ;;  %v5815_v26 = vld [vmem:[#allocation79_spill] sm:$0xff] }
 0x75e   :  { %2985 = vmatprep.subr.bf16.mxu0 %v3847_v11  ;;  %3026 = vmatprep.subr.bf16.mxu1 %v3848_v30 }
 0x75f   :  { %3015 = vmatprep.mubr.bf16.mxu0 %v5577_v18  ;;  %3056 = vmatprep.mubr.bf16.mxu1 %v5577_v18 }
 0x761   :  { %2986 = vmatpush1.bf16.msra.mxu0 %v3849_v2  ;;  %3027 = vmatpush1.bf16.msra.mxu1 %v3850_v0 }
 0x762   :  { %v3718_v33 = vpop.eup %3717  ;;  %2987 = vmatprep.subr.bf16.mxu0 %v3851_v8  ;;  %3028 = vmatprep.subr.bf16.mxu1 %v3852_v39 }
 0x763   :  { %v3720_v60 = vpop.eup %3719  ;;  %v2824_v56 = vmul.f32 0.5, %v3718_v33 }
 0x764   :  { %v2828_v55 = vmul.f32 0.5, %v3720_v60  ;;  %v3722_v18 = vpop.eup %3721 }
 0x765   :  { %v2825_v43 = vadd.f32 0.5, %v2824_v56  ;;  %2988 = vmatpush1.bf16.msra.mxu0 %v3853_v44  ;;  %3029 = vmatpush1.bf16.msra.mxu1 %v3854_v29  ;;  %v3724_v13 = vpop.eup %3723 }
 0x766   :  { %v2829_v7 = vadd.f32 0.5, %v2828_v55  ;;  %2989 = vmatprep.subr.bf16.mxu0 %v3855_v3  ;;  %3030 = vmatprep.subr.bf16.mxu1 %v3856_v37  ;;  %v2833_v54 = vmul.f32 0.5, %v3724_v13  ;;  %v5818_v13 = vld [vmem:[#allocation81_spill] sm:$0xff] }
 0x767   :  { %v2836_v46 = vmul.f32 %v3722_v18, %v2825_v43 }
 0x768   :  { %v2835_v48 = vmul.f32 %v2829_v7, %v5322_v19 }
 0x769   :  { %2990 = vmatpush1.bf16.msra.mxu0 %v3857_v50  ;;  %3031 = vmatpush1.bf16.msra.mxu1 %v3858_v51  ;;  %v5816_v51 = vld [vmem:[#allocation80_spill] sm:$0xff] }
 0x76a   :  { %v2837_v1 = vadd.f32 %v2836_v46, %v2835_v48  ;;  %2991 = vmatprep.subr.bf16.mxu0 %v3859_v62  ;;  %3032 = vmatprep.subr.bf16.mxu1 %v3860_v6  ;;  %v2969_v46 = vpop.permute.xlu0 %2968 }
 0x76b   :  { %vm2970_vm11 = vcmp.eq.s32.totalorder %v2969_v46, 1 }
 0x76c   :  { %3725 = vtanh.f32 %v2837_v1  ;;  %v5373_v63 = vsel %vm2846_vm10, %v2837_v1, %v5322_v19  ;;  %v2834_v19 = vadd.f32 0.5, %v2833_v54  ;;  %v5817_v1 = vld [vmem:[#allocation82_spill] sm:$0xff] }
 0x76d   :  { %2992 = vmatpush1.bf16.msra.mxu0 %v3861_v57  ;;  %3033 = vmatpush1.bf16.msra.mxu1 %v3862_v12 }
 0x76e   :  { %2993 = vmatprep.subr.bf16.mxu0 %v3863_v49  ;;  %3034 = vmatprep.subr.bf16.mxu1 %v3864_v25  ;;  %v5819_v25 = vld [vmem:[#allocation84_spill] sm:$0xff] }
 0x771   :  { %2994 = vmatpush1.bf16.msra.mxu0 %v3865_v14  ;;  %3035 = vmatpush1.bf16.msra.mxu1 %v3866_v24 }
 0x772   :  { %2995 = vmatprep.subr.bf16.mxu0 %v3867_v38  ;;  %3036 = vmatprep.subr.bf16.mxu1 %v3868_v36 }
 0x775   :  { %2996 = vmatpush1.bf16.msra.mxu0 %v3869_v52  ;;  %3037 = vmatpush1.bf16.msra.mxu1 %v3870_v32 }
 0x776   :  { %v3726_v40 = vpop.eup %3725  ;;  %2997 = vmatprep.subr.bf16.mxu0 %v3871_v17  ;;  %3038 = vmatprep.subr.bf16.mxu1 %v3872_v45 }
 0x777   :  { %v2839_v9 = vmul.f32 %v3726_v40, %v2834_v19 }
 0x779   :  { %v5376_v10 = vsel %vm2846_vm10, %v2839_v9, 0.0  ;;  %2998 = vmatpush1.bf16.msra.mxu0 %v3873_v34  ;;  %3039 = vmatpush1.bf16.msra.mxu1 %v3874_v16  ;;  %v2848_v58 = vsel %vm2846_vm10, %v2839_v9, %v5341_v31 }
 0x77a   :  { %v2982_v27 = vpack.c.bf16 %v2848_v58, %v2848_v58 }
 0x77c   :  { %3016 = vmatmul.mubr.bf16.vlgmr.msra.gmra.mrb[92].mxu0 %v2982_v27  ;;  %3057 = vmatmul.mubr.bf16.vlgmr.msra.gmra.mrb[92].mxu1 %v2982_v27 }
 0x82f   :  { %v2893_v47 = vpop.f32.mrb[88].mxu0  ;;  %v2934_v41 = vpop.f32.mrb[88].mxu1 }
 0x830   :  { %v2941_v35 = vadd.f32 %v2893_v47, %v5812_v21  ;;  %v2943_v59 = vadd.f32 %v2934_v41, %v5813_v53  ;;  %v2895_v4 = vpop.f32.mrb[89].mxu0  ;;  %v2936_v22 = vpop.f32.mrb[89].mxu1 }
 0x831   :  { %v2942_v23 = vadd.f32 %v2895_v4, %v5814_v61  ;;  %v2944_v5 = vadd.f32 %v2936_v22, %v5815_v26  ;;  %v2897_v11 = vpop.f32.mrb[90].mxu0  ;;  %v2938_v30 = vpop.f32.mrb[90].mxu1 }
 0x832   :  { %v2946_v15 = vmul.f32 0.5, %v2941_v35  ;;  %v2898_v2 = vpop.f32.mrb[91].mxu0  ;;  %v2939_v31 = vpop.f32.mrb[91].mxu1 }
 0x833   :  { %v2950_v0 = vmul.f32 0.5, %v2942_v23  ;;  %v2955_v33 = vmul.f32 0.5, %v2944_v5 }
 0x834   :  { %3727 = vtanh.f32 %v2946_v15 }
 0x835   :  { %3729 = vtanh.f32 %v2950_v0 }
 0x836   :  { %3731 = vtanh.f32 %v2943_v59 }
 0x837   :  { %3733 = vtanh.f32 %v2955_v33 }
 0x83e   :  { %v3728_v8 = vpop.eup %3727 }
 0x83f   :  { %v3730_v39 = vpop.eup %3729  ;;  %v2948_v60 = vmul.f32 0.5, %v3728_v8 }
 0x840   :  { %v2952_v56 = vmul.f32 0.5, %v3730_v39  ;;  %v3732_v43 = vpop.eup %3731 }
 0x841   :  { %v2949_v55 = vadd.f32 0.5, %v2948_v60  ;;  %v3734_v3 = vpop.eup %3733 }
 0x842   :  { %v2953_v44 = vadd.f32 0.5, %v2952_v56  ;;  %v2957_v37 = vmul.f32 0.5, %v3734_v3 }
 0x843   :  { %v2960_v29 = vmul.f32 %v3732_v43, %v2949_v55 }
 0x844   :  { %v2959_v18 = vmul.f32 %v2953_v44, %v5357_v42  ;;  %v2958_v12 = vadd.f32 0.5, %v2957_v37 }
 0x846   :  { %v2961_v7 = vadd.f32 %v2960_v29, %v2959_v18 }
 0x848   :  { %3735 = vtanh.f32 %v2961_v7 }
 0x84f   :  { %v3017_v48 = vpop.f32.mrb[92].mxu0  ;;  %v3058_v50 = vpop.f32.mrb[92].mxu1 }
 0x850   :  { %v3065_v20 = vadd.f32 %v3017_v48, %v5816_v51  ;;  %v3067_v62 = vadd.f32 %v3058_v50, %v5817_v1  ;;  %v3019_v6 = vpop.f32.mrb[93].mxu0  ;;  %v3060_v57 = vpop.f32.mrb[93].mxu1 }
 0x851   :  { %v3066_v49 = vadd.f32 %v3019_v6, %v5818_v13  ;;  %v3068_v54 = vadd.f32 %v3060_v57, %v5819_v25  ;;  %v3021_v14 = vpop.f32.mrb[94].mxu0  ;;  %v3062_v42 = vpop.f32.mrb[94].mxu1 }
 0x852   :  { %v3736_v24 = vpop.eup %3735  ;;  %v3069_v38 = vmul.f32 0.5, %v3065_v20  ;;  %v3022_v36 = vpop.f32.mrb[95].mxu0 }
 0x853   :  { %v3063_v19 = vpop.f32.mrb[95].mxu1  ;;  %v2963_v52 = vmul.f32 %v3736_v24, %v2958_v12  ;;  %v3073_v32 = vmul.f32 0.5, %v3066_v49 }
 0x854   :  { %3737 = vtanh.f32 %v3069_v38 }
 0x855   :  { %v2973_v40 = vsel %vm2970_vm11, %v2963_v52, 0.0  ;;  %3739 = vtanh.f32 %v3073_v32 }
 0x856   :  { %v3420_v17 = vpack.c.bf16 %v2973_v40, %v5364_v28  ;;  %3741 = vtanh.f32 %v3067_v62 }
 0x858   :  { %3444 = vst [vmem:[#allocation15 + $0x18] sm:$0xff] %v3420_v17  }
 0x859   :  { %3930 = shalt.err (!%p3927_p6)
}
 0x85a   :  { %s3931_s26 = scalar_lea.hbm %s5428_s6, 512 }
 0x85b   :  { %p3932_p7 = scmp.ne.s32.totalorder %s5428_s6, %s3931_s26  ;;  %p3935_p8 = scmp.lt.u32.totalorder %s3931_s26, %s5428_s6 }
 0x85d   :  { %p3937_p9 = pnand %p3935_p8, %p3932_p7 }
 0x85f   :  { %3940 = shalt.err (!%p3937_p9)
}
 0x860   :  { %s3981_s30 = smov 64   ;;  %s3982_s8 = smov 4   ;;  %v3078_v28 = vmul.f32 0.5, %v3068_v54  ;;  %v3738_v45 = vpop.eup %3737  ;;  %v3092_v4 = vpop.permute.xlu1 %3091 }
 0x861   :  { %3209 = dma.vmem_to_hbm [thread:$0]  %s3204_s23, 512, %s5428_s6, [#allocation12], %s3981_s30, %s3981_s30, %s3982_s8   ;;  %v3740_v9 = vpop.eup %3739  ;;  %v3071_v34 = vmul.f32 0.5, %v3738_v45  ;;  %vm3093_vm12 = vcmp.eq.s32.totalorder %v3092_v4, 1 }
 0x862   :  { %v3075_v16 = vmul.f32 0.5, %v3740_v9  ;;  %3743 = vtanh.f32 %v3078_v28  ;;  %v3742_v27 = vpop.eup %3741  ;;  %s3983_s6 = smov [#allocation16]  }
 0x863   :  { %v3072_v58 = vadd.f32 0.5, %v3071_v34  ;;  %s3219_s11 = sshll.u32 %s3983_s6, 4  ;;  %s3220_s11 = int_to_ptr.vmem [resolvable:$true] %s3219_s11 }
 0x864   :  { %v3076_v47 = vadd.f32 0.5, %v3075_v16  ;;  %s3941_s12 = scalar_lea.vmem %s3220_s11, 512  ;;  %p3946_p11 = scmp.lt.s32.totalorder %s3220_s11, %s3220_s11 }
 0x865   :  { %v3083_v41 = vmul.f32 %v3742_v27, %v3072_v58  ;;  %p3942_p10 = scmp.ne.s32.totalorder %s3220_s11, %s3941_s12  ;;  %p3947_p12 = scmp.lt.s32.totalorder %s3941_s12, %s3941_s12 }
 0x866   :  { %v3082_v21 = vmul.f32 %v3076_v47, %v5373_v63 }
 0x867   :  { %p3948_p13 = por %p3947_p12, %p3946_p11 }
 0x868   :  { %v3084_v35 = vadd.f32 %v3083_v41, %v3082_v21 }
 0x869   :  { %p3949_p0 = pnand %p3948_p13, %p3942_p10 }
 0x86a   :  { %3745 = vtanh.f32 %v3084_v35 }
 0x86c   :  { %v3744_v53 = vpop.eup %3743 }
 0x86d   :  { %v3080_v59 = vmul.f32 0.5, %v3744_v53 }
 0x86f   :  { %v3081_v22 = vadd.f32 0.5, %v3080_v59 }
 0x874   :  { %v3746_v61 = vpop.eup %3745 }
 0x875   :  { %v3086_v23 = vmul.f32 %v3746_v61, %v3081_v22 }
 0x877   :  { %v3096_v26 = vsel %vm3093_vm12, %v3086_v23, 0.0 }
 0x878   :  { %v3425_v5 = vpack.c.bf16 %v5376_v10, %v3096_v26 }
 0x87a   :  { %3426 = vst [vmem:[#allocation16] sm:$0xff] %v3425_v5  }
 0x87b   :  { %3952 = shalt.err (!%p3949_p0)
}
 0x87c   :  { %s3953_s14 = scalar_lea.hbm %s5429_s7, 512 }
 0x87d   :  { %p3954_p1 = scmp.ne.s32.totalorder %s5429_s7, %s3953_s14  ;;  %p3957_p2 = scmp.lt.u32.totalorder %s3953_s14, %s5429_s7 }
 0x87f   :  { %p3959_p3 = pnand %p3957_p2, %p3954_p1 }
 0x881   :  { %3962 = shalt.err (!%p3959_p3)
}
 0x882   :  { %3225 = dma.vmem_to_hbm [thread:$0]  %s3220_s11, 512, %s5429_s7, [#allocation17], %s3981_s30, %s3981_s30, %s3982_s8  }
 0x883   :  { %3967 = dma.done.wait [#allocation12], 512  }
 0x884   :  { %3968 = vsyncadd [#allocation12], 4294966784 }
 0x885   :  { %3969 = dma.done.wait [#allocation17], 512  }
 0x886   :  { %3970 = vsyncadd [#allocation17], 4294966784 }
 0x887   :  { %3232 = vsyncpa [#allocation11], 1 }
 0x888   :  { %3233 = vsyncpa [#allocation14], 1 }
 0x889   :  { %3234 = vsyncpa [#allocation12], 1 }
 0x88a   :  { %3235 = vsyncpa [#allocation17], 1 }

</bundles_post_ra>
